<compile_context>
chip_gen: v7x
topology: tpu7x:2x2x1
jax: 0.10.0
libtpu: 0.0.40
codegen_flags: <defaults>
</compile_context>

<pallas_src>
import functools

import jax
import jax.numpy as jnp
from jax.experimental import pallas as pl
from jax.experimental.pallas import tpu as pltpu

LANE = 128


def _round_up(x, m):
    return (x + m - 1) // m * m


# ---------------------------------------------------------------------------
# VMEM capacity / limits (per-generation: 128 MiB v5e/v6e, 64 MiB v7x)
# ---------------------------------------------------------------------------

_VMEM_CAP = None


def _vmem_capacity_bytes():
    global _VMEM_CAP
    if _VMEM_CAP is None:
        cap = 64 * 1024 * 1024  # conservative default (v7x physical VMEM)
        try:
            info = pltpu.get_tpu_info()
            for name in ("vmem_capacity_bytes", "vmem_size_bytes", "vmem_bytes"):
                v = getattr(info, name, None)
                if v:
                    cap = int(v)
                    break
        except Exception:
            pass
        _VMEM_CAP = cap
    return _VMEM_CAP


def _vmem_limit_bytes():
    # ~96 MiB on v5e/v6e (128 MiB physical), ~48 MiB on v7x (64 MiB physical).
    return min(int(0.75 * _vmem_capacity_bytes()), 100 * 1024 * 1024)


def _vmem_budget_bytes():
    # Working-set budget for tile selection (headroom for compiler scratch).
    return int(0.55 * _vmem_capacity_bytes())


def _pick_agg_tiles(np_, hp, budget):
    """Pick (tm, tk) for the MPNN aggregation under the VMEM working-set budget.

    Prefers tk = np_ (no k grid axis) and the largest tm that divides np_.
    """
    tm_cands = [t for t in (1024, 896, 768, 640, 512, 384, 256, 128) if np_ % t == 0]
    if not tm_cands:
        tm_cands = [np_]
    tk_cands = [np_] + [t for t in (8192, 4096, 2048, 1024, 512, 384, 256, 128)
                        if t < np_ and np_ % t == 0]
    for tm in tm_cands:
        for tk in tk_cands:
            ws = (2 * tm * tk * 2        # A panel (bf16, double-buffered)
                  + 2 * np_ * hp * 2     # resident projected messages (2 bufs)
                  + 2 * tm * hp * 2      # bf16 y output block
                  + tm * hp * 4          # f32 accumulator scratch
                  + 2 * tm * 8 * 4       # sd block
                  + 4 * 8 * hp * 4)      # wb + stats blocks
            if ws <= budget:
                return tm, tk
    return 128, 128


# ---------------------------------------------------------------------------
# Generic row-tiled linear:  out = x_tile @ W + b   (W, b resident in VMEM)
# ---------------------------------------------------------------------------

def _linear_kernel(x_ref, w_ref, b_ref, o_ref):
    acc = jnp.dot(x_ref[...], w_ref[...], preferred_element_type=jnp.float32)
    o_ref[...] = (acc + b_ref[...]).astype(o_ref.dtype)


def pallas_linear(x, w, b, *, out_dtype, tm):
    n, k = x.shape
    _, f = w.shape
    return pl.pallas_call(
        _linear_kernel,
        out_shape=jax.ShapeDtypeStruct((n, f), out_dtype),
        grid_spec=pltpu.PrefetchScalarGridSpec(
            num_scalar_prefetch=0,
            grid=(n // tm,),
            in_specs=[
                pl.BlockSpec((tm, k), lambda i: (i, 0)),
                pl.BlockSpec((k, f), lambda i: (0, 0)),
                pl.BlockSpec((1, f), lambda i: (0, 0)),
            ],
            out_specs=pl.BlockSpec((tm, f), lambda i: (i, 0)),
        ),
        compiler_params=pltpu.CompilerParams(
            dimension_semantics=("parallel",),
            vmem_limit_bytes=_vmem_limit_bytes(),
        ),
    )(x, w, b)


# ---------------------------------------------------------------------------
# MPNN aggregation:  y = A @ xw + [s, deg, 0...] @ [w_e; b; 0...]
# Grid (row tiles, k tiles); xw fully VMEM-resident; f32 accumulator scratch;
# bf16 y writeback; per-row-tile GraphNorm stats (sum, sum-of-squares) in f32.
# ---------------------------------------------------------------------------

def _mpnn_agg_kernel(a_ref, xw_ref, sd_ref, wb_ref, y_ref, stats_ref, acc_ref):
    k = pl.program_id(1)
    tk = a_ref.shape[1]

    @pl.when(k == 0)
    def _():
        acc_ref[...] = jnp.zeros_like(acc_ref)

    off = pl.multiple_of(k * tk, 128)
    acc_ref[...] += jnp.dot(a_ref[...], xw_ref[pl.ds(off, tk), :],
                            preferred_element_type=jnp.float32)

    @pl.when(k == pl.num_programs(1) - 1)
    def _():
        # epilogue: edge-attr / bias term via a tiny MXU matmul, then stats
        acc_ref[...] += jnp.dot(sd_ref[...], wb_ref[...],
                                preferred_element_type=jnp.float32)
        y_ref[...] = acc_ref[...].astype(y_ref.dtype)
        stats_ref[...] = jnp.zeros_like(stats_ref)
        stats_ref[0:1, :] = jnp.sum(acc_ref[...], axis=0, keepdims=True)
        stats_ref[1:2, :] = jnp.sum(acc_ref[...] * acc_ref[...], axis=0,
                                    keepdims=True)


def pallas_mpnn_agg(a_bf16, xw_bf16, sd, wb, *, tm, tk):
    np_ = a_bf16.shape[0]
    hp = xw_bf16.shape[1]
    n_row = np_ // tm
    n_k = np_ // tk
    flops = 2 * np_ * np_ * hp + 2 * np_ * 8 * hp
    bytes_accessed = (a_bf16.size * 2 + xw_bf16.size * 2 + np_ * hp * 2
                      + n_row * 8 * hp * 4 + sd.size * 4 + wb.size * 4)
    return pl.pallas_call(
        _mpnn_agg_kernel,
        out_shape=(
            jax.ShapeDtypeStruct((np_, hp), jnp.bfloat16),        # y (bf16)
            jax.ShapeDtypeStruct((n_row * 8, hp), jnp.float32),   # partial stats
        ),
        grid_spec=pltpu.PrefetchScalarGridSpec(
            num_scalar_prefetch=0,
            grid=(n_row, n_k),
            in_specs=[
                pl.BlockSpec((tm, tk), lambda i, k: (i, k)),      # A (bf16)
                pl.BlockSpec((np_, hp), lambda i, k: (0, 0)),     # xw resident
                pl.BlockSpec((tm, 8), lambda i, k: (i, 0)),       # [s, deg, 0..]
                pl.BlockSpec((8, hp), lambda i, k: (0, 0)),       # [w_e; b; 0..]
            ],
            out_specs=[
                pl.BlockSpec((tm, hp), lambda i, k: (i, 0)),
                pl.BlockSpec((8, hp), lambda i, k: (i, 0)),
            ],
            scratch_shapes=[pltpu.VMEM((tm, hp), jnp.float32)],
        ),
        compiler_params=pltpu.CompilerParams(
            dimension_semantics=("parallel", "arbitrary"),
            vmem_limit_bytes=_vmem_limit_bytes(),
        ),
        cost_estimate=pl.CostEstimate(
            flops=flops, transcendentals=0, bytes_accessed=bytes_accessed),
    )(a_bf16, xw_bf16, sd, wb)


# ---------------------------------------------------------------------------
# GraphNorm + ReLU (+ optional fused next projection)
# Stats (sum / sum-sq over the true nodes) come precomputed from the MPNN pass.
# ---------------------------------------------------------------------------

def _gn_relu_core(inv_n, y_ref, st_ref, g_ref, b_ref, a_ref):
    mean = st_ref[0:1, :] * inv_n
    ex2 = st_ref[1:2, :] * inv_n
    alpha = a_ref[...]
    # var = E[(x - alpha*mean)^2] = E[x^2] - mean^2 * alpha * (2 - alpha)
    var = ex2 - mean * mean * alpha * (2.0 - alpha)
    inv_std = jax.lax.rsqrt(var + 1e-5)
    y = y_ref[...].astype(jnp.float32)
    return jnp.maximum(g_ref[...] * (y - alpha * mean) * inv_std + b_ref[...], 0.0)


def _gn_relu_kernel(inv_n, y_ref, st_ref, g_ref, b_ref, a_ref, o_ref):
    o_ref[...] = _gn_relu_core(inv_n, y_ref, st_ref, g_ref, b_ref, a_ref).astype(
        o_ref.dtype)


def _gn_relu_proj_kernel(inv_n, y_ref, st_ref, g_ref, b_ref, a_ref, w_ref, o_ref):
    h = _gn_relu_core(inv_n, y_ref, st_ref, g_ref, b_ref, a_ref)
    o_ref[...] = jnp.dot(h.astype(w_ref.dtype), w_ref[...],
                         preferred_element_type=jnp.float32).astype(o_ref.dtype)


def _gn_common_specs(tm, hp):
    return [
        pl.BlockSpec((tm, hp), lambda i: (i, 0)),   # y tile
        pl.BlockSpec((2, hp), lambda i: (0, 0)),    # [sum; sum_sq]
        pl.BlockSpec((1, hp), lambda i: (0, 0)),    # gamma
        pl.BlockSpec((1, hp), lambda i: (0, 0)),    # beta
        pl.BlockSpec((1, hp), lambda i: (0, 0)),    # alpha (mean_scale)
    ]


def pallas_graphnorm_relu(y, stats, gamma, beta, alpha, *, n_true, tm,
                          out_dtype=jnp.float32):
    np_, hp = y.shape
    kernel = functools.partial(_gn_relu_kernel, 1.0 / float(n_true))
    return pl.pallas_call(
        kernel,
        out_shape=jax.ShapeDtypeStruct((np_, hp), out_dtype),
        grid_spec=pltpu.PrefetchScalarGridSpec(
            num_scalar_prefetch=0,
            grid=(np_ // tm,),
            in_specs=_gn_common_specs(tm, hp),
            out_specs=pl.BlockSpec((tm, hp), lambda i: (i, 0)),
        ),
        compiler_params=pltpu.CompilerParams(
            dimension_semantics=("parallel",),
            vmem_limit_bytes=_vmem_limit_bytes(),
        ),
    )(y, stats, gamma, beta, alpha)


def pallas_gn_relu_proj(y, stats, gamma, beta, alpha, w_bf16, *, n_true, tm,
                        out_dtype=jnp.bfloat16):
    np_, hp = y.shape
    _, f = w_bf16.shape
    kernel = functools.partial(_gn_relu_proj_kernel, 1.0 / float(n_true))
    return pl.pallas_call(
        kernel,
        out_shape=jax.ShapeDtypeStruct((np_, f), out_dtype),
        grid_spec=pltpu.PrefetchScalarGridSpec(
            num_scalar_prefetch=0,
            grid=(np_ // tm,),
            in_specs=_gn_common_specs(tm, hp)
                     + [pl.BlockSpec((hp, f), lambda i: (0, 0))],   # wx2T resident
            out_specs=pl.BlockSpec((tm, f), lambda i: (i, 0)),
        ),
        compiler_params=pltpu.CompilerParams(
            dimension_semantics=("parallel",),
            vmem_limit_bytes=_vmem_limit_bytes(),
        ),
    )(y, stats, gamma, beta, alpha, w_bf16)


# ---------------------------------------------------------------------------
# Parameter construction (PyTorch-Linear-like uniform init) and inference prep
# ---------------------------------------------------------------------------

def _init_linear(key, fan_in, fan_out):
    kw, kb = jax.random.split(key)
    bound = 1.0 / jnp.sqrt(jnp.float32(fan_in))
    w = jax.random.uniform(kw, (fan_out, fan_in), jnp.float32, -bound, bound)
    b = jax.random.uniform(kb, (fan_out,), jnp.float32, -bound, bound)
    return w, b


def make_params(key, n_drug, n_cell, n_gene, hidden1, hidden2, hidden3):
    keys = jax.random.split(key, 6)
    p = {}
    p["lin_drug_w"], p["lin_drug_b"] = _init_linear(keys[0], n_drug, hidden1)
    p["lin_cell_w"], p["lin_cell_b"] = _init_linear(keys[1], n_cell, hidden1)
    p["lin_gene_w"], p["lin_gene_b"] = _init_linear(keys[2], n_gene, hidden1)
    # MPNNConv lin: Linear(in_channels + 1, out_channels)
    p["gat1_w"], p["gat1_b"] = _init_linear(keys[3], hidden1 + 1, hidden2)
    p["gat2_w"], p["gat2_b"] = _init_linear(keys[4], hidden2 + 1, hidden3)
    # GraphNorm defaults: weight=1, bias=0, mean_scale=1
    p["gn1_w"] = jnp.ones((hidden2,), jnp.float32)
    p["gn1_b"] = jnp.zeros((hidden2,), jnp.float32)
    p["gn1_a"] = jnp.ones((hidden2,), jnp.float32)
    p["gn2_w"] = jnp.ones((hidden3,), jnp.float32)
    p["gn2_b"] = jnp.zeros((hidden3,), jnp.float32)
    p["gn2_a"] = jnp.ones((hidden3,), jnp.float32)
    p["lin1_w"], p["lin1_b"] = _init_linear(keys[5], 2 * hidden3, 1)
    return p


def _pad_to(x, shape):
    return jnp.pad(x, [(0, s - d) for d, s in zip(x.shape, shape)])


def prepare_inference_params(p, n_drug_feat, n_cell_feat, n_gene_feat,
                             hidden1, hidden2, hidden3):
    """Fold / pre-transpose / zero-pad all weights once (lane-dense widths)."""
    h2p = _round_up(hidden2, LANE)
    h3p = _round_up(hidden3, LANE)
    f_feats = n_drug_feat + n_cell_feat + n_gene_feat
    kpad = _round_up(f_feats + 3, LANE)
    q = {}

    # Input projection (block-diag + bias one-hot cols) folded algebraically
    # into the layer-1 node projection: xw1 = x_in @ (W_in @ Wx1_node^T).
    w_in = jnp.zeros((f_feats + 3, hidden1), jnp.float32)
    w_in = w_in.at[:n_drug_feat, :].set(p["lin_drug_w"].T)
    w_in = w_in.at[n_drug_feat:n_drug_feat + n_cell_feat, :].set(p["lin_cell_w"].T)
    w_in = w_in.at[n_drug_feat + n_cell_feat:f_feats, :].set(p["lin_gene_w"].T)
    w_in = w_in.at[f_feats + 0, :].set(p["lin_drug_b"])
    w_in = w_in.at[f_feats + 1, :].set(p["lin_cell_b"])
    w_in = w_in.at[f_feats + 2, :].set(p["lin_gene_b"])
    w_fused = w_in @ p["gat1_w"][:, :hidden1].T            # (f_feats+3, hidden2)
    q["w_fused"] = _pad_to(w_fused, (kpad, h2p))           # f32, K lane-dense
    q["b_zero1"] = jnp.zeros((1, h2p), jnp.float32)

    # Layer 1 MPNN edge-attr / bias stack.
    wb1 = jnp.zeros((8, h2p), jnp.float32)
    wb1 = wb1.at[0, :hidden2].set(p["gat1_w"][:, hidden1])
    wb1 = wb1.at[1, :hidden2].set(p["gat1_b"])
    q["wb1"] = wb1
    q["gn1_w"] = _pad_to(p["gn1_w"][None, :], (1, h2p))
    q["gn1_b"] = _pad_to(p["gn1_b"][None, :], (1, h2p))
    q["gn1_a"] = jnp.pad(p["gn1_a"][None, :], ((0, 0), (0, h2p - hidden2)),
                         constant_values=1.0)

    # Layer 2.
    q["wx2T"] = _pad_to(p["gat2_w"][:, :hidden2].T, (h2p, h3p)).astype(jnp.bfloat16)
    wb2 = jnp.zeros((8, h3p), jnp.float32)
    wb2 = wb2.at[0, :hidden3].set(p["gat2_w"][:, hidden2])
    wb2 = wb2.at[1, :hidden3].set(p["gat2_b"])
    q["wb2"] = wb2
    q["gn2_w"] = _pad_to(p["gn2_w"][None, :], (1, h3p))
    q["gn2_b"] = _pad_to(p["gn2_b"][None, :], (1, h3p))
    q["gn2_a"] = jnp.pad(p["gn2_a"][None, :], ((0, 0), (0, h3p - hidden3)),
                         constant_values=1.0)

    # Final pair linear: output padded 1 -> 128 (lane-dense unmasked stores).
    w1 = jnp.zeros((2 * h3p, LANE), jnp.float32)
    w1 = w1.at[:hidden3, 0].set(p["lin1_w"][0, :hidden3])
    w1 = w1.at[h3p:h3p + hidden3, 0].set(p["lin1_w"][0, hidden3:])
    q["w1T"] = w1
    q["b1"] = jnp.zeros((1, LANE), jnp.float32).at[0, 0].set(p["lin1_b"][0])
    return q


def prepare_graph(edge_index, edge_attr, num_nodes):
    """Build dense bf16 adjacency and [edge-attr-sum, in-degree] once per graph."""
    np_ = _round_up(num_nodes, LANE)
    if edge_attr.ndim == 1:
        edge_attr = edge_attr[:, None]
    edge_attr = edge_attr.astype(jnp.float32)
    src, tgt = edge_index[0], edge_index[1]
    a = jnp.zeros((np_, np_), jnp.float32).at[tgt, src].add(1.0)
    # bf16 represents integer edge multiplicities exactly only up to 256.
    assert float(jnp.max(a)) <= 256.0, "edge multiplicity too large for bf16 adjacency"
    sd = jnp.zeros((np_, 8), jnp.float32)
    sd = sd.at[tgt, 0].add(edge_attr[:, 0])   # s  (sum of incoming edge_attr)
    sd = sd.at[tgt, 1].add(1.0)               # deg (in-degree)
    return a.astype(jnp.bfloat16), sd


# ---------------------------------------------------------------------------
# drGT forward (MPNN path, eval mode)
# ---------------------------------------------------------------------------

@functools.partial(jax.jit, static_argnames=("tm", "tk"))
def drgt_forward(q, drug, cell, gene, a_bf16, sd, idx_drug, idx_cell, *,
                 tm=None, tk=None):
    nd, nc, ng = drug.shape[0], cell.shape[0], gene.shape[0]
    n_true = nd + nc + ng
    np_ = a_bf16.shape[0]
    kpad, h2p = q["w_fused"].shape
    h3p = q["wx2T"].shape[1]
    fd, fc, fg = drug.shape[1], cell.shape[1], gene.shape[1]
    f_feats = fd + fc + fg
    n_pairs = idx_drug.shape[0]

    if tm is None or tk is None:
        tm_a, tk_a = _pick_agg_tiles(np_, max(h2p, h3p), _vmem_budget_bytes())
        tm = tm if tm is not None else tm_a
        tk = tk if tk is not None else tk_a
    n_row = np_ // tm

    # ---- assemble padded, one-hot-augmented input features (XLA glue) ----
    x_in = jnp.zeros((np_, kpad), jnp.float32)
    x_in = x_in.at[:nd, :fd].set(drug)
    x_in = x_in.at[nd:nd + nc, fd:fd + fc].set(cell)
    x_in = x_in.at[nd + nc:n_true, fd + fc:f_feats].set(gene)
    x_in = x_in.at[:nd, f_feats + 0].set(1.0)
    x_in = x_in.at[nd:nd + nc, f_feats + 1].set(1.0)
    x_in = x_in.at[nd + nc:n_true, f_feats + 2].set(1.0)

    # ---- layer 1: fused input+node projection -> aggregate(+stats)
    #      -> GraphNorm+ReLU fused with the layer-2 node projection ----
    xw1 = pallas_linear(x_in, q["w_fused"], q["b_zero1"],
                        out_dtype=jnp.bfloat16, tm=tm)
    y1, st1_raw = pallas_mpnn_agg(a_bf16, xw1, sd, q["wb1"], tm=tm, tk=tk)
    st1 = st1_raw.reshape(n_row, 8, h2p)[:, :2, :].sum(axis=0)
    xw2 = pallas_gn_relu_proj(y1, st1, q["gn1_w"], q["gn1_b"], q["gn1_a"],
                              q["wx2T"], n_true=n_true, tm=tm)
    # dropout1: identity (eval mode)

    # ---- layer 2: aggregate(+stats) -> GraphNorm + ReLU ----
    y2, st2_raw = pallas_mpnn_agg(a_bf16, xw2, sd, q["wb2"], tm=tm, tk=tk)
    st2 = st2_raw.reshape(n_row, 8, h3p)[:, :2, :].sum(axis=0)
    x2 = pallas_graphnorm_relu(y2, st2, q["gn2_w"], q["gn2_b"], q["gn2_a"],
                               n_true=n_true, tm=tm)
    # dropout2: identity (eval mode)
    # NOTE: padded node rows of x2 are non-zero garbage after GraphNorm; they are
    # never read (A padded cols are zero, gathers use true-node indices only).

    # ---- pair gather + row-tiled final linear (lane-dense 128-wide output) ----
    pair = jnp.concatenate([x2[idx_drug], x2[idx_cell]], axis=1)   # [M, 2*h3p]
    mp = _round_up(n_pairs, 512) if n_pairs > 512 else _round_up(n_pairs, 8)
    tmp = min(mp, 512)
    pair = jnp.pad(pair, ((0, mp - n_pairs), (0, 0)))
    out = pallas_linear(pair, q["w1T"], q["b1"], out_dtype=jnp.float32, tm=tmp)
    return out[:n_pairs, :1]


# ---------------------------------------------------------------------------
# Pure-JAX f32 reference (mirrors the PyTorch module)
# ---------------------------------------------------------------------------

def reference_forward(p, drug, cell, gene, edge_index, edge_attr, idx_drug, idx_cell):
    x = jnp.concatenate([drug @ p["lin_drug_w"].T + p["lin_drug_b"],
                         cell @ p["lin_cell_w"].T + p["lin_cell_b"],
                         gene @ p["lin_gene_w"].T + p["lin_gene_b"]], axis=0)
    if edge_attr.ndim == 1:
        edge_attr = edge_attr[:, None]
    edge_attr = edge_attr.astype(jnp.float32)
    src, tgt = edge_index[0], edge_index[1]
    n = x.shape[0]

    def mpnn(h, w, b):
        msg = jnp.concatenate([h[src], edge_attr], axis=1) @ w.T + b
        return jnp.zeros((n, w.shape[0]), jnp.float32).at[tgt].add(msg)

    def graph_norm(h, gamma, beta, alpha):
        mean = h.mean(axis=0, keepdims=True)
        hc = h - alpha * mean
        var = (hc * hc).mean(axis=0, keepdims=True)
        return gamma * hc * jax.lax.rsqrt(var + 1e-5) + beta

    h = mpnn(x, p["gat1_w"], p["gat1_b"])
    h = jnp.maximum(graph_norm(h, p["gn1_w"], p["gn1_b"], p["gn1_a"]), 0.0)
    h = mpnn(h, p["gat2_w"], p["gat2_b"])
    h = jnp.maximum(graph_norm(h, p["gn2_w"], p["gn2_b"], p["gn2_a"]), 0.0)
    pair = jnp.concatenate([h[idx_drug], h[idx_cell]], axis=1)
    return pair @ p["lin1_w"].T + p["lin1_b"]


# ---------------------------------------------------------------------------
# Example run
# ---------------------------------------------------------------------------

if __name__ == "__main__":
    _vmem_capacity_bytes()   # prime the hardware query outside of tracing

    key = jax.random.PRNGKey(0)
    k_param, k_drug, k_cell, k_gene, k_src, k_tgt, k_attr = jax.random.split(key, 7)

    # Small synthetic problem: 316 nodes pad to 384.
    n_drug_feat, n_cell_feat, n_gene_feat = 8, 8, 16
    n_drug_nodes, n_cell_nodes, n_gene_nodes = 8, 8, 300
    hidden1, hidden2, hidden3 = 32, 32, 16
    E = 2048                                   # number of edges
    M = 6                                      # number of (drug, cell) pairs
    n_nodes = n_drug_nodes + n_cell_nodes + n_gene_nodes

    params = make_params(k_param, n_drug_feat, n_cell_feat, n_gene_feat,
                         hidden1, hidden2, hidden3)
    prep = prepare_inference_params(params, n_drug_feat, n_cell_feat, n_gene_feat,
                                    hidden1, hidden2, hidden3)

    drug = jax.random.normal(k_drug, (n_drug_nodes, n_drug_feat), jnp.float32)
    cell = jax.random.normal(k_cell, (n_cell_nodes, n_cell_feat), jnp.float32)
    gene = jax.random.normal(k_gene, (n_gene_nodes, n_gene_feat), jnp.float32)

    src = jax.random.randint(k_src, (E,), 0, n_nodes)
    tgt = jax.random.randint(k_tgt, (E,), 0, n_nodes)
    edge_index = jnp.stack([src, tgt], axis=0)                 # [2, E]
    edge_attr = jax.random.uniform(k_attr, (E,), jnp.float32)  # 1-D -> unsqueezed

    idx_drug = jnp.arange(M) % n_drug_nodes
    idx_cell = n_drug_nodes + (jnp.arange(M) % n_cell_nodes)

    # Graph preprocessing done once per graph (outside the per-forward jit).
    a_bf16, sd = prepare_graph(edge_index, edge_attr, n_nodes)

    ref = reference_forward(params, drug, cell, gene, edge_index, edge_attr,
                            idx_drug, idx_cell)

    # Default (large-tile / no k axis) configuration.
    out = drgt_forward(prep, drug, cell, gene, a_bf16, sd, idx_drug, idx_cell)
    out = jax.block_until_ready(out)
    assert out.shape == (M, 1) and out.dtype == jnp.float32
    assert bool(jnp.all(jnp.isfinite(out)))

    # Forced small tiles: exercises the multi row-tile / multi k-tile accumulator
    # and stats-reduction paths of the aggregation kernel.
    out_small = drgt_forward(prep, drug, cell, gene, a_bf16, sd, idx_drug, idx_cell,
                             tm=128, tk=128)
    out_small = jax.block_until_ready(out_small)

    scale = float(jnp.max(jnp.abs(ref))) + 1e-6
    tol = 0.1 + 0.05 * scale                   # generous: bf16 A / message path
    err1 = float(jnp.max(jnp.abs(out - ref)))
    err2 = float(jnp.max(jnp.abs(out_small - ref)))
    assert err1 <= tol, f"large-tile mismatch {err1} > {tol}"
    assert err2 <= tol, f"small-tile mismatch {err2} > {tol}"
    print("KERNEL_OK")
</pallas_src>

<mosaic_0001>
module attributes {stable_mosaic.version = 11 : i64} {
  func.func @_linear_kernel(%arg0: i32, %arg1: memref<384x128xf32, #tpu.memory_space<vmem>>, %arg2: memref<128x128xf32, #tpu.memory_space<vmem>>, %arg3: memref<1x128xf32, #tpu.memory_space<vmem>>, %arg4: memref<384x128xbf16, #tpu.memory_space<vmem>>) attributes {dimension_semantics = [#tpu.dimension_semantics<parallel>], iteration_bounds = array<i64: 1>, scalar_prefetch = 0 : i64, scratch_operands = 0 : i64, tpu.core_type = #tpu.core_type<tc>, window_params = [{transform_indices = @transform_0, window_bounds = array<i64: 384, 128>}, {pipeline_mode = #tpu.pipeline_mode<synchronous>, transform_indices = @transform_1, window_bounds = array<i64: 128, 128>}, {pipeline_mode = #tpu.pipeline_mode<synchronous>, transform_indices = @transform_2, window_bounds = array<i64: 1, 128>}, {transform_indices = @transform_3, window_bounds = array<i64: 384, 128>}]} {
    %c0 = arith.constant 0 : index
    %c0_0 = arith.constant 0 : index
    %0 = vector.load %arg1[%c0, %c0_0] : memref<384x128xf32, #tpu.memory_space<vmem>>, vector<384x128xf32>
    %c0_1 = arith.constant 0 : index
    %c0_2 = arith.constant 0 : index
    %1 = vector.load %arg2[%c0_1, %c0_2] : memref<128x128xf32, #tpu.memory_space<vmem>>, vector<128x128xf32>
    %cst = arith.constant dense<0.000000e+00> : vector<384x128xf32>
    %2 = tpu.matmul %0, %1, %cst {dimension_numbers = #tpu.dot_dimension_numbers<[1], [0], [0], [1], [0, 0, 1, 1], [], []>} : vector<384x128xf32>, vector<128x128xf32>, vector<384x128xf32> -> vector<384x128xf32>
    %c0_3 = arith.constant 0 : index
    %c0_4 = arith.constant 0 : index
    %3 = vector.load %arg3[%c0_3, %c0_4] : memref<1x128xf32, #tpu.memory_space<vmem>>, vector<1x128xf32>
    %4 = vector.broadcast %3 : vector<1x128xf32> to vector<384x128xf32>
    %5 = arith.addf %2, %4 : vector<384x128xf32>
    %6 = arith.truncf %5 : vector<384x128xf32> to vector<384x128xbf16>
    %c0_5 = arith.constant 0 : index
    %c0_6 = arith.constant 0 : index
    %7 = vector.load %arg4[%c0_5, %c0_6] : memref<384x128xbf16, #tpu.memory_space<vmem>>, vector<384x128xbf16>
    tpu.vector_store %arg4[%c0_5, %c0_6], %6 {strides = array<i32>} : memref<384x128xbf16, #tpu.memory_space<vmem>>, vector<384x128xbf16>,
    return
  }
  func.func @transform_0(%arg0: i32) -> (i32, i32) {
    %c0_i32 = arith.constant 0 : i32
    %c0_i32_0 = arith.constant 0 : i32
    return %arg0, %c0_i32 : i32, i32
  }
  func.func @transform_1(%arg0: i32) -> (i32, i32) {
    %c0_i32 = arith.constant 0 : i32
    %c0_i32_0 = arith.constant 0 : i32
    %c0_i32_1 = arith.constant 0 : i32
    return %c0_i32, %c0_i32_0 : i32, i32
  }
  func.func @transform_2(%arg0: i32) -> (i32, i32) {
    %c0_i32 = arith.constant 0 : i32
    %c0_i32_0 = arith.constant 0 : i32
    %c0_i32_1 = arith.constant 0 : i32
    return %c0_i32, %c0_i32_0 : i32, i32
  }
  func.func @transform_3(%arg0: i32) -> (i32, i32) {
    %c0_i32 = arith.constant 0 : i32
    %c0_i32_0 = arith.constant 0 : i32
    return %arg0, %c0_i32 : i32, i32
  }
}

module attributes {stable_mosaic.version = 11 : i64} {
  func.func @_mpnn_agg_kernel(%arg0: i32, %arg1: i32, %arg2: memref<384x384xbf16, #tpu.memory_space<vmem>>, %arg3: memref<384x128xbf16, #tpu.memory_space<vmem>>, %arg4: memref<384x8xf32, #tpu.memory_space<vmem>>, %arg5: memref<8x128xf32, #tpu.memory_space<vmem>>, %arg6: memref<384x128xbf16, #tpu.memory_space<vmem>>, %arg7: memref<8x128xf32, #tpu.memory_space<vmem>>, %arg8: memref<384x128xf32, #tpu.memory_space<vmem>>) attributes {dimension_semantics = [#tpu.dimension_semantics<parallel>, #tpu.dimension_semantics<arbitrary>], iteration_bounds = array<i64: 1, 1>, scalar_prefetch = 0 : i64, scratch_operands = 1 : i64, tpu.core_type = #tpu.core_type<tc>, window_params = [{transform_indices = @transform_0, window_bounds = array<i64: 384, 384>}, {pipeline_mode = #tpu.pipeline_mode<synchronous>, transform_indices = @transform_1, window_bounds = array<i64: 384, 128>}, {transform_indices = @transform_2, window_bounds = array<i64: 384, 8>}, {pipeline_mode = #tpu.pipeline_mode<synchronous>, transform_indices = @transform_3, window_bounds = array<i64: 8, 128>}, {transform_indices = @transform_4, window_bounds = array<i64: 384, 128>}, {transform_indices = @transform_5, window_bounds = array<i64: 8, 128>}]} {
    %c0_i32 = arith.constant 0 : i32
    %0 = arith.cmpi eq, %arg1, %c0_i32 : i32
    %1 = arith.extui %0 : i1 to i32
    %c0_i32_0 = arith.constant 0 : i32
    %2 = arith.cmpi ne, %1, %c0_i32_0 : i32
    scf.if %2 {
      %cst_9 = arith.constant 0.000000e+00 : f32
      %15 = vector.broadcast %cst_9 : f32 to vector<384x128xf32>
      %c0_10 = arith.constant 0 : index
      %c0_11 = arith.constant 0 : index
      %16 = vector.load %arg8[%c0_10, %c0_11] : memref<384x128xf32, #tpu.memory_space<vmem>>, vector<384x128xf32>
      tpu.vector_store %arg8[%c0_10, %c0_11], %15 {strides = array<i32>} : memref<384x128xf32, #tpu.memory_space<vmem>>, vector<384x128xf32>,
    } else {
    }
    %c384_i32 = arith.constant 384 : i32
    %3 = arith.muli %arg1, %c384_i32 : i32
    %4 = tpu.assume_multiple %3, 128 : i32
    %c0 = arith.constant 0 : index
    %c0_1 = arith.constant 0 : index
    %5 = vector.load %arg8[%c0, %c0_1] : memref<384x128xf32, #tpu.memory_space<vmem>>, vector<384x128xf32>
    %c0_2 = arith.constant 0 : index
    %c0_3 = arith.constant 0 : index
    %6 = vector.load %arg2[%c0_2, %c0_3] : memref<384x384xbf16, #tpu.memory_space<vmem>>, vector<384x384xbf16>
    %7 = arith.index_cast %4 : i32 to index
    %c0_4 = arith.constant 0 : index
    %8 = vector.load %arg3[%7, %c0_4] : memref<384x128xbf16, #tpu.memory_space<vmem>>, vector<384x128xbf16>
    %cst = arith.constant dense<0.000000e+00> : vector<384x128xf32>
    %9 = tpu.matmul %6, %8, %cst {dimension_numbers = #tpu.dot_dimension_numbers<[1], [0], [0], [1], [0, 0, 1, 1], [], []>} : vector<384x384xbf16>, vector<384x128xbf16>, vector<384x128xf32> -> vector<384x128xf32>
    %10 = arith.addf %5, %9 : vector<384x128xf32>
    %c0_5 = arith.constant 0 : index
    %c0_6 = arith.constant 0 : index
    %11 = vector.load %arg8[%c0_5, %c0_6] : memref<384x128xf32, #tpu.memory_space<vmem>>, vector<384x128xf32>
    tpu.vector_store %arg8[%c0_5, %c0_6], %10 {strides = array<i32>} : memref<384x128xf32, #tpu.memory_space<vmem>>, vector<384x128xf32>,
    %c0_i32_7 = arith.constant 0 : i32
    %12 = arith.cmpi eq, %arg1, %c0_i32_7 : i32
    %13 = arith.extui %12 : i1 to i32
    %c0_i32_8 = arith.constant 0 : i32
    %14 = arith.cmpi ne, %13, %c0_i32_8 : i32
    scf.if %14 {
      %c0_9 = arith.constant 0 : index
      %c0_10 = arith.constant 0 : index
      %15 = vector.load %arg8[%c0_9, %c0_10] : memref<384x128xf32, #tpu.memory_space<vmem>>, vector<384x128xf32>
      %c0_11 = arith.constant 0 : index
      %c0_12 = arith.constant 0 : index
      %16 = vector.load %arg4[%c0_11, %c0_12] : memref<384x8xf32, #tpu.memory_space<vmem>>, vector<384x8xf32>
      %c0_13 = arith.constant 0 : index
      %c0_14 = arith.constant 0 : index
      %17 = vector.load %arg5[%c0_13, %c0_14] : memref<8x128xf32, #tpu.memory_space<vmem>>, vector<8x128xf32>
      %cst_15 = arith.constant dense<0.000000e+00> : vector<384x128xf32>
      %18 = tpu.matmul %16, %17, %cst_15 {dimension_numbers = #tpu.dot_dimension_numbers<[1], [0], [0], [1], [0, 0, 1, 1], [], []>} : vector<384x8xf32>, vector<8x128xf32>, vector<384x128xf32> -> vector<384x128xf32>
      %19 = arith.addf %15, %18 : vector<384x128xf32>
      %c0_16 = arith.constant 0 : index
      %c0_17 = arith.constant 0 : index
      %20 = vector.load %arg8[%c0_16, %c0_17] : memref<384x128xf32, #tpu.memory_space<vmem>>, vector<384x128xf32>
      tpu.vector_store %arg8[%c0_16, %c0_17], %19 {strides = array<i32>} : memref<384x128xf32, #tpu.memory_space<vmem>>, vector<384x128xf32>,
      %c0_18 = arith.constant 0 : index
      %c0_19 = arith.constant 0 : index
      %21 = vector.load %arg8[%c0_18, %c0_19] : memref<384x128xf32, #tpu.memory_space<vmem>>, vector<384x128xf32>
      %22 = arith.truncf %21 : vector<384x128xf32> to vector<384x128xbf16>
      %c0_20 = arith.constant 0 : index
      %c0_21 = arith.constant 0 : index
      %23 = vector.load %arg6[%c0_20, %c0_21] : memref<384x128xbf16, #tpu.memory_space<vmem>>, vector<384x128xbf16>
      tpu.vector_store %arg6[%c0_20, %c0_21], %22 {strides = array<i32>} : memref<384x128xbf16, #tpu.memory_space<vmem>>, vector<384x128xbf16>,
      %cst_22 = arith.constant 0.000000e+00 : f32
      %24 = vector.broadcast %cst_22 : f32 to vector<8x128xf32>
      %c0_23 = arith.constant 0 : index
      %c0_24 = arith.constant 0 : index
      %25 = vector.load %arg7[%c0_23, %c0_24] : memref<8x128xf32, #tpu.memory_space<vmem>>, vector<8x128xf32>
      tpu.vector_store %arg7[%c0_23, %c0_24], %24 {strides = array<i32>} : memref<8x128xf32, #tpu.memory_space<vmem>>, vector<8x128xf32>,
      %c0_25 = arith.constant 0 : index
      %c0_26 = arith.constant 0 : index
      %26 = vector.load %arg8[%c0_25, %c0_26] : memref<384x128xf32, #tpu.memory_space<vmem>>, vector<384x128xf32>
      %cst_27 = arith.constant dense<0.000000e+00> : vector<128xf32>
      %27 = vector.multi_reduction <add>, %26, %cst_27 [0] : vector<384x128xf32> to vector<128xf32>
      %28 = vector.shape_cast %27 : vector<128xf32> to vector<1x128xf32>
      %c0_28 = arith.constant 0 : index
      %c0_29 = arith.constant 0 : index
      %29 = vector.load %arg7[%c0_28, %c0_29] : memref<8x128xf32, #tpu.memory_space<vmem>>, vector<1x128xf32>
      tpu.vector_store %arg7[%c0_28, %c0_29], %28 {strides = array<i32>} : memref<8x128xf32, #tpu.memory_space<vmem>>, vector<1x128xf32>,
      %c0_30 = arith.constant 0 : index
      %c0_31 = arith.constant 0 : index
      %30 = vector.load %arg8[%c0_30, %c0_31] : memref<384x128xf32, #tpu.memory_space<vmem>>, vector<384x128xf32>
      %c0_32 = arith.constant 0 : index
      %c0_33 = arith.constant 0 : index
      %31 = vector.load %arg8[%c0_32, %c0_33] : memref<384x128xf32, #tpu.memory_space<vmem>>, vector<384x128xf32>
      %32 = arith.mulf %30, %31 : vector<384x128xf32>
      %cst_34 = arith.constant dense<0.000000e+00> : vector<128xf32>
      %33 = vector.multi_reduction <add>, %32, %cst_34 [0] : vector<384x128xf32> to vector<128xf32>
      %34 = vector.shape_cast %33 : vector<128xf32> to vector<1x128xf32>
      %c1 = arith.constant 1 : index
      %c0_35 = arith.constant 0 : index
      %35 = vector.load %arg7[%c1, %c0_35] : memref<8x128xf32, #tpu.memory_space<vmem>>, vector<1x128xf32>
      tpu.vector_store %arg7[%c1, %c0_35], %34 {strides = array<i32>} : memref<8x128xf32, #tpu.memory_space<vmem>>, vector<1x128xf32>,
    } else {
    }
    return
  }
  func.func @transform_0(%arg0: i32, %arg1: i32) -> (i32, i32) {
    %c0_i32 = arith.constant 0 : i32
    return %arg0, %arg1 : i32, i32
  }
  func.func @transform_1(%arg0: i32, %arg1: i32) -> (i32, i32) {
    %c0_i32 = arith.constant 0 : i32
    %c0_i32_0 = arith.constant 0 : i32
    %c0_i32_1 = arith.constant 0 : i32
    return %c0_i32, %c0_i32_0 : i32, i32
  }
  func.func @transform_2(%arg0: i32, %arg1: i32) -> (i32, i32) {
    %c0_i32 = arith.constant 0 : i32
    %c0_i32_0 = arith.constant 0 : i32
    return %arg0, %c0_i32 : i32, i32
  }
  func.func @transform_3(%arg0: i32, %arg1: i32) -> (i32, i32) {
    %c0_i32 = arith.constant 0 : i32
    %c0_i32_0 = arith.constant 0 : i32
    %c0_i32_1 = arith.constant 0 : i32
    return %c0_i32, %c0_i32_0 : i32, i32
  }
  func.func @transform_4(%arg0: i32, %arg1: i32) -> (i32, i32) {
    %c0_i32 = arith.constant 0 : i32
    %c0_i32_0 = arith.constant 0 : i32
    return %arg0, %c0_i32 : i32, i32
  }
  func.func @transform_5(%arg0: i32, %arg1: i32) -> (i32, i32) {
    %c0_i32 = arith.constant 0 : i32
    %c0_i32_0 = arith.constant 0 : i32
    return %arg0, %c0_i32 : i32, i32
  }
}

module attributes {stable_mosaic.version = 11 : i64} {
  func.func @_gn_relu_proj_kernel(%arg0: i32, %arg1: memref<384x128xbf16, #tpu.memory_space<vmem>>, %arg2: memref<2x128xf32, #tpu.memory_space<vmem>>, %arg3: memref<1x128xf32, #tpu.memory_space<vmem>>, %arg4: memref<1x128xf32, #tpu.memory_space<vmem>>, %arg5: memref<1x128xf32, #tpu.memory_space<vmem>>, %arg6: memref<128x128xbf16, #tpu.memory_space<vmem>>, %arg7: memref<384x128xbf16, #tpu.memory_space<vmem>>) attributes {dimension_semantics = [#tpu.dimension_semantics<parallel>], iteration_bounds = array<i64: 1>, scalar_prefetch = 0 : i64, scratch_operands = 0 : i64, tpu.core_type = #tpu.core_type<tc>, window_params = [{transform_indices = @transform_0, window_bounds = array<i64: 384, 128>}, {pipeline_mode = #tpu.pipeline_mode<synchronous>, transform_indices = @transform_1, window_bounds = array<i64: 2, 128>}, {pipeline_mode = #tpu.pipeline_mode<synchronous>, transform_indices = @transform_2, window_bounds = array<i64: 1, 128>}, {pipeline_mode = #tpu.pipeline_mode<synchronous>, transform_indices = @transform_3, window_bounds = array<i64: 1, 128>}, {pipeline_mode = #tpu.pipeline_mode<synchronous>, transform_indices = @transform_4, window_bounds = array<i64: 1, 128>}, {pipeline_mode = #tpu.pipeline_mode<synchronous>, transform_indices = @transform_5, window_bounds = array<i64: 128, 128>}, {transform_indices = @transform_6, window_bounds = array<i64: 384, 128>}]} {
    %c0 = arith.constant 0 : index
    %c0_0 = arith.constant 0 : index
    %0 = vector.load %arg2[%c0, %c0_0] : memref<2x128xf32, #tpu.memory_space<vmem>>, vector<1x128xf32>
    %cst = arith.constant 0.00316455704 : f32
    %1 = vector.broadcast %cst : f32 to vector<1x128xf32>
    %2 = arith.mulf %0, %1 : vector<1x128xf32>
    %c1 = arith.constant 1 : index
    %c0_1 = arith.constant 0 : index
    %3 = vector.load %arg2[%c1, %c0_1] : memref<2x128xf32, #tpu.memory_space<vmem>>, vector<1x128xf32>
    %cst_2 = arith.constant 0.00316455704 : f32
    %4 = vector.broadcast %cst_2 : f32 to vector<1x128xf32>
    %5 = arith.mulf %3, %4 : vector<1x128xf32>
    %c0_3 = arith.constant 0 : index
    %c0_4 = arith.constant 0 : index
    %6 = vector.load %arg5[%c0_3, %c0_4] : memref<1x128xf32, #tpu.memory_space<vmem>>, vector<1x128xf32>
    %7 = arith.mulf %2, %2 : vector<1x128xf32>
    %8 = arith.mulf %7, %6 : vector<1x128xf32>
    %cst_5 = arith.constant 2.000000e+00 : f32
    %9 = vector.broadcast %cst_5 : f32 to vector<1x128xf32>
    %10 = arith.subf %9, %6 : vector<1x128xf32>
    %11 = arith.mulf %8, %10 : vector<1x128xf32>
    %12 = arith.subf %5, %11 : vector<1x128xf32>
    %cst_6 = arith.constant 9.99999974E-6 : f32
    %13 = vector.broadcast %cst_6 : f32 to vector<1x128xf32>
    %14 = arith.addf %12, %13 : vector<1x128xf32>
    %15 = math.rsqrt %14 : vector<1x128xf32>
    %c0_7 = arith.constant 0 : index
    %c0_8 = arith.constant 0 : index
    %16 = vector.load %arg1[%c0_7, %c0_8] : memref<384x128xbf16, #tpu.memory_space<vmem>>, vector<384x128xbf16>
    %17 = arith.extf %16 : vector<384x128xbf16> to vector<384x128xf32>
    %c0_9 = arith.constant 0 : index
    %c0_10 = arith.constant 0 : index
    %18 = vector.load %arg3[%c0_9, %c0_10] : memref<1x128xf32, #tpu.memory_space<vmem>>, vector<1x128xf32>
    %19 = arith.mulf %6, %2 : vector<1x128xf32>
    %20 = vector.broadcast %19 : vector<1x128xf32> to vector<384x128xf32>
    %21 = arith.subf %17, %20 : vector<384x128xf32>
    %22 = vector.broadcast %18 : vector<1x128xf32> to vector<384x128xf32>
    %23 = arith.mulf %22, %21 : vector<384x128xf32>
    %24 = vector.broadcast %15 : vector<1x128xf32> to vector<384x128xf32>
    %25 = arith.mulf %23, %24 : vector<384x128xf32>
    %c0_11 = arith.constant 0 : index
    %c0_12 = arith.constant 0 : index
    %26 = vector.load %arg4[%c0_11, %c0_12] : memref<1x128xf32, #tpu.memory_space<vmem>>, vector<1x128xf32>
    %27 = vector.broadcast %26 : vector<1x128xf32> to vector<384x128xf32>
    %28 = arith.addf %25, %27 : vector<384x128xf32>
    %cst_13 = arith.constant 0.000000e+00 : f32
    %29 = vector.broadcast %cst_13 : f32 to vector<384x128xf32>
    %30 = arith.maximumf %28, %29 : vector<384x128xf32>
    %31 = arith.truncf %30 : vector<384x128xf32> to vector<384x128xbf16>
    %c0_14 = arith.constant 0 : index
    %c0_15 = arith.constant 0 : index
    %32 = vector.load %arg6[%c0_14, %c0_15] : memref<128x128xbf16, #tpu.memory_space<vmem>>, vector<128x128xbf16>
    %cst_16 = arith.constant dense<0.000000e+00> : vector<384x128xf32>
    %33 = tpu.matmul %31, %32, %cst_16 {dimension_numbers = #tpu.dot_dimension_numbers<[1], [0], [0], [1], [0, 0, 1, 1], [], []>} : vector<384x128xbf16>, vector<128x128xbf16>, vector<384x128xf32> -> vector<384x128xf32>
    %34 = arith.truncf %33 : vector<384x128xf32> to vector<384x128xbf16>
    %c0_17 = arith.constant 0 : index
    %c0_18 = arith.constant 0 : index
    %35 = vector.load %arg7[%c0_17, %c0_18] : memref<384x128xbf16, #tpu.memory_space<vmem>>, vector<384x128xbf16>
    tpu.vector_store %arg7[%c0_17, %c0_18], %34 {strides = array<i32>} : memref<384x128xbf16, #tpu.memory_space<vmem>>, vector<384x128xbf16>,
    return
  }
  func.func @transform_0(%arg0: i32) -> (i32, i32) {
    %c0_i32 = arith.constant 0 : i32
    %c0_i32_0 = arith.constant 0 : i32
    return %arg0, %c0_i32 : i32, i32
  }
  func.func @transform_1(%arg0: i32) -> (i32, i32) {
    %c0_i32 = arith.constant 0 : i32
    %c0_i32_0 = arith.constant 0 : i32
    %c0_i32_1 = arith.constant 0 : i32
    return %c0_i32, %c0_i32_0 : i32, i32
  }
  func.func @transform_2(%arg0: i32) -> (i32, i32) {
    %c0_i32 = arith.constant 0 : i32
    %c0_i32_0 = arith.constant 0 : i32
    %c0_i32_1 = arith.constant 0 : i32
    return %c0_i32, %c0_i32_0 : i32, i32
  }
  func.func @transform_3(%arg0: i32) -> (i32, i32) {
    %c0_i32 = arith.constant 0 : i32
    %c0_i32_0 = arith.constant 0 : i32
    %c0_i32_1 = arith.constant 0 : i32
    return %c0_i32, %c0_i32_0 : i32, i32
  }
  func.func @transform_4(%arg0: i32) -> (i32, i32) {
    %c0_i32 = arith.constant 0 : i32
    %c0_i32_0 = arith.constant 0 : i32
    %c0_i32_1 = arith.constant 0 : i32
    return %c0_i32, %c0_i32_0 : i32, i32
  }
  func.func @transform_5(%arg0: i32) -> (i32, i32) {
    %c0_i32 = arith.constant 0 : i32
    %c0_i32_0 = arith.constant 0 : i32
    %c0_i32_1 = arith.constant 0 : i32
    return %c0_i32, %c0_i32_0 : i32, i32
  }
  func.func @transform_6(%arg0: i32) -> (i32, i32) {
    %c0_i32 = arith.constant 0 : i32
    %c0_i32_0 = arith.constant 0 : i32
    return %arg0, %c0_i32 : i32, i32
  }
}

module attributes {stable_mosaic.version = 11 : i64} {
  func.func @_gn_relu_kernel(%arg0: i32, %arg1: memref<384x128xbf16, #tpu.memory_space<vmem>>, %arg2: memref<2x128xf32, #tpu.memory_space<vmem>>, %arg3: memref<1x128xf32, #tpu.memory_space<vmem>>, %arg4: memref<1x128xf32, #tpu.memory_space<vmem>>, %arg5: memref<1x128xf32, #tpu.memory_space<vmem>>, %arg6: memref<384x128xf32, #tpu.memory_space<vmem>>) attributes {dimension_semantics = [#tpu.dimension_semantics<parallel>], iteration_bounds = array<i64: 1>, scalar_prefetch = 0 : i64, scratch_operands = 0 : i64, tpu.core_type = #tpu.core_type<tc>, window_params = [{transform_indices = @transform_0, window_bounds = array<i64: 384, 128>}, {pipeline_mode = #tpu.pipeline_mode<synchronous>, transform_indices = @transform_1, window_bounds = array<i64: 2, 128>}, {pipeline_mode = #tpu.pipeline_mode<synchronous>, transform_indices = @transform_2, window_bounds = array<i64: 1, 128>}, {pipeline_mode = #tpu.pipeline_mode<synchronous>, transform_indices = @transform_3, window_bounds = array<i64: 1, 128>}, {pipeline_mode = #tpu.pipeline_mode<synchronous>, transform_indices = @transform_4, window_bounds = array<i64: 1, 128>}, {transform_indices = @transform_5, window_bounds = array<i64: 384, 128>}]} {
    %c0 = arith.constant 0 : index
    %c0_0 = arith.constant 0 : index
    %0 = vector.load %arg2[%c0, %c0_0] : memref<2x128xf32, #tpu.memory_space<vmem>>, vector<1x128xf32>
    %cst = arith.constant 0.00316455704 : f32
    %1 = vector.broadcast %cst : f32 to vector<1x128xf32>
    %2 = arith.mulf %0, %1 : vector<1x128xf32>
    %c1 = arith.constant 1 : index
    %c0_1 = arith.constant 0 : index
    %3 = vector.load %arg2[%c1, %c0_1] : memref<2x128xf32, #tpu.memory_space<vmem>>, vector<1x128xf32>
    %cst_2 = arith.constant 0.00316455704 : f32
    %4 = vector.broadcast %cst_2 : f32 to vector<1x128xf32>
    %5 = arith.mulf %3, %4 : vector<1x128xf32>
    %c0_3 = arith.constant 0 : index
    %c0_4 = arith.constant 0 : index
    %6 = vector.load %arg5[%c0_3, %c0_4] : memref<1x128xf32, #tpu.memory_space<vmem>>, vector<1x128xf32>
    %7 = arith.mulf %2, %2 : vector<1x128xf32>
    %8 = arith.mulf %7, %6 : vector<1x128xf32>
    %cst_5 = arith.constant 2.000000e+00 : f32
    %9 = vector.broadcast %cst_5 : f32 to vector<1x128xf32>
    %10 = arith.subf %9, %6 : vector<1x128xf32>
    %11 = arith.mulf %8, %10 : vector<1x128xf32>
    %12 = arith.subf %5, %11 : vector<1x128xf32>
    %cst_6 = arith.constant 9.99999974E-6 : f32
    %13 = vector.broadcast %cst_6 : f32 to vector<1x128xf32>
    %14 = arith.addf %12, %13 : vector<1x128xf32>
    %15 = math.rsqrt %14 : vector<1x128xf32>
    %c0_7 = arith.constant 0 : index
    %c0_8 = arith.constant 0 : index
    %16 = vector.load %arg1[%c0_7, %c0_8] : memref<384x128xbf16, #tpu.memory_space<vmem>>, vector<384x128xbf16>
    %17 = arith.extf %16 : vector<384x128xbf16> to vector<384x128xf32>
    %c0_9 = arith.constant 0 : index
    %c0_10 = arith.constant 0 : index
    %18 = vector.load %arg3[%c0_9, %c0_10] : memref<1x128xf32, #tpu.memory_space<vmem>>, vector<1x128xf32>
    %19 = arith.mulf %6, %2 : vector<1x128xf32>
    %20 = vector.broadcast %19 : vector<1x128xf32> to vector<384x128xf32>
    %21 = arith.subf %17, %20 : vector<384x128xf32>
    %22 = vector.broadcast %18 : vector<1x128xf32> to vector<384x128xf32>
    %23 = arith.mulf %22, %21 : vector<384x128xf32>
    %24 = vector.broadcast %15 : vector<1x128xf32> to vector<384x128xf32>
    %25 = arith.mulf %23, %24 : vector<384x128xf32>
    %c0_11 = arith.constant 0 : index
    %c0_12 = arith.constant 0 : index
    %26 = vector.load %arg4[%c0_11, %c0_12] : memref<1x128xf32, #tpu.memory_space<vmem>>, vector<1x128xf32>
    %27 = vector.broadcast %26 : vector<1x128xf32> to vector<384x128xf32>
    %28 = arith.addf %25, %27 : vector<384x128xf32>
    %cst_13 = arith.constant 0.000000e+00 : f32
    %29 = vector.broadcast %cst_13 : f32 to vector<384x128xf32>
    %30 = arith.maximumf %28, %29 : vector<384x128xf32>
    %c0_14 = arith.constant 0 : index
    %c0_15 = arith.constant 0 : index
    %31 = vector.load %arg6[%c0_14, %c0_15] : memref<384x128xf32, #tpu.memory_space<vmem>>, vector<384x128xf32>
    tpu.vector_store %arg6[%c0_14, %c0_15], %30 {strides = array<i32>} : memref<384x128xf32, #tpu.memory_space<vmem>>, vector<384x128xf32>,
    return
  }
  func.func @transform_0(%arg0: i32) -> (i32, i32) {
    %c0_i32 = arith.constant 0 : i32
    %c0_i32_0 = arith.constant 0 : i32
    return %arg0, %c0_i32 : i32, i32
  }
  func.func @transform_1(%arg0: i32) -> (i32, i32) {
    %c0_i32 = arith.constant 0 : i32
    %c0_i32_0 = arith.constant 0 : i32
    %c0_i32_1 = arith.constant 0 : i32
    return %c0_i32, %c0_i32_0 : i32, i32
  }
  func.func @transform_2(%arg0: i32) -> (i32, i32) {
    %c0_i32 = arith.constant 0 : i32
    %c0_i32_0 = arith.constant 0 : i32
    %c0_i32_1 = arith.constant 0 : i32
    return %c0_i32, %c0_i32_0 : i32, i32
  }
  func.func @transform_3(%arg0: i32) -> (i32, i32) {
    %c0_i32 = arith.constant 0 : i32
    %c0_i32_0 = arith.constant 0 : i32
    %c0_i32_1 = arith.constant 0 : i32
    return %c0_i32, %c0_i32_0 : i32, i32
  }
  func.func @transform_4(%arg0: i32) -> (i32, i32) {
    %c0_i32 = arith.constant 0 : i32
    %c0_i32_0 = arith.constant 0 : i32
    %c0_i32_1 = arith.constant 0 : i32
    return %c0_i32, %c0_i32_0 : i32, i32
  }
  func.func @transform_5(%arg0: i32) -> (i32, i32) {
    %c0_i32 = arith.constant 0 : i32
    %c0_i32_0 = arith.constant 0 : i32
    return %arg0, %c0_i32 : i32, i32
  }
}

module attributes {stable_mosaic.version = 11 : i64} {
  func.func @_linear_kernel(%arg0: i32, %arg1: memref<8x256xf32, #tpu.memory_space<vmem>>, %arg2: memref<256x128xf32, #tpu.memory_space<vmem>>, %arg3: memref<1x128xf32, #tpu.memory_space<vmem>>, %arg4: memref<8x128xf32, #tpu.memory_space<vmem>>) attributes {dimension_semantics = [#tpu.dimension_semantics<parallel>], iteration_bounds = array<i64: 1>, scalar_prefetch = 0 : i64, scratch_operands = 0 : i64, tpu.core_type = #tpu.core_type<tc>, window_params = [{transform_indices = @transform_0, window_bounds = array<i64: 8, 256>}, {pipeline_mode = #tpu.pipeline_mode<synchronous>, transform_indices = @transform_1, window_bounds = array<i64: 256, 128>}, {pipeline_mode = #tpu.pipeline_mode<synchronous>, transform_indices = @transform_2, window_bounds = array<i64: 1, 128>}, {transform_indices = @transform_3, window_bounds = array<i64: 8, 128>}]} {
    %c0 = arith.constant 0 : index
    %c0_0 = arith.constant 0 : index
    %0 = vector.load %arg1[%c0, %c0_0] : memref<8x256xf32, #tpu.memory_space<vmem>>, vector<8x256xf32>
    %c0_1 = arith.constant 0 : index
    %c0_2 = arith.constant 0 : index
    %1 = vector.load %arg2[%c0_1, %c0_2] : memref<256x128xf32, #tpu.memory_space<vmem>>, vector<256x128xf32>
    %cst = arith.constant dense<0.000000e+00> : vector<8x128xf32>
    %2 = tpu.matmul %0, %1, %cst {dimension_numbers = #tpu.dot_dimension_numbers<[1], [0], [0], [1], [0, 0, 1, 1], [], []>} : vector<8x256xf32>, vector<256x128xf32>, vector<8x128xf32> -> vector<8x128xf32>
    %c0_3 = arith.constant 0 : index
    %c0_4 = arith.constant 0 : index
    %3 = vector.load %arg3[%c0_3, %c0_4] : memref<1x128xf32, #tpu.memory_space<vmem>>, vector<1x128xf32>
    %4 = vector.broadcast %3 : vector<1x128xf32> to vector<8x128xf32>
    %5 = arith.addf %2, %4 : vector<8x128xf32>
    %c0_5 = arith.constant 0 : index
    %c0_6 = arith.constant 0 : index
    %6 = vector.load %arg4[%c0_5, %c0_6] : memref<8x128xf32, #tpu.memory_space<vmem>>, vector<8x128xf32>
    tpu.vector_store %arg4[%c0_5, %c0_6], %5 {strides = array<i32>} : memref<8x128xf32, #tpu.memory_space<vmem>>, vector<8x128xf32>,
    return
  }
  func.func @transform_0(%arg0: i32) -> (i32, i32) {
    %c0_i32 = arith.constant 0 : i32
    %c0_i32_0 = arith.constant 0 : i32
    return %arg0, %c0_i32 : i32, i32
  }
  func.func @transform_1(%arg0: i32) -> (i32, i32) {
    %c0_i32 = arith.constant 0 : i32
    %c0_i32_0 = arith.constant 0 : i32
    %c0_i32_1 = arith.constant 0 : i32
    return %c0_i32, %c0_i32_0 : i32, i32
  }
  func.func @transform_2(%arg0: i32) -> (i32, i32) {
    %c0_i32 = arith.constant 0 : i32
    %c0_i32_0 = arith.constant 0 : i32
    %c0_i32_1 = arith.constant 0 : i32
    return %c0_i32, %c0_i32_0 : i32, i32
  }
  func.func @transform_3(%arg0: i32) -> (i32, i32) {
    %c0_i32 = arith.constant 0 : i32
    %c0_i32_0 = arith.constant 0 : i32
    return %arg0, %c0_i32 : i32, i32
  }
}

</mosaic_0001>

<bundles_post_ra>
// kernel: drgt_forward.6
= control target key start
LH: loop header
LB: loop body
LE: loop exit
PB: predicated region body
PF: predicated region fallthrough
CT: control target
= control target key end

     0   :  { %s1427_s1 = inlined_call_operand.vmem [shape: f32[128,128], index: 1, kind: input, shape index: {}]   ;;  %s1428_s0 = inlined_call_operand.vmem [shape: f32[384,128], index: 0, kind: input, shape index: {}]   ;;  %s1429_s2 = inlined_call_operand.vmem [shape: f32[1,128], index: 2, kind: input, shape index: {}]   ;;  %s1430_s3 = inlined_call_operand.vmem [shape: bf16[384,128], index: 3, kind: output, shape index: {}]  }
   0x1   :  { %v62_v0 = vld [vmem:[%s1427_s1] sm:$0xff]  ;;  %v63_v1 = vld [vmem:[%s1427_s1 + $0x8] sm:$0xff]  ;;  %v64_v2 = vld [vmem:[%s1427_s1 + $0x10] sm:$0xff] }
   0x2   :  { %v1042_v3 = vpack.c.bf16 %v63_v1, %v62_v0  ;;  %v65_v4 = vld [vmem:[%s1427_s1 + $0x18] sm:$0xff]  ;;  %v66_v6 = vld [vmem:[%s1427_s1 + $0x20] sm:$0xff]  ;;  %v67_v7 = vld [vmem:[%s1427_s1 + $0x28] sm:$0xff] }
   0x3   :  { %v1046_v5 = vpack.c.bf16 %v65_v4, %v64_v2  ;;  %v1050_v8 = vpack.c.bf16 %v67_v7, %v66_v6  ;;  %v14_v9 = vld [vmem:[%s1428_s0] sm:$0xff]  ;;  %v68_v11 = vld [vmem:[%s1427_s1 + $0x30] sm:$0xff]  ;;  %v69_v12 = vld [vmem:[%s1427_s1 + $0x38] sm:$0xff] }
   0x4   :  { %1043 = vmatprep.subr.bf16.mxu0 %v1042_v3  ;;  %1074 = vmatprep.subr.bf16.mxu1 %v1042_v3  ;;  %v38_v10 = vld [vmem:[%s1428_s0 + $0xc0] sm:$0xff]  ;;  %v1054_v13 = vpack.c.bf16 %v69_v12, %v68_v11  ;;  %v71_v15 = vld [vmem:[%s1427_s1 + $0x48] sm:$0xff]  ;;  %v72_v17 = vld [vmem:[%s1427_s1 + $0x50] sm:$0xff] }
   0x5   :  { %1045 = vmatpush3.bf16.msra.mxu0 %v1042_v3  ;;  %1082 = vmatpush3.bf16.msra.mxu1 %v1042_v3  ;;  %v70_v14 = vld [vmem:[%s1427_s1 + $0x40] sm:$0xff]  ;;  %v73_v18 = vld [vmem:[%s1427_s1 + $0x58] sm:$0xff]  ;;  %v75_v21 = vld [vmem:[%s1427_s1 + $0x68] sm:$0xff] }
   0x6   :  { %1047 = vmatprep.subr.bf16.mxu0 %v1046_v5  ;;  %1075 = vmatprep.subr.bf16.mxu1 %v1046_v5  ;;  %v1058_v16 = vpack.c.bf16 %v71_v15, %v70_v14  ;;  %v1062_v19 = vpack.c.bf16 %v73_v18, %v72_v17  ;;  %v74_v20 = vld [vmem:[%s1427_s1 + $0x60] sm:$0xff]  ;;  %v76_v23 = vld [vmem:[%s1427_s1 + $0x70] sm:$0xff]  ;;  %v77_v24 = vld [vmem:[%s1427_s1 + $0x78] sm:$0xff] }
   0x7   :  { %970 = vmatprep.mubr.f32.mxu0 %v14_v9  ;;  %1006 = vmatprep.mubr.f32.mxu1 %v38_v10  ;;  %v1066_v22 = vpack.c.bf16 %v75_v21, %v74_v20  ;;  %v1070_v25 = vpack.c.bf16 %v77_v24, %v76_v23  ;;  %v15_v26 = vld [vmem:[%s1428_s0 + $0x8] sm:$0xff]  ;;  %v16_v28 = vld [vmem:[%s1428_s0 + $0x10] sm:$0xff]  ;;  %v17_v30 = vld [vmem:[%s1428_s0 + $0x18] sm:$0xff] }
   0x8   :  { %v39_v27 = vld [vmem:[%s1428_s0 + $0xc8] sm:$0xff]  ;;  %v40_v29 = vld [vmem:[%s1428_s0 + $0xd0] sm:$0xff]  ;;  %v41_v31 = vld [vmem:[%s1428_s0 + $0xd8] sm:$0xff] }
   0x9   :  { %1049 = vmatpush3.bf16.msra.mxu0 %v1046_v5  ;;  %1083 = vmatpush3.bf16.msra.mxu1 %v1046_v5  ;;  %v18_v32 = vld [vmem:[%s1428_s0 + $0x20] sm:$0xff]  ;;  %v19_v34 = vld [vmem:[%s1428_s0 + $0x28] sm:$0xff]  ;;  %v20_v36 = vld [vmem:[%s1428_s0 + $0x30] sm:$0xff] }
   0xa   :  { %1051 = vmatprep.subr.bf16.mxu0 %v1050_v8  ;;  %1076 = vmatprep.subr.bf16.mxu1 %v1050_v8  ;;  %v42_v33 = vld [vmem:[%s1428_s0 + $0xe0] sm:$0xff]  ;;  %v43_v35 = vld [vmem:[%s1428_s0 + $0xe8] sm:$0xff]  ;;  %v44_v37 = vld [vmem:[%s1428_s0 + $0xf0] sm:$0xff] }
   0xb   :  { %v21_v38 = vld [vmem:[%s1428_s0 + $0x38] sm:$0xff]  ;;  %v22_v40 = vld [vmem:[%s1428_s0 + $0x40] sm:$0xff]  ;;  %v23_v42 = vld [vmem:[%s1428_s0 + $0x48] sm:$0xff] }
   0xc   :  { %v45_v39 = vld [vmem:[%s1428_s0 + $0xf8] sm:$0xff]  ;;  %v46_v41 = vld [vmem:[%s1428_s0 + $0x100] sm:$0xff]  ;;  %v47_v43 = vld [vmem:[%s1428_s0 + $0x108] sm:$0xff] }
   0xd   :  { %1053 = vmatpush3.bf16.msra.mxu0 %v1050_v8  ;;  %1084 = vmatpush3.bf16.msra.mxu1 %v1050_v8  ;;  %v24_v44 = vld [vmem:[%s1428_s0 + $0x50] sm:$0xff]  ;;  %v25_v46 = vld [vmem:[%s1428_s0 + $0x58] sm:$0xff]  ;;  %v26_v48 = vld [vmem:[%s1428_s0 + $0x60] sm:$0xff] }
   0xe   :  { %1055 = vmatprep.subr.bf16.mxu0 %v1054_v13  ;;  %1077 = vmatprep.subr.bf16.mxu1 %v1054_v13  ;;  %v48_v45 = vld [vmem:[%s1428_s0 + $0x110] sm:$0xff]  ;;  %v49_v47 = vld [vmem:[%s1428_s0 + $0x118] sm:$0xff]  ;;  %v50_v49 = vld [vmem:[%s1428_s0 + $0x120] sm:$0xff] }
   0xf   :  { %v27_v50 = vld [vmem:[%s1428_s0 + $0x68] sm:$0xff]  ;;  %v28_v52 = vld [vmem:[%s1428_s0 + $0x70] sm:$0xff]  ;;  %v29_v54 = vld [vmem:[%s1428_s0 + $0x78] sm:$0xff] }
  0x10   :  { %v51_v51 = vld [vmem:[%s1428_s0 + $0x128] sm:$0xff]  ;;  %v52_v53 = vld [vmem:[%s1428_s0 + $0x130] sm:$0xff]  ;;  %v53_v55 = vld [vmem:[%s1428_s0 + $0x138] sm:$0xff] }
  0x11   :  { %1057 = vmatpush3.bf16.msra.mxu0 %v1054_v13  ;;  %1085 = vmatpush3.bf16.msra.mxu1 %v1054_v13  ;;  %v30_v56 = vld [vmem:[%s1428_s0 + $0x80] sm:$0xff]  ;;  %v31_v58 = vld [vmem:[%s1428_s0 + $0x88] sm:$0xff]  ;;  %v32_v60 = vld [vmem:[%s1428_s0 + $0x90] sm:$0xff] }
  0x12   :  { %1059 = vmatprep.subr.bf16.mxu0 %v1058_v16  ;;  %1078 = vmatprep.subr.bf16.mxu1 %v1058_v16  ;;  %v54_v57 = vld [vmem:[%s1428_s0 + $0x140] sm:$0xff]  ;;  %v55_v59 = vld [vmem:[%s1428_s0 + $0x148] sm:$0xff]  ;;  %v56_v61 = vld [vmem:[%s1428_s0 + $0x150] sm:$0xff] }
  0x13   :  { %v33_v62 = vld [vmem:[%s1428_s0 + $0x98] sm:$0xff]  ;;  %v34_v0 = vld [vmem:[%s1428_s0 + $0xa0] sm:$0xff]  ;;  %v35_v2 = vld [vmem:[%s1428_s0 + $0xa8] sm:$0xff] }
  0x14   :  { %v57_v63 = vld [vmem:[%s1428_s0 + $0x158] sm:$0xff]  ;;  %v58_v1 = vld [vmem:[%s1428_s0 + $0x160] sm:$0xff]  ;;  %v59_v3 = vld [vmem:[%s1428_s0 + $0x168] sm:$0xff] }
  0x15   :  { %1061 = vmatpush3.bf16.msra.mxu0 %v1058_v16  ;;  %1086 = vmatpush3.bf16.msra.mxu1 %v1058_v16  ;;  %v36_v4 = vld [vmem:[%s1428_s0 + $0xb0] sm:$0xff]  ;;  %v37_v6 = vld [vmem:[%s1428_s0 + $0xb8] sm:$0xff]  ;;  %v1305_v8 = vld [vmem:[%s1429_s2] ss:$0 sm:$0xff] }
  0x16   :  { %1063 = vmatprep.subr.bf16.mxu0 %v1062_v19  ;;  %1079 = vmatprep.subr.bf16.mxu1 %v1062_v19  ;;  %v60_v5 = vld [vmem:[%s1428_s0 + $0x170] sm:$0xff]  ;;  %v61_v7 = vld [vmem:[%s1428_s0 + $0x178] sm:$0xff] }
  0x19   :  { %1065 = vmatpush3.bf16.msra.mxu0 %v1062_v19  ;;  %1087 = vmatpush3.bf16.msra.mxu1 %v1062_v19 }
  0x1a   :  { %1067 = vmatprep.subr.bf16.mxu0 %v1066_v22  ;;  %1080 = vmatprep.subr.bf16.mxu1 %v1066_v22 }
  0x1d   :  { %1069 = vmatpush3.bf16.msra.mxu0 %v1066_v22  ;;  %1088 = vmatpush3.bf16.msra.mxu1 %v1066_v22 }
  0x1e   :  { %1071 = vmatprep.subr.bf16.mxu0 %v1070_v25  ;;  %1081 = vmatprep.subr.bf16.mxu1 %v1070_v25 }
  0x21   :  { %1073 = vmatpush3.bf16.msra.mxu0 %v1070_v25  ;;  %1089 = vmatpush3.bf16.msra.mxu1 %v1070_v25 }
  0x24   :  { %971 = vmatmul.mubr.f32.vlgmr.msra.gmra.mrb[0].mxu0 %v15_v26  ;;  %1007 = vmatmul.mubr.f32.vlgmr.msra.gmra.mrb[0].mxu1 %v39_v27 }
  0x25   :  { %973 = vmatprep.mubr.f32.mxu0 %v16_v28  ;;  %1009 = vmatprep.mubr.f32.mxu1 %v40_v29 }
  0x28   :  { %974 = vmatmul.mubr.f32.gmra.mrb[2].mxu0 %v17_v30  ;;  %1010 = vmatmul.mubr.f32.gmra.mrb[2].mxu1 %v41_v31 }
  0x29   :  { %976 = vmatprep.mubr.f32.mxu0 %v18_v32  ;;  %1012 = vmatprep.mubr.f32.mxu1 %v42_v33 }
  0x2c   :  { %977 = vmatmul.mubr.f32.gmra.mrb[4].mxu0 %v19_v34  ;;  %1013 = vmatmul.mubr.f32.gmra.mrb[4].mxu1 %v43_v35 }
  0x2d   :  { %979 = vmatprep.mubr.f32.mxu0 %v20_v36  ;;  %1015 = vmatprep.mubr.f32.mxu1 %v44_v37 }
  0x30   :  { %980 = vmatmul.mubr.f32.gmra.mrb[6].mxu0 %v21_v38  ;;  %1016 = vmatmul.mubr.f32.gmra.mrb[6].mxu1 %v45_v39 }
  0x31   :  { %982 = vmatprep.mubr.f32.mxu0 %v22_v40  ;;  %1018 = vmatprep.mubr.f32.mxu1 %v46_v41 }
  0x34   :  { %983 = vmatmul.mubr.f32.gmra.mrb[8].mxu0 %v23_v42  ;;  %1019 = vmatmul.mubr.f32.gmra.mrb[8].mxu1 %v47_v43 }
  0x35   :  { %985 = vmatprep.mubr.f32.mxu0 %v24_v44  ;;  %1021 = vmatprep.mubr.f32.mxu1 %v48_v45 }
  0x38   :  { %986 = vmatmul.mubr.f32.gmra.mrb[10].mxu0 %v25_v46  ;;  %1022 = vmatmul.mubr.f32.gmra.mrb[10].mxu1 %v49_v47 }
  0x39   :  { %988 = vmatprep.mubr.f32.mxu0 %v26_v48  ;;  %1024 = vmatprep.mubr.f32.mxu1 %v50_v49 }
  0x3c   :  { %989 = vmatmul.mubr.f32.gmra.mrb[12].mxu0 %v27_v50  ;;  %1025 = vmatmul.mubr.f32.gmra.mrb[12].mxu1 %v51_v51 }
  0x3d   :  { %991 = vmatprep.mubr.f32.mxu0 %v28_v52  ;;  %1027 = vmatprep.mubr.f32.mxu1 %v52_v53 }
  0x40   :  { %992 = vmatmul.mubr.f32.gmra.mrb[14].mxu0 %v29_v54  ;;  %1028 = vmatmul.mubr.f32.gmra.mrb[14].mxu1 %v53_v55 }
  0x41   :  { %994 = vmatprep.mubr.f32.mxu0 %v30_v56  ;;  %1030 = vmatprep.mubr.f32.mxu1 %v54_v57 }
  0x44   :  { %995 = vmatmul.mubr.f32.gmra.mrb[16].mxu0 %v31_v58  ;;  %1031 = vmatmul.mubr.f32.gmra.mrb[16].mxu1 %v55_v59 }
  0x45   :  { %997 = vmatprep.mubr.f32.mxu0 %v32_v60  ;;  %1033 = vmatprep.mubr.f32.mxu1 %v56_v61 }
  0x48   :  { %998 = vmatmul.mubr.f32.gmra.mrb[18].mxu0 %v33_v62  ;;  %1034 = vmatmul.mubr.f32.gmra.mrb[18].mxu1 %v57_v63 }
  0x49   :  { %1000 = vmatprep.mubr.f32.mxu0 %v34_v0  ;;  %1036 = vmatprep.mubr.f32.mxu1 %v58_v1 }
  0x4c   :  { %1001 = vmatmul.mubr.f32.gmra.mrb[20].mxu0 %v35_v2  ;;  %1037 = vmatmul.mubr.f32.gmra.mrb[20].mxu1 %v59_v3 }
  0x4d   :  { %1003 = vmatprep.mubr.f32.mxu0 %v36_v4  ;;  %1039 = vmatprep.mubr.f32.mxu1 %v60_v5 }
  0x50   :  { %1004 = vmatmul.mubr.f32.gmra.mrb[22].mxu0 %v37_v6  ;;  %1040 = vmatmul.mubr.f32.gmra.mrb[22].mxu1 %v61_v7 }
  0xf7   :  { %v972_v9 = vpop.f32.mrb[0].mxu0  ;;  %v1008_v10 = vpop.f32.mrb[0].mxu1 }
  0xf8   :  { %v157_v11 = vadd.f32 %v972_v9, %v1305_v8  ;;  %v277_v12 = vadd.f32 %v1008_v10, %v1305_v8  ;;  %v151_v13 = vpop.f32.mrb[1].mxu0  ;;  %v271_v14 = vpop.f32.mrb[1].mxu1 }
  0xf9   :  { %v152_v15 = vadd.f32 %v1305_v8, %v151_v13  ;;  %v272_v16 = vadd.f32 %v1305_v8, %v271_v14 }
  0xfb   :  { %v734_v17 = vpack.c.bf16 %v157_v11, %v152_v15  ;;  %v794_v18 = vpack.c.bf16 %v277_v12, %v272_v16  ;;  %v975_v19 = vpop.f32.mrb[2].mxu0  ;;  %v1011_v20 = vpop.f32.mrb[2].mxu1 }
  0xfc   :  { %v167_v21 = vadd.f32 %v975_v19, %v1305_v8  ;;  %v287_v22 = vadd.f32 %v1011_v20, %v1305_v8  ;;  %v161_v23 = vpop.f32.mrb[3].mxu0  ;;  %v281_v24 = vpop.f32.mrb[3].mxu1 }
  0xfd   :  { %735 = vst [vmem:[%s1430_s3] sm:$0xff] %v734_v17   ;;  %862 = vst [vmem:[%s1430_s3 + $0x60] sm:$0xff] %v794_v18   ;;  %v162_v25 = vadd.f32 %v1305_v8, %v161_v23  ;;  %v282_v26 = vadd.f32 %v1305_v8, %v281_v24 }
  0xff   :  { %v739_v27 = vpack.c.bf16 %v167_v21, %v162_v25  ;;  %v799_v28 = vpack.c.bf16 %v287_v22, %v282_v26  ;;  %v978_v29 = vpop.f32.mrb[4].mxu0  ;;  %v1014_v30 = vpop.f32.mrb[4].mxu1 }
 0x100   :  { %v177_v31 = vadd.f32 %v978_v29, %v1305_v8  ;;  %v297_v32 = vadd.f32 %v1014_v30, %v1305_v8  ;;  %v171_v33 = vpop.f32.mrb[5].mxu0  ;;  %v291_v34 = vpop.f32.mrb[5].mxu1 }
 0x101   :  { %851 = vst [vmem:[%s1430_s3 + $0x8] sm:$0xff] %v739_v27   ;;  %863 = vst [vmem:[%s1430_s3 + $0x68] sm:$0xff] %v799_v28   ;;  %v172_v35 = vadd.f32 %v1305_v8, %v171_v33  ;;  %v292_v36 = vadd.f32 %v1305_v8, %v291_v34 }
 0x103   :  { %v744_v37 = vpack.c.bf16 %v177_v31, %v172_v35  ;;  %v804_v38 = vpack.c.bf16 %v297_v32, %v292_v36  ;;  %v981_v39 = vpop.f32.mrb[6].mxu0  ;;  %v1017_v40 = vpop.f32.mrb[6].mxu1 }
 0x104   :  { %v187_v41 = vadd.f32 %v981_v39, %v1305_v8  ;;  %v307_v42 = vadd.f32 %v1017_v40, %v1305_v8  ;;  %v181_v43 = vpop.f32.mrb[7].mxu0  ;;  %v301_v44 = vpop.f32.mrb[7].mxu1 }
 0x105   :  { %852 = vst [vmem:[%s1430_s3 + $0x10] sm:$0xff] %v744_v37   ;;  %864 = vst [vmem:[%s1430_s3 + $0x70] sm:$0xff] %v804_v38   ;;  %v182_v45 = vadd.f32 %v1305_v8, %v181_v43  ;;  %v302_v46 = vadd.f32 %v1305_v8, %v301_v44 }
 0x107   :  { %v749_v47 = vpack.c.bf16 %v187_v41, %v182_v45  ;;  %v809_v48 = vpack.c.bf16 %v307_v42, %v302_v46  ;;  %v984_v49 = vpop.f32.mrb[8].mxu0  ;;  %v1020_v50 = vpop.f32.mrb[8].mxu1 }
 0x108   :  { %v197_v51 = vadd.f32 %v984_v49, %v1305_v8  ;;  %v317_v52 = vadd.f32 %v1020_v50, %v1305_v8  ;;  %v191_v53 = vpop.f32.mrb[9].mxu0  ;;  %v311_v54 = vpop.f32.mrb[9].mxu1 }
 0x109   :  { %853 = vst [vmem:[%s1430_s3 + $0x18] sm:$0xff] %v749_v47   ;;  %865 = vst [vmem:[%s1430_s3 + $0x78] sm:$0xff] %v809_v48   ;;  %v192_v55 = vadd.f32 %v1305_v8, %v191_v53  ;;  %v312_v56 = vadd.f32 %v1305_v8, %v311_v54 }
 0x10b   :  { %v754_v57 = vpack.c.bf16 %v197_v51, %v192_v55  ;;  %v814_v58 = vpack.c.bf16 %v317_v52, %v312_v56  ;;  %v987_v59 = vpop.f32.mrb[10].mxu0  ;;  %v1023_v60 = vpop.f32.mrb[10].mxu1 }
 0x10c   :  { %v207_v61 = vadd.f32 %v987_v59, %v1305_v8  ;;  %v327_v62 = vadd.f32 %v1023_v60, %v1305_v8  ;;  %v201_v63 = vpop.f32.mrb[11].mxu0  ;;  %v321_v0 = vpop.f32.mrb[11].mxu1 }
 0x10d   :  { %854 = vst [vmem:[%s1430_s3 + $0x20] sm:$0xff] %v754_v57   ;;  %866 = vst [vmem:[%s1430_s3 + $0x80] sm:$0xff] %v814_v58   ;;  %v202_v1 = vadd.f32 %v1305_v8, %v201_v63  ;;  %v322_v2 = vadd.f32 %v1305_v8, %v321_v0 }
 0x10f   :  { %v759_v3 = vpack.c.bf16 %v207_v61, %v202_v1  ;;  %v819_v4 = vpack.c.bf16 %v327_v62, %v322_v2  ;;  %v990_v5 = vpop.f32.mrb[12].mxu0  ;;  %v1026_v6 = vpop.f32.mrb[12].mxu1 }
 0x110   :  { %v217_v7 = vadd.f32 %v990_v5, %v1305_v8  ;;  %v337_v9 = vadd.f32 %v1026_v6, %v1305_v8  ;;  %v211_v10 = vpop.f32.mrb[13].mxu0  ;;  %v331_v11 = vpop.f32.mrb[13].mxu1 }
 0x111   :  { %855 = vst [vmem:[%s1430_s3 + $0x28] sm:$0xff] %v759_v3   ;;  %867 = vst [vmem:[%s1430_s3 + $0x88] sm:$0xff] %v819_v4   ;;  %v212_v12 = vadd.f32 %v1305_v8, %v211_v10  ;;  %v332_v13 = vadd.f32 %v1305_v8, %v331_v11 }
 0x113   :  { %v764_v14 = vpack.c.bf16 %v217_v7, %v212_v12  ;;  %v824_v15 = vpack.c.bf16 %v337_v9, %v332_v13  ;;  %v993_v16 = vpop.f32.mrb[14].mxu0  ;;  %v1029_v17 = vpop.f32.mrb[14].mxu1 }
 0x114   :  { %v227_v18 = vadd.f32 %v993_v16, %v1305_v8  ;;  %v347_v19 = vadd.f32 %v1029_v17, %v1305_v8  ;;  %v221_v20 = vpop.f32.mrb[15].mxu0  ;;  %v341_v21 = vpop.f32.mrb[15].mxu1 }
 0x115   :  { %856 = vst [vmem:[%s1430_s3 + $0x30] sm:$0xff] %v764_v14   ;;  %868 = vst [vmem:[%s1430_s3 + $0x90] sm:$0xff] %v824_v15   ;;  %v222_v22 = vadd.f32 %v1305_v8, %v221_v20  ;;  %v342_v23 = vadd.f32 %v1305_v8, %v341_v21 }
 0x117   :  { %v769_v24 = vpack.c.bf16 %v227_v18, %v222_v22  ;;  %v829_v25 = vpack.c.bf16 %v347_v19, %v342_v23  ;;  %v996_v26 = vpop.f32.mrb[16].mxu0  ;;  %v1032_v27 = vpop.f32.mrb[16].mxu1 }
 0x118   :  { %v237_v28 = vadd.f32 %v996_v26, %v1305_v8  ;;  %v357_v29 = vadd.f32 %v1032_v27, %v1305_v8  ;;  %v231_v30 = vpop.f32.mrb[17].mxu0  ;;  %v351_v31 = vpop.f32.mrb[17].mxu1 }
 0x119   :  { %857 = vst [vmem:[%s1430_s3 + $0x38] sm:$0xff] %v769_v24   ;;  %869 = vst [vmem:[%s1430_s3 + $0x98] sm:$0xff] %v829_v25   ;;  %v232_v32 = vadd.f32 %v1305_v8, %v231_v30  ;;  %v352_v33 = vadd.f32 %v1305_v8, %v351_v31 }
 0x11b   :  { %v774_v34 = vpack.c.bf16 %v237_v28, %v232_v32  ;;  %v834_v35 = vpack.c.bf16 %v357_v29, %v352_v33  ;;  %v999_v36 = vpop.f32.mrb[18].mxu0  ;;  %v1035_v37 = vpop.f32.mrb[18].mxu1 }
 0x11c   :  { %v247_v38 = vadd.f32 %v999_v36, %v1305_v8  ;;  %v367_v39 = vadd.f32 %v1035_v37, %v1305_v8  ;;  %v241_v40 = vpop.f32.mrb[19].mxu0  ;;  %v361_v41 = vpop.f32.mrb[19].mxu1 }
 0x11d   :  { %858 = vst [vmem:[%s1430_s3 + $0x40] sm:$0xff] %v774_v34   ;;  %870 = vst [vmem:[%s1430_s3 + $0xa0] sm:$0xff] %v834_v35   ;;  %v242_v42 = vadd.f32 %v1305_v8, %v241_v40  ;;  %v362_v43 = vadd.f32 %v1305_v8, %v361_v41 }
 0x11f   :  { %v779_v44 = vpack.c.bf16 %v247_v38, %v242_v42  ;;  %v839_v45 = vpack.c.bf16 %v367_v39, %v362_v43  ;;  %v1002_v46 = vpop.f32.mrb[20].mxu0  ;;  %v1038_v47 = vpop.f32.mrb[20].mxu1 }
 0x120   :  { %v257_v48 = vadd.f32 %v1002_v46, %v1305_v8  ;;  %v377_v49 = vadd.f32 %v1038_v47, %v1305_v8  ;;  %v251_v50 = vpop.f32.mrb[21].mxu0  ;;  %v371_v51 = vpop.f32.mrb[21].mxu1 }
 0x121   :  { %859 = vst [vmem:[%s1430_s3 + $0x48] sm:$0xff] %v779_v44   ;;  %871 = vst [vmem:[%s1430_s3 + $0xa8] sm:$0xff] %v839_v45   ;;  %v252_v52 = vadd.f32 %v1305_v8, %v251_v50  ;;  %v372_v53 = vadd.f32 %v1305_v8, %v371_v51 }
 0x123   :  { %v784_v54 = vpack.c.bf16 %v257_v48, %v252_v52  ;;  %v844_v55 = vpack.c.bf16 %v377_v49, %v372_v53  ;;  %v1005_v56 = vpop.f32.mrb[22].mxu0  ;;  %v1041_v57 = vpop.f32.mrb[22].mxu1 }
 0x124   :  { %v267_v58 = vadd.f32 %v1005_v56, %v1305_v8  ;;  %v387_v59 = vadd.f32 %v1041_v57, %v1305_v8  ;;  %v261_v60 = vpop.f32.mrb[23].mxu0  ;;  %v381_v61 = vpop.f32.mrb[23].mxu1 }
 0x125   :  { %860 = vst [vmem:[%s1430_s3 + $0x50] sm:$0xff] %v784_v54   ;;  %872 = vst [vmem:[%s1430_s3 + $0xb0] sm:$0xff] %v844_v55   ;;  %v262_v62 = vadd.f32 %v1305_v8, %v261_v60  ;;  %v382_v63 = vadd.f32 %v1305_v8, %v381_v61 }
 0x127   :  { %v789_v0 = vpack.c.bf16 %v267_v58, %v262_v62  ;;  %v849_v1 = vpack.c.bf16 %v387_v59, %v382_v63 }
 0x129   :  { %861 = vst [vmem:[%s1430_s3 + $0x58] sm:$0xff] %v789_v0   ;;  %873 = vst [vmem:[%s1430_s3 + $0xb8] sm:$0xff] %v849_v1  }

// kernel: drgt_forward.11
= control target key start
LH: loop header
LB: loop body
LE: loop exit
PB: predicated region body
PF: predicated region fallthrough
CT: control target
= control target key end

     0   :  { %s326_s1 = inlined_call_operand.vmem [shape: f32[256,128], index: 1, kind: input, shape index: {}]   ;;  %s327_s0 = inlined_call_operand.vmem [shape: f32[8,256], index: 0, kind: input, shape index: {}]   ;;  %s328_s2 = inlined_call_operand.vmem [shape: f32[1,128], index: 2, kind: input, shape index: {}]   ;;  %s329_s3 = inlined_call_operand.vmem [shape: f32[8,128], index: 3, kind: output, shape index: {}]  }
   0x1   :  { %v32_v0 = vld [vmem:[%s326_s1 + $0x80] sm:$0xff]  ;;  %v33_v1 = vld [vmem:[%s326_s1 + $0x88] sm:$0xff]  ;;  %v34_v5 = vld [vmem:[%s326_s1 + $0x90] sm:$0xff] }
   0x2   :  { %v16_v2 = vld [vmem:[%s326_s1] sm:$0xff]  ;;  %v166_v3 = vpack.c.bf16 %v33_v1, %v32_v0  ;;  %v17_v4 = vld [vmem:[%s326_s1 + $0x8] sm:$0xff]  ;;  %v35_v6 = vld [vmem:[%s326_s1 + $0x98] sm:$0xff] }
   0x3   :  { %v168_v7 = vpack.c.bf16 %v17_v4, %v16_v2  ;;  %v170_v8 = vpack.c.bf16 %v35_v6, %v34_v5  ;;  %v18_v9 = vld [vmem:[%s326_s1 + $0x10] sm:$0xff]  ;;  %v19_v10 = vld [vmem:[%s326_s1 + $0x18] sm:$0xff]  ;;  %v36_v11 = vld [vmem:[%s326_s1 + $0xa0] sm:$0xff] }
   0x4   :  { %167 = vmatprep.subr.bf16.mxu0 %v166_v3  ;;  %v37_v12 = vld [vmem:[%s326_s1 + $0xa8] sm:$0xff]  ;;  %v172_v13 = vpack.c.bf16 %v19_v10, %v18_v9  ;;  %v20_v15 = vld [vmem:[%s326_s1 + $0x20] sm:$0xff]  ;;  %v38_v17 = vld [vmem:[%s326_s1 + $0xb0] sm:$0xff] }
   0x5   :  { %169 = vmatpush3.bf16.msra.mxu0 %v168_v7  ;;  %v174_v14 = vpack.c.bf16 %v37_v12, %v36_v11  ;;  %v21_v16 = vld [vmem:[%s326_s1 + $0x28] sm:$0xff]  ;;  %v39_v18 = vld [vmem:[%s326_s1 + $0xb8] sm:$0xff]  ;;  %v22_v21 = vld [vmem:[%s326_s1 + $0x30] sm:$0xff] }
   0x6   :  { %171 = vmatprep.subr.bf16.mxu0 %v170_v8  ;;  %v176_v19 = vpack.c.bf16 %v21_v16, %v20_v15  ;;  %v178_v20 = vpack.c.bf16 %v39_v18, %v38_v17  ;;  %v23_v22 = vld [vmem:[%s326_s1 + $0x38] sm:$0xff]  ;;  %v40_v23 = vld [vmem:[%s326_s1 + $0xc0] sm:$0xff]  ;;  %v41_v24 = vld [vmem:[%s326_s1 + $0xc8] sm:$0xff] }
   0x7   :  { %v15_v25 = vld [vmem:[%s327_s0 + $0x8] sm:$0xff]  ;;  %v180_v26 = vpack.c.bf16 %v23_v22, %v22_v21  ;;  %v182_v27 = vpack.c.bf16 %v41_v24, %v40_v23  ;;  %v24_v28 = vld [vmem:[%s326_s1 + $0x40] sm:$0xff]  ;;  %v42_v30 = vld [vmem:[%s326_s1 + $0xd0] sm:$0xff] }
   0x8   :  { %119 = vmatprep.mubr.f32.mxu0 %v15_v25  ;;  %v25_v29 = vld [vmem:[%s326_s1 + $0x48] sm:$0xff]  ;;  %v43_v31 = vld [vmem:[%s326_s1 + $0xd8] sm:$0xff]  ;;  %v26_v34 = vld [vmem:[%s326_s1 + $0x50] sm:$0xff] }
   0x9   :  { %173 = vmatpush3.bf16.msra.mxu0 %v172_v13  ;;  %v184_v32 = vpack.c.bf16 %v25_v29, %v24_v28  ;;  %v186_v33 = vpack.c.bf16 %v43_v31, %v42_v30  ;;  %v27_v35 = vld [vmem:[%s326_s1 + $0x58] sm:$0xff]  ;;  %v44_v36 = vld [vmem:[%s326_s1 + $0xe0] sm:$0xff]  ;;  %v45_v37 = vld [vmem:[%s326_s1 + $0xe8] sm:$0xff] }
   0xa   :  { %175 = vmatprep.subr.bf16.mxu0 %v174_v14  ;;  %v188_v38 = vpack.c.bf16 %v27_v35, %v26_v34  ;;  %v190_v39 = vpack.c.bf16 %v45_v37, %v44_v36  ;;  %v28_v40 = vld [vmem:[%s326_s1 + $0x60] sm:$0xff]  ;;  %v29_v41 = vld [vmem:[%s326_s1 + $0x68] sm:$0xff]  ;;  %v46_v42 = vld [vmem:[%s326_s1 + $0xf0] sm:$0xff] }
   0xb   :  { %v47_v43 = vld [vmem:[%s326_s1 + $0xf8] sm:$0xff]  ;;  %v192_v44 = vpack.c.bf16 %v29_v41, %v28_v40  ;;  %v30_v46 = vld [vmem:[%s326_s1 + $0x70] sm:$0xff]  ;;  %v14_v49 = vld [vmem:[%s327_s0] sm:$0xff] }
   0xc   :  { %v194_v45 = vpack.c.bf16 %v47_v43, %v46_v42  ;;  %v31_v47 = vld [vmem:[%s326_s1 + $0x78] sm:$0xff]  ;;  %v130_v51 = vld [vmem:[%s328_s2] ss:$0 sm:$0xff] }
   0xd   :  { %177 = vmatpush3.bf16.msra.mxu0 %v176_v19  ;;  %v196_v48 = vpack.c.bf16 %v31_v47, %v30_v46 }
   0xe   :  { %179 = vmatprep.subr.bf16.mxu0 %v178_v20 }
  0x11   :  { %181 = vmatpush3.bf16.msra.mxu0 %v180_v26 }
  0x12   :  { %183 = vmatprep.subr.bf16.mxu0 %v182_v27 }
  0x15   :  { %185 = vmatpush3.bf16.msra.mxu0 %v184_v32 }
  0x16   :  { %187 = vmatprep.subr.bf16.mxu0 %v186_v33 }
  0x19   :  { %189 = vmatpush3.bf16.msra.mxu0 %v188_v38 }
  0x1a   :  { %191 = vmatprep.subr.bf16.mxu0 %v190_v39 }
  0x1d   :  { %193 = vmatpush3.bf16.msra.mxu0 %v192_v44 }
  0x1e   :  { %195 = vmatprep.subr.bf16.mxu0 %v194_v45 }
  0x21   :  { %197 = vmatpush3.bf16.msra.mxu0 %v196_v48 }
  0x24   :  { %120 = vmatmul.mubr.f32.vlgmr.msra.gmra.mrb[0].mxu0 %v14_v49 }
  0xf7   :  { %v163_v50 = vpop.f32.mrb[0].mxu0 }
  0xf8   :  { %v164_v52 = vpop.f32.mrb[1].mxu0 }
  0xf9   :  { %v165_v53 = vadd.f32 %v164_v52, %v163_v50 }
  0xfb   :  { %v122_v54 = vadd.f32 %v165_v53, %v130_v51 }
  0xfd   :  { %125 = vst [vmem:[%s329_s3] sm:$0xff] %v122_v54 }

// kernel: drgt_forward.10
= control target key start
LH: loop header
LB: loop body
LE: loop exit
PB: predicated region body
PF: predicated region fallthrough
CT: control target
= control target key end

     0   :  { %v131_v0 = vlaneseq  ;;  %s1126_s0 = inlined_call_operand.vmem [shape: bf16[384,128], index: 0, kind: input, shape index: {}]   ;;  %s1127_s1 = inlined_call_operand.vmem [shape: f32[2,128], index: 1, kind: input, shape index: {}]   ;;  %s1128_s4 = inlined_call_operand.vmem [shape: f32[1,128], index: 4, kind: input, shape index: {}]   ;;  %s1129_s2 = inlined_call_operand.vmem [shape: f32[1,128], index: 2, kind: input, shape index: {}]   ;;  %s1130_s3 = inlined_call_operand.vmem [shape: f32[1,128], index: 3, kind: input, shape index: {}]   ;;  %s1131_s5 = inlined_call_operand.vmem [shape: f32[384,128], index: 5, kind: output, shape index: {}]  }
   0x1   :  { %v20_v1 = vld [vmem:[%s1127_s1] sm:$0x1]  ;;  %v22_v2 = vld [vmem:[%s1127_s1 + $0x1] sm:$0x1]  ;;  %v543_v11 = vld [vmem:[%s1126_s0 + $0x8] sm:$0xff]  }
   0x2   :  { %v24_v3 = vld [vmem:[%s1128_s4] sm:$0x1]  ;;  %v21_v4 = vmul.f32 0.003164557, %v20_v1  ;;  %v23_v5 = vmul.f32 0.003164557, %v22_v2  ;;  %v453_v14 = vunpack.c.l.bf16 %v543_v11  ;;  %v454_v15 = vunpack.c.h.bf16 %v543_v11 }
   0x3   :  { %v448_v6 = vld [vmem:[%s1126_s0] sm:$0xff]   ;;  %v27_v7 = vsub.f32 2.0, %v24_v3  ;;  %v610_v9 = vshrl.u32 %v131_v0, 7  ;;  %v544_v16 = vld [vmem:[%s1126_s0 + $0x10] sm:$0xff]   ;;  %v545_v17 = vld [vmem:[%s1126_s0 + $0x18] sm:$0xff]  }
   0x4   :  { %v449_v8 = vunpack.c.l.bf16 %v448_v6  ;;  %v450_v10 = vunpack.c.h.bf16 %v448_v6  ;;  %v25_v12 = vmul.f32 %v21_v4, %v21_v4  ;;  %v129_v13 = vmul.f32 %v24_v3, %v21_v4  ;;  %v546_v18 = vld [vmem:[%s1126_s0 + $0x20] sm:$0xff]   ;;  %v547_v23 = vld [vmem:[%s1126_s0 + $0x28] sm:$0xff]   ;;  %v548_v24 = vld [vmem:[%s1126_s0 + $0x30] sm:$0xff]  }
   0x5   :  { %v133_v19 = vsub.s32 0, %v610_v9  ;;  %v457_v20 = vunpack.c.l.bf16 %v544_v16  ;;  %v458_v21 = vunpack.c.h.bf16 %v544_v16  ;;  %v461_v22 = vunpack.c.l.bf16 %v545_v17  ;;  %v549_v25 = vld [vmem:[%s1126_s0 + $0x38] sm:$0xff]   ;;  %v641_v35 = vld [vmem:[%s1129_s2] ss:$0 sm:$0xff]  ;;  %v551_v63 = vld [vmem:[%s1126_s0 + $0x48] sm:$0xff]  }
   0x6   :  { %v26_v26 = vmul.f32 %v25_v12, %v24_v3  ;;  %v462_v27 = vunpack.c.h.bf16 %v545_v17  ;;  %v465_v28 = vunpack.c.l.bf16 %v546_v18  ;;  %v466_v29 = vunpack.c.h.bf16 %v546_v18  ;;  %v550_v62 = vld [vmem:[%s1126_s0 + $0x40] sm:$0xff]   ;;  %v552_v4 = vld [vmem:[%s1126_s0 + $0x50] sm:$0xff]  }
   0x7   :  { %v636_v30 = vrot.slane %v129_v13, %v133_v19  ;;  %v469_v31 = vunpack.c.l.bf16 %v547_v23  ;;  %v470_v32 = vunpack.c.h.bf16 %v547_v23  ;;  %v473_v33 = vunpack.c.l.bf16 %v548_v24 }
   0x8   :  { %v28_v34 = vmul.f32 %v27_v7, %v26_v26  ;;  %v474_v36 = vunpack.c.h.bf16 %v548_v24  ;;  %v477_v37 = vunpack.c.l.bf16 %v549_v25  ;;  %v478_v38 = vunpack.c.h.bf16 %v549_v25 }
   0x9   :  { %v136_v39 = vsub.f32 %v449_v8, %v636_v30  ;;  %v137_v40 = vsub.f32 %v450_v10, %v636_v30  ;;  %v138_v41 = vsub.f32 %v453_v14, %v636_v30  ;;  %v139_v42 = vsub.f32 %v454_v15, %v636_v30  ;;  %v553_v14 = vld [vmem:[%s1126_s0 + $0x58] sm:$0xff]  }
   0xa   :  { %v29_v43 = vsub.f32 %v23_v5, %v28_v34  ;;  %v140_v44 = vsub.f32 %v457_v20, %v636_v30  ;;  %v141_v45 = vsub.f32 %v458_v21, %v636_v30  ;;  %v142_v46 = vsub.f32 %v461_v22, %v636_v30 }
   0xb   :  { %v651_v47 = vmul.f32 %v641_v35, %v136_v39  ;;  %v654_v48 = vmul.f32 %v641_v35, %v137_v40  ;;  %v657_v49 = vmul.f32 %v641_v35, %v138_v41  ;;  %v660_v50 = vmul.f32 %v641_v35, %v139_v42 }
   0xc   :  { %v30_v51 = vadd.f32 1e-05, %v29_v43  ;;  %v663_v52 = vmul.f32 %v641_v35, %v140_v44  ;;  %v666_v53 = vmul.f32 %v641_v35, %v141_v45  ;;  %v669_v54 = vmul.f32 %v641_v35, %v142_v46 }
   0xd   :  { %v143_v55 = vsub.f32 %v462_v27, %v636_v30  ;;  %v144_v56 = vsub.f32 %v465_v28, %v636_v30  ;;  %v145_v57 = vsub.f32 %v466_v29, %v636_v30  ;;  %v146_v58 = vsub.f32 %v469_v31, %v636_v30  ;;  %v554_v28 = vld [vmem:[%s1126_s0 + $0x60] sm:$0xff]   ;;  %v555_v29 = vld [vmem:[%s1126_s0 + $0x68] sm:$0xff]  }
   0xe   :  { %566 = vrsqrt.f32 %v30_v51  ;;  %v147_v59 = vsub.f32 %v470_v32, %v636_v30  ;;  %v148_v60 = vsub.f32 %v473_v33, %v636_v30  ;;  %v149_v61 = vsub.f32 %v474_v36, %v636_v30  ;;  %v556_v36 = vld [vmem:[%s1126_s0 + $0x70] sm:$0xff]  }
   0xf   :  { %v685_v0 = vmul.f32 %v641_v35, %v143_v55  ;;  %v688_v1 = vmul.f32 %v641_v35, %v144_v56  ;;  %v691_v2 = vmul.f32 %v641_v35, %v145_v57  ;;  %v694_v3 = vmul.f32 %v641_v35, %v146_v58 }
  0x10   :  { %v700_v5 = vmul.f32 %v641_v35, %v147_v59  ;;  %v703_v6 = vmul.f32 %v641_v35, %v148_v60  ;;  %v706_v7 = vmul.f32 %v641_v35, %v149_v61  ;;  %v150_v8 = vsub.f32 %v477_v37, %v636_v30  ;;  %v773_v61 = vld [vmem:[%s1130_s3] ss:$0 sm:$0xff] }
  0x11   :  { %v151_v10 = vsub.f32 %v478_v38, %v636_v30  ;;  %v481_v11 = vunpack.c.l.bf16 %v550_v62  ;;  %v482_v12 = vunpack.c.h.bf16 %v550_v62  ;;  %v485_v13 = vunpack.c.l.bf16 %v551_v63 }
  0x12   :  { %v714_v15 = vmul.f32 %v641_v35, %v150_v8  ;;  %v486_v16 = vunpack.c.h.bf16 %v551_v63  ;;  %v489_v17 = vunpack.c.l.bf16 %v552_v4  ;;  %v490_v18 = vunpack.c.h.bf16 %v552_v4 }
  0x13   :  { %v717_v20 = vmul.f32 %v641_v35, %v151_v10  ;;  %v152_v21 = vsub.f32 %v481_v11, %v636_v30  ;;  %v153_v22 = vsub.f32 %v482_v12, %v636_v30  ;;  %v154_v23 = vsub.f32 %v485_v13, %v636_v30 }
  0x14   :  { %v155_v24 = vsub.f32 %v486_v16, %v636_v30  ;;  %v156_v25 = vsub.f32 %v489_v17, %v636_v30  ;;  %v157_v26 = vsub.f32 %v490_v18, %v636_v30  ;;  %v493_v27 = vunpack.c.l.bf16 %v553_v14 }
  0x15   :  { %v732_v31 = vmul.f32 %v641_v35, %v152_v21  ;;  %v735_v32 = vmul.f32 %v641_v35, %v153_v22  ;;  %v738_v33 = vmul.f32 %v641_v35, %v154_v23  ;;  %v494_v34 = vunpack.c.h.bf16 %v553_v14 }
  0x16   :  { %v744_v37 = vmul.f32 %v641_v35, %v155_v24  ;;  %v747_v38 = vmul.f32 %v641_v35, %v156_v25  ;;  %v750_v39 = vmul.f32 %v641_v35, %v157_v26  ;;  %v158_v40 = vsub.f32 %v493_v27, %v636_v30 }
  0x17   :  { %v159_v41 = vsub.f32 %v494_v34, %v636_v30  ;;  %v497_v42 = vunpack.c.l.bf16 %v554_v28  ;;  %v498_v43 = vunpack.c.h.bf16 %v554_v28  ;;  %v501_v44 = vunpack.c.l.bf16 %v555_v29 }
  0x18   :  { %v567_v45 = vpop.eup %566  ;;  %v755_v46 = vmul.f32 %v641_v35, %v158_v40  ;;  %v502_v51 = vunpack.c.h.bf16 %v555_v29  ;;  %v505_v55 = vunpack.c.l.bf16 %v556_v36  ;;  %v506_v56 = vunpack.c.h.bf16 %v556_v36 }
  0x19   :  { %v759_v57 = vrot.slane %v567_v45, %v133_v19  ;;  %v762_v58 = vmul.f32 %v641_v35, %v159_v41  ;;  %v765_v59 = vsub.f32 %v497_v42, %v636_v30  ;;  %v768_v60 = vsub.f32 %v498_v43, %v636_v30 }
  0x1a   :  { %v776_v62 = vsub.f32 %v501_v44, %v636_v30  ;;  %v779_v9 = vsub.f32 %v502_v51, %v636_v30  ;;  %v782_v19 = vsub.f32 %v505_v55, %v636_v30  ;;  %v785_v63 = vsub.f32 %v506_v56, %v636_v30 }
  0x1b   :  { %v242_v4 = vmul.f32 %v759_v57, %v651_v47  ;;  %v243_v8 = vmul.f32 %v759_v57, %v654_v48  ;;  %v244_v10 = vmul.f32 %v759_v57, %v657_v49  ;;  %v245_v11 = vmul.f32 %v759_v57, %v660_v50 }
  0x1c   :  { %v246_v12 = vmul.f32 %v759_v57, %v663_v52  ;;  %v247_v13 = vmul.f32 %v759_v57, %v666_v53  ;;  %v248_v14 = vmul.f32 %v759_v57, %v669_v54  ;;  %v249_v47 = vmul.f32 %v759_v57, %v685_v0 }
  0x1d   :  { %v297_v48 = vadd.f32 %v773_v61, %v242_v4  ;;  %v298_v16 = vadd.f32 %v773_v61, %v243_v8  ;;  %v299_v49 = vadd.f32 %v773_v61, %v244_v10  ;;  %v300_v50 = vadd.f32 %v773_v61, %v245_v11 }
  0x1e   :  { %v301_v17 = vadd.f32 %v773_v61, %v246_v12  ;;  %v302_v52 = vadd.f32 %v773_v61, %v247_v13  ;;  %v303_v53 = vadd.f32 %v773_v61, %v248_v14  ;;  %v304_v18 = vadd.f32 %v773_v61, %v249_v47 }
  0x1f   :  { %v345_v54 = vmax.f32 %v297_v48, 0.0  ;;  %v346_v21 = vmax.f32 %v298_v16, 0.0  ;;  %v347_v22 = vmax.f32 %v299_v49, 0.0  ;;  %v348_v0 = vmax.f32 %v300_v50, 0.0 }
  0x20   :  { %v349_v23 = vmax.f32 %v301_v17, 0.0  ;;  %v350_v24 = vmax.f32 %v302_v52, 0.0  ;;  %v351_v25 = vmax.f32 %v303_v53, 0.0  ;;  %v352_v26 = vmax.f32 %v304_v18, 0.0  ;;  %v557_v53 = vld [vmem:[%s1126_s0 + $0x78] sm:$0xff]  }
  0x21   :  { %393 = vst [vmem:[%s1131_s5] sm:$0xff] %v345_v54  ;;  %394 = vst [vmem:[%s1131_s5 + $0x8] sm:$0xff] %v346_v21  ;;  %v250_v27 = vmul.f32 %v759_v57, %v688_v1  ;;  %v251_v28 = vmul.f32 %v759_v57, %v691_v2  ;;  %v252_v29 = vmul.f32 %v759_v57, %v694_v3 }
  0x22   :  { %395 = vst [vmem:[%s1131_s5 + $0x10] sm:$0xff] %v347_v22  ;;  %396 = vst [vmem:[%s1131_s5 + $0x18] sm:$0xff] %v348_v0  ;;  %v253_v34 = vmul.f32 %v759_v57, %v700_v5  ;;  %v254_v1 = vmul.f32 %v759_v57, %v703_v6  ;;  %v255_v2 = vmul.f32 %v759_v57, %v706_v7 }
  0x23   :  { %397 = vst [vmem:[%s1131_s5 + $0x20] sm:$0xff] %v349_v23  ;;  %398 = vst [vmem:[%s1131_s5 + $0x28] sm:$0xff] %v350_v24  ;;  %v256_v3 = vmul.f32 %v759_v57, %v714_v15  ;;  %v257_v5 = vmul.f32 %v759_v57, %v717_v20  ;;  %v305_v36 = vadd.f32 %v773_v61, %v250_v27 }
  0x24   :  { %399 = vst [vmem:[%s1131_s5 + $0x30] sm:$0xff] %v351_v25  ;;  %400 = vst [vmem:[%s1131_s5 + $0x38] sm:$0xff] %v352_v26  ;;  %v306_v40 = vadd.f32 %v773_v61, %v251_v28  ;;  %v307_v41 = vadd.f32 %v773_v61, %v252_v29  ;;  %v308_v42 = vadd.f32 %v773_v61, %v253_v34 }
  0x25   :  { %v309_v43 = vadd.f32 %v773_v61, %v254_v1  ;;  %v310_v6 = vadd.f32 %v773_v61, %v255_v2  ;;  %v311_v7 = vadd.f32 %v773_v61, %v256_v3  ;;  %v312_v44 = vadd.f32 %v773_v61, %v257_v5 }
  0x26   :  { %v353_v15 = vmax.f32 %v305_v36, 0.0  ;;  %v354_v45 = vmax.f32 %v306_v40, 0.0  ;;  %v355_v51 = vmax.f32 %v307_v41, 0.0  ;;  %v356_v20 = vmax.f32 %v308_v42, 0.0 }
  0x27   :  { %v357_v55 = vmax.f32 %v309_v43, 0.0  ;;  %v358_v56 = vmax.f32 %v310_v6, 0.0  ;;  %v359_v4 = vmax.f32 %v311_v7, 0.0  ;;  %v360_v8 = vmax.f32 %v312_v44, 0.0  ;;  %v558_v6 = vld [vmem:[%s1126_s0 + $0x80] sm:$0xff]   ;;  %v559_v7 = vld [vmem:[%s1126_s0 + $0x88] sm:$0xff]  }
  0x28   :  { %401 = vst [vmem:[%s1131_s5 + $0x40] sm:$0xff] %v353_v15  ;;  %402 = vst [vmem:[%s1131_s5 + $0x48] sm:$0xff] %v354_v45  ;;  %v258_v10 = vmul.f32 %v759_v57, %v732_v31  ;;  %v259_v11 = vmul.f32 %v759_v57, %v735_v32  ;;  %v260_v12 = vmul.f32 %v759_v57, %v738_v33 }
  0x29   :  { %403 = vst [vmem:[%s1131_s5 + $0x50] sm:$0xff] %v355_v51  ;;  %404 = vst [vmem:[%s1131_s5 + $0x58] sm:$0xff] %v356_v20  ;;  %v261_v13 = vmul.f32 %v759_v57, %v744_v37  ;;  %v262_v31 = vmul.f32 %v759_v57, %v747_v38  ;;  %v263_v32 = vmul.f32 %v759_v57, %v750_v39  ;;  %v560_v20 = vld [vmem:[%s1126_s0 + $0x90] sm:$0xff]  }
  0x2a   :  { %405 = vst [vmem:[%s1131_s5 + $0x60] sm:$0xff] %v357_v55  ;;  %406 = vst [vmem:[%s1131_s5 + $0x68] sm:$0xff] %v358_v56  ;;  %v264_v33 = vmul.f32 %v759_v57, %v755_v46  ;;  %v265_v37 = vmul.f32 %v759_v57, %v762_v58  ;;  %v313_v14 = vadd.f32 %v773_v61, %v258_v10  ;;  %v513_v10 = vunpack.c.l.bf16 %v558_v6 }
  0x2b   :  { %407 = vst [vmem:[%s1131_s5 + $0x70] sm:$0xff] %v359_v4  ;;  %408 = vst [vmem:[%s1131_s5 + $0x78] sm:$0xff] %v360_v8  ;;  %v314_v47 = vadd.f32 %v773_v61, %v259_v11  ;;  %v315_v48 = vadd.f32 %v773_v61, %v260_v12  ;;  %v316_v16 = vadd.f32 %v773_v61, %v261_v13  ;;  %v514_v11 = vunpack.c.h.bf16 %v558_v6 }
  0x2c   :  { %v317_v49 = vadd.f32 %v773_v61, %v262_v31  ;;  %v318_v38 = vadd.f32 %v773_v61, %v263_v32  ;;  %v319_v39 = vadd.f32 %v773_v61, %v264_v33  ;;  %v320_v50 = vadd.f32 %v773_v61, %v265_v37 }
  0x2d   :  { %v361_v46 = vmax.f32 %v313_v14, 0.0  ;;  %v362_v17 = vmax.f32 %v314_v47, 0.0  ;;  %v363_v52 = vmax.f32 %v315_v48, 0.0  ;;  %v364_v58 = vmax.f32 %v316_v16, 0.0 }
  0x2e   :  { %v365_v18 = vmax.f32 %v317_v49, 0.0  ;;  %v366_v54 = vmax.f32 %v318_v38, 0.0  ;;  %v367_v21 = vmax.f32 %v319_v39, 0.0  ;;  %v368_v22 = vmax.f32 %v320_v50, 0.0  ;;  %v561_v49 = vld [vmem:[%s1126_s0 + $0x98] sm:$0xff]  }
  0x2f   :  { %409 = vst [vmem:[%s1131_s5 + $0x80] sm:$0xff] %v361_v46  ;;  %410 = vst [vmem:[%s1131_s5 + $0x88] sm:$0xff] %v362_v17  ;;  %v214_v0 = vmul.f32 %v641_v35, %v765_v59  ;;  %v215_v23 = vmul.f32 %v641_v35, %v768_v60  ;;  %v216_v24 = vmul.f32 %v641_v35, %v776_v62  ;;  %v509_v62 = vunpack.c.l.bf16 %v557_v53 }
  0x30   :  { %411 = vst [vmem:[%s1131_s5 + $0x90] sm:$0xff] %v363_v52  ;;  %412 = vst [vmem:[%s1131_s5 + $0x98] sm:$0xff] %v364_v58  ;;  %v217_v25 = vmul.f32 %v641_v35, %v779_v9  ;;  %v218_v59 = vmul.f32 %v641_v35, %v782_v19  ;;  %v219_v60 = vmul.f32 %v641_v35, %v785_v63  ;;  %v510_v9 = vunpack.c.h.bf16 %v557_v53 }
  0x31   :  { %413 = vst [vmem:[%s1131_s5 + $0xa0] sm:$0xff] %v365_v18  ;;  %414 = vst [vmem:[%s1131_s5 + $0xa8] sm:$0xff] %v366_v54  ;;  %v266_v26 = vmul.f32 %v759_v57, %v214_v0  ;;  %v267_v27 = vmul.f32 %v759_v57, %v215_v23  ;;  %v268_v28 = vmul.f32 %v759_v57, %v216_v24  ;;  %v517_v12 = vunpack.c.l.bf16 %v559_v7 }
  0x32   :  { %415 = vst [vmem:[%s1131_s5 + $0xb0] sm:$0xff] %v367_v21  ;;  %416 = vst [vmem:[%s1131_s5 + $0xb8] sm:$0xff] %v368_v22  ;;  %v269_v29 = vmul.f32 %v759_v57, %v217_v25  ;;  %v270_v34 = vmul.f32 %v759_v57, %v218_v59  ;;  %v271_v1 = vmul.f32 %v759_v57, %v219_v60  ;;  %v518_v13 = vunpack.c.h.bf16 %v559_v7 }
  0x33   :  { %v166_v2 = vsub.f32 %v509_v62, %v636_v30  ;;  %v167_v19 = vsub.f32 %v510_v9, %v636_v30  ;;  %v321_v63 = vadd.f32 %v773_v61, %v266_v26  ;;  %v322_v3 = vadd.f32 %v773_v61, %v267_v27 }
  0x34   :  { %v323_v5 = vadd.f32 %v773_v61, %v268_v28  ;;  %v324_v36 = vadd.f32 %v773_v61, %v269_v29  ;;  %v325_v40 = vadd.f32 %v773_v61, %v270_v34  ;;  %v326_v41 = vadd.f32 %v773_v61, %v271_v1 }
  0x35   :  { %v220_v42 = vmul.f32 %v641_v35, %v166_v2  ;;  %v221_v43 = vmul.f32 %v641_v35, %v167_v19  ;;  %v369_v44 = vmax.f32 %v321_v63, 0.0  ;;  %v370_v15 = vmax.f32 %v322_v3, 0.0  ;;  %v562_v63 = vld [vmem:[%s1126_s0 + $0xa0] sm:$0xff]   ;;  %v563_v3 = vld [vmem:[%s1126_s0 + $0xa8] sm:$0xff]  }
  0x36   :  { %v371_v45 = vmax.f32 %v323_v5, 0.0  ;;  %v372_v51 = vmax.f32 %v324_v36, 0.0  ;;  %v373_v55 = vmax.f32 %v325_v40, 0.0  ;;  %v374_v56 = vmax.f32 %v326_v41, 0.0 }
  0x37   :  { %v272_v4 = vmul.f32 %v759_v57, %v220_v42  ;;  %v273_v8 = vmul.f32 %v759_v57, %v221_v43  ;;  %417 = vst [vmem:[%s1131_s5 + $0xc0] sm:$0xff] %v369_v44  ;;  %418 = vst [vmem:[%s1131_s5 + $0xc8] sm:$0xff] %v370_v15  ;;  %v521_v33 = vunpack.c.l.bf16 %v560_v20  ;;  %v522_v37 = vunpack.c.h.bf16 %v560_v20  ;;  %v564_v42 = vld [vmem:[%s1126_s0 + $0xb0] sm:$0xff]  }
  0x38   :  { %419 = vst [vmem:[%s1131_s5 + $0xd0] sm:$0xff] %v371_v45  ;;  %420 = vst [vmem:[%s1131_s5 + $0xd8] sm:$0xff] %v372_v51  ;;  %v168_v14 = vsub.f32 %v513_v10, %v636_v30  ;;  %v169_v47 = vsub.f32 %v514_v11, %v636_v30  ;;  %v170_v48 = vsub.f32 %v517_v12, %v636_v30  ;;  %v525_v21 = vunpack.c.l.bf16 %v561_v49 }
  0x39   :  { %421 = vst [vmem:[%s1131_s5 + $0xe0] sm:$0xff] %v373_v55  ;;  %422 = vst [vmem:[%s1131_s5 + $0xe8] sm:$0xff] %v374_v56  ;;  %v327_v31 = vadd.f32 %v773_v61, %v272_v4  ;;  %v328_v32 = vadd.f32 %v773_v61, %v273_v8  ;;  %v171_v16 = vsub.f32 %v518_v13, %v636_v30  ;;  %v526_v22 = vunpack.c.h.bf16 %v561_v49 }
  0x3a   :  { %v172_v50 = vsub.f32 %v521_v33, %v636_v30  ;;  %v173_v46 = vsub.f32 %v522_v37, %v636_v30  ;;  %v222_v17 = vmul.f32 %v641_v35, %v168_v14  ;;  %v223_v52 = vmul.f32 %v641_v35, %v169_v47 }
  0x3b   :  { %v375_v38 = vmax.f32 %v327_v31, 0.0  ;;  %v376_v39 = vmax.f32 %v328_v32, 0.0  ;;  %v224_v58 = vmul.f32 %v641_v35, %v170_v48  ;;  %v225_v53 = vmul.f32 %v641_v35, %v171_v16  ;;  %v565_v31 = vld [vmem:[%s1126_s0 + $0xb8] sm:$0xff]  }
  0x3c   :  { %v226_v18 = vmul.f32 %v641_v35, %v172_v50  ;;  %v227_v54 = vmul.f32 %v641_v35, %v173_v46  ;;  %v274_v0 = vmul.f32 %v759_v57, %v222_v17  ;;  %v275_v23 = vmul.f32 %v759_v57, %v223_v52 }
  0x3d   :  { %423 = vst [vmem:[%s1131_s5 + $0xf0] sm:$0xff] %v375_v38  ;;  %424 = vst [vmem:[%s1131_s5 + $0xf8] sm:$0xff] %v376_v39  ;;  %v276_v24 = vmul.f32 %v759_v57, %v224_v58  ;;  %v277_v25 = vmul.f32 %v759_v57, %v225_v53  ;;  %v174_v62 = vsub.f32 %v525_v21, %v636_v30  ;;  %v529_v15 = vunpack.c.l.bf16 %v562_v63 }
  0x3e   :  { %v278_v59 = vmul.f32 %v759_v57, %v226_v18  ;;  %v279_v60 = vmul.f32 %v759_v57, %v227_v54  ;;  %v175_v9 = vsub.f32 %v526_v22, %v636_v30  ;;  %v329_v26 = vadd.f32 %v773_v61, %v274_v0 }
  0x3f   :  { %v330_v27 = vadd.f32 %v773_v61, %v275_v23  ;;  %v331_v28 = vadd.f32 %v773_v61, %v276_v24  ;;  %v332_v29 = vadd.f32 %v773_v61, %v277_v25  ;;  %v228_v2 = vmul.f32 %v641_v35, %v174_v62 }
  0x40   :  { %v333_v34 = vadd.f32 %v773_v61, %v278_v59  ;;  %v334_v1 = vadd.f32 %v773_v61, %v279_v60  ;;  %v229_v19 = vmul.f32 %v641_v35, %v175_v9  ;;  %v377_v5 = vmax.f32 %v329_v26, 0.0 }
  0x41   :  { %v378_v36 = vmax.f32 %v330_v27, 0.0  ;;  %v379_v40 = vmax.f32 %v331_v28, 0.0  ;;  %v380_v41 = vmax.f32 %v332_v29, 0.0  ;;  %v280_v7 = vmul.f32 %v759_v57, %v228_v2 }
  0x42   :  { %v381_v43 = vmax.f32 %v333_v34, 0.0  ;;  %v382_v6 = vmax.f32 %v334_v1, 0.0  ;;  %v281_v44 = vmul.f32 %v759_v57, %v229_v19  ;;  %425 = vst [vmem:[%s1131_s5 + $0x100] sm:$0xff] %v377_v5  ;;  %v530_v45 = vunpack.c.h.bf16 %v562_v63 }
  0x43   :  { %426 = vst [vmem:[%s1131_s5 + $0x108] sm:$0xff] %v378_v36  ;;  %427 = vst [vmem:[%s1131_s5 + $0x110] sm:$0xff] %v379_v40  ;;  %v533_v51 = vunpack.c.l.bf16 %v563_v3  ;;  %v534_v20 = vunpack.c.h.bf16 %v563_v3  ;;  %v335_v55 = vadd.f32 %v773_v61, %v280_v7  ;;  %v537_v4 = vunpack.c.l.bf16 %v564_v42 }
  0x44   :  { %428 = vst [vmem:[%s1131_s5 + $0x118] sm:$0xff] %v380_v41  ;;  %429 = vst [vmem:[%s1131_s5 + $0x120] sm:$0xff] %v381_v43  ;;  %v336_v56 = vadd.f32 %v773_v61, %v281_v44  ;;  %v538_v8 = vunpack.c.h.bf16 %v564_v42  ;;  %v176_v10 = vsub.f32 %v529_v15, %v636_v30  ;;  %v177_v11 = vsub.f32 %v530_v45, %v636_v30 }
  0x45   :  { %430 = vst [vmem:[%s1131_s5 + $0x128] sm:$0xff] %v382_v6  ;;  %v178_v12 = vsub.f32 %v533_v51, %v636_v30  ;;  %v179_v13 = vsub.f32 %v534_v20, %v636_v30  ;;  %v383_v32 = vmax.f32 %v335_v55, 0.0  ;;  %v180_v37 = vsub.f32 %v537_v4, %v636_v30 }
  0x46   :  { %v384_v33 = vmax.f32 %v336_v56, 0.0  ;;  %v181_v14 = vsub.f32 %v538_v8, %v636_v30  ;;  %v230_v47 = vmul.f32 %v641_v35, %v176_v10  ;;  %v231_v48 = vmul.f32 %v641_v35, %v177_v11 }
  0x47   :  { %v232_v16 = vmul.f32 %v641_v35, %v178_v12  ;;  %v233_v49 = vmul.f32 %v641_v35, %v179_v13  ;;  %431 = vst [vmem:[%s1131_s5 + $0x130] sm:$0xff] %v383_v32  ;;  %v234_v38 = vmul.f32 %v641_v35, %v180_v37  ;;  %v541_v50 = vunpack.c.l.bf16 %v565_v31 }
  0x48   :  { %432 = vst [vmem:[%s1131_s5 + $0x138] sm:$0xff] %v384_v33  ;;  %v235_v39 = vmul.f32 %v641_v35, %v181_v14  ;;  %v542_v46 = vunpack.c.h.bf16 %v565_v31  ;;  %v282_v17 = vmul.f32 %v759_v57, %v230_v47  ;;  %v283_v52 = vmul.f32 %v759_v57, %v231_v48 }
  0x49   :  { %v284_v58 = vmul.f32 %v759_v57, %v232_v16  ;;  %v285_v53 = vmul.f32 %v759_v57, %v233_v49  ;;  %v286_v18 = vmul.f32 %v759_v57, %v234_v38  ;;  %v182_v21 = vsub.f32 %v541_v50, %v636_v30 }
  0x4a   :  { %v287_v54 = vmul.f32 %v759_v57, %v235_v39  ;;  %v183_v22 = vsub.f32 %v542_v46, %v636_v30  ;;  %v337_v0 = vadd.f32 %v773_v61, %v282_v17  ;;  %v338_v23 = vadd.f32 %v773_v61, %v283_v52 }
  0x4b   :  { %v339_v24 = vadd.f32 %v773_v61, %v284_v58  ;;  %v340_v25 = vadd.f32 %v773_v61, %v285_v53  ;;  %v341_v59 = vadd.f32 %v773_v61, %v286_v18  ;;  %v236_v62 = vmul.f32 %v641_v35, %v182_v21 }
  0x4c   :  { %v342_v60 = vadd.f32 %v773_v61, %v287_v54  ;;  %v237_v9 = vmul.f32 %v641_v35, %v183_v22  ;;  %v385_v26 = vmax.f32 %v337_v0, 0.0  ;;  %v386_v27 = vmax.f32 %v338_v23, 0.0 }
  0x4d   :  { %v387_v28 = vmax.f32 %v339_v24, 0.0  ;;  %v388_v30 = vmax.f32 %v340_v25, 0.0  ;;  %v389_v29 = vmax.f32 %v341_v59, 0.0  ;;  %v288_v1 = vmul.f32 %v759_v57, %v236_v62 }
  0x4e   :  { %v390_v34 = vmax.f32 %v342_v60, 0.0  ;;  %v289_v2 = vmul.f32 %v759_v57, %v237_v9  ;;  %433 = vst [vmem:[%s1131_s5 + $0x140] sm:$0xff] %v385_v26  ;;  %434 = vst [vmem:[%s1131_s5 + $0x148] sm:$0xff] %v386_v27 }
  0x4f   :  { %435 = vst [vmem:[%s1131_s5 + $0x150] sm:$0xff] %v387_v28  ;;  %436 = vst [vmem:[%s1131_s5 + $0x158] sm:$0xff] %v388_v30  ;;  %v343_v35 = vadd.f32 %v773_v61, %v288_v1 }
  0x50   :  { %437 = vst [vmem:[%s1131_s5 + $0x160] sm:$0xff] %v389_v29  ;;  %438 = vst [vmem:[%s1131_s5 + $0x168] sm:$0xff] %v390_v34  ;;  %v344_v57 = vadd.f32 %v773_v61, %v289_v2 }
  0x51   :  { %v391_v19 = vmax.f32 %v343_v35, 0.0 }
  0x52   :  { %v392_v63 = vmax.f32 %v344_v57, 0.0 }
  0x53   :  { %439 = vst [vmem:[%s1131_s5 + $0x170] sm:$0xff] %v391_v19 }
  0x54   :  { %440 = vst [vmem:[%s1131_s5 + $0x178] sm:$0xff] %v392_v63 }

// kernel: drgt_forward.8
= control target key start
LH: loop header
LB: loop body
LE: loop exit
PB: predicated region body
PF: predicated region fallthrough
CT: control target
= control target key end

     0   :  { %v135_v2 = vlaneseq  ;;  %s1975_s5 = inlined_call_operand.vmem [shape: bf16[128,128], index: 5, kind: input, shape index: {}]   ;;  %s1976_s1 = inlined_call_operand.vmem [shape: f32[2,128], index: 1, kind: input, shape index: {}]   ;;  %s1977_s4 = inlined_call_operand.vmem [shape: f32[1,128], index: 4, kind: input, shape index: {}]   ;;  %s1978_s0 = inlined_call_operand.vmem [shape: bf16[384,128], index: 0, kind: input, shape index: {}]   ;;  %s1979_s2 = inlined_call_operand.vmem [shape: f32[1,128], index: 2, kind: input, shape index: {}]   ;;  %s1980_s3 = inlined_call_operand.vmem [shape: f32[1,128], index: 3, kind: input, shape index: {}]   ;;  %s1981_s6 = inlined_call_operand.vmem [shape: bf16[384,128], index: 6, kind: output, shape index: {}]  }
   0x1   :  { %v1434_v0 = vld [vmem:[%s1975_s5] sm:$0xff]   ;;  %v1435_v1 = vld [vmem:[%s1975_s5 + $0x8] sm:$0xff]   ;;  %v1436_v3 = vld [vmem:[%s1975_s5 + $0x10] sm:$0xff]  }
   0x2   :  { %1354 = vmatprep.subr.bf16.mxu0 %v1434_v0  ;;  %1418 = vmatprep.subr.bf16.mxu1 %v1434_v0  ;;  %v1488_v4 = vshrl.u32 %v135_v2, 7  ;;  %v1437_v5 = vld [vmem:[%s1975_s5 + $0x18] sm:$0xff]   ;;  %v24_v6 = vld [vmem:[%s1976_s1] sm:$0x1]  ;;  %v26_v7 = vld [vmem:[%s1976_s1 + $0x1] sm:$0x1] }
   0x3   :  { %1355 = vmatpush3.bf16.msra.mxu0 %v1434_v0  ;;  %1426 = vmatpush3.bf16.msra.mxu1 %v1434_v0  ;;  %v28_v8 = vld [vmem:[%s1977_s4] sm:$0x1]  ;;  %v25_v9 = vmul.f32 0.003164557, %v24_v6  ;;  %v27_v13 = vmul.f32 0.003164557, %v26_v7 }
   0x4   :  { %1356 = vmatprep.subr.bf16.mxu0 %v1435_v1  ;;  %1419 = vmatprep.subr.bf16.mxu1 %v1435_v1  ;;  %v1061_v10 = vld [vmem:[%s1978_s0] sm:$0xff]   ;;  %v137_v11 = vsub.s32 0, %v1488_v4  ;;  %v31_v14 = vsub.f32 2.0, %v28_v8  ;;  %v1276_v22 = vld [vmem:[%s1978_s0 + $0x8] sm:$0xff]   ;;  %v1277_v24 = vld [vmem:[%s1978_s0 + $0x10] sm:$0xff]  }
   0x5   :  { %v1438_v12 = vld [vmem:[%s1975_s5 + $0x20] sm:$0xff]   ;;  %v1062_v15 = vunpack.c.l.bf16 %v1061_v10  ;;  %v1063_v16 = vunpack.c.h.bf16 %v1061_v10  ;;  %v29_v18 = vmul.f32 %v25_v9, %v25_v9  ;;  %v133_v19 = vmul.f32 %v28_v8, %v25_v9  ;;  %v1288_v23 = vld [vmem:[%s1978_s0 + $0x68] sm:$0xff]   ;;  %v1289_v29 = vld [vmem:[%s1978_s0 + $0x70] sm:$0xff]  }
   0x6   :  { %v1287_v17 = vld [vmem:[%s1978_s0 + $0x60] sm:$0xff]   ;;  %v1066_v25 = vunpack.c.l.bf16 %v1276_v22  ;;  %v1067_v26 = vunpack.c.h.bf16 %v1276_v22  ;;  %v1114_v27 = vunpack.c.l.bf16 %v1288_v23  ;;  %v1115_v28 = vunpack.c.h.bf16 %v1288_v23  ;;  %v1278_v30 = vld [vmem:[%s1978_s0 + $0x18] sm:$0xff]   ;;  %v1439_v45 = vld [vmem:[%s1975_s5 + $0x28] sm:$0xff]  }
   0x7   :  { %1357 = vmatpush3.bf16.msra.mxu0 %v1435_v1  ;;  %1427 = vmatpush3.bf16.msra.mxu1 %v1435_v1  ;;  %v1110_v20 = vunpack.c.l.bf16 %v1287_v17  ;;  %v1111_v21 = vunpack.c.h.bf16 %v1287_v17  ;;  %v1290_v31 = vld [vmem:[%s1978_s0 + $0x78] sm:$0xff]   ;;  %v30_v32 = vmul.f32 %v29_v18, %v28_v8  ;;  %v1532_v33 = vrot.slane %v133_v19, %v137_v11  ;;  %v1537_v36 = vld [vmem:[%s1979_s2] ss:$0 sm:$0xff]  ;;  %v1440_v63 = vld [vmem:[%s1975_s5 + $0x30] sm:$0xff]  }
   0x8   :  { %1358 = vmatprep.subr.bf16.mxu0 %v1436_v3  ;;  %1420 = vmatprep.subr.bf16.mxu1 %v1436_v3  ;;  %v1070_v34 = vunpack.c.l.bf16 %v1277_v24  ;;  %v1071_v35 = vunpack.c.h.bf16 %v1277_v24  ;;  %v1118_v37 = vunpack.c.l.bf16 %v1289_v29  ;;  %v1119_v38 = vunpack.c.h.bf16 %v1289_v29  ;;  %v1279_v54 = vld [vmem:[%s1978_s0 + $0x20] sm:$0xff]   ;;  %v1280_v18 = vld [vmem:[%s1978_s0 + $0x28] sm:$0xff]   ;;  %v1441_v19 = vld [vmem:[%s1975_s5 + $0x38] sm:$0xff]  }
   0x9   :  { %v1074_v39 = vunpack.c.l.bf16 %v1278_v30  ;;  %v1075_v40 = vunpack.c.h.bf16 %v1278_v30  ;;  %v32_v41 = vmul.f32 %v31_v14, %v30_v32  ;;  %v140_v42 = vsub.f32 %v1062_v15, %v1532_v33  ;;  %v1291_v8 = vld [vmem:[%s1978_s0 + $0x80] sm:$0xff]   ;;  %v1292_v24 = vld [vmem:[%s1978_s0 + $0x88] sm:$0xff]   ;;  %v1281_v29 = vld [vmem:[%s1978_s0 + $0x30] sm:$0xff]  }
   0xa   :  { %v141_v43 = vsub.f32 %v1063_v16, %v1532_v33  ;;  %v1122_v44 = vunpack.c.l.bf16 %v1290_v31  ;;  %v164_v46 = vsub.f32 %v1110_v20, %v1532_v33  ;;  %v165_v47 = vsub.f32 %v1111_v21, %v1532_v33 }
   0xb   :  { %1359 = vmatpush3.bf16.msra.mxu0 %v1436_v3  ;;  %1428 = vmatpush3.bf16.msra.mxu1 %v1436_v3  ;;  %v142_v48 = vsub.f32 %v1066_v25, %v1532_v33  ;;  %v1123_v49 = vunpack.c.h.bf16 %v1290_v31  ;;  %v33_v50 = vsub.f32 %v27_v13, %v32_v41  ;;  %v1548_v51 = vmul.f32 %v1537_v36, %v140_v42 }
   0xc   :  { %1360 = vmatprep.subr.bf16.mxu0 %v1437_v5  ;;  %1421 = vmatprep.subr.bf16.mxu1 %v1437_v5  ;;  %v1551_v52 = vmul.f32 %v1537_v36, %v141_v43  ;;  %v143_v53 = vsub.f32 %v1067_v26, %v1532_v33  ;;  %v1558_v55 = vmul.f32 %v1537_v36, %v164_v46  ;;  %v1078_v3 = vunpack.c.l.bf16 %v1279_v54 }
   0xd   :  { %v1561_v56 = vmul.f32 %v1537_v36, %v165_v47  ;;  %v1564_v57 = vmul.f32 %v1537_v36, %v142_v48  ;;  %v166_v58 = vsub.f32 %v1114_v27, %v1532_v33  ;;  %v34_v59 = vadd.f32 1e-05, %v33_v50 }
   0xe   :  { %v1568_v60 = vmul.f32 %v1537_v36, %v143_v53  ;;  %v167_v61 = vsub.f32 %v1115_v28, %v1532_v33  ;;  %v144_v62 = vsub.f32 %v1070_v34, %v1532_v33  ;;  %v145_v1 = vsub.f32 %v1071_v35, %v1532_v33 }
   0xf   :  { %1361 = vmatpush3.bf16.msra.mxu0 %v1437_v5  ;;  %1429 = vmatpush3.bf16.msra.mxu1 %v1437_v5  ;;  %v1576_v0 = vmul.f32 %v1537_v36, %v166_v58  ;;  %v168_v2 = vsub.f32 %v1118_v37, %v1532_v33  ;;  %1442 = vrsqrt.f32 %v34_v59  ;;  %v169_v7 = vsub.f32 %v1119_v38, %v1532_v33  ;;  %v1665_v59 = vld [vmem:[%s1978_s0 + $0x98] sm:$0xff]  }
  0x10   :  { %1362 = vmatprep.subr.bf16.mxu0 %v1438_v12  ;;  %1422 = vmatprep.subr.bf16.mxu1 %v1438_v12  ;;  %v1581_v5 = vmul.f32 %v1537_v36, %v167_v61  ;;  %v1584_v6 = vmul.f32 %v1537_v36, %v144_v62  ;;  %v1591_v9 = vmul.f32 %v1537_v36, %v145_v1  ;;  %v1079_v17 = vunpack.c.h.bf16 %v1279_v54 }
  0x11   :  { %v1594_v10 = vmul.f32 %v1537_v36, %v168_v2  ;;  %v147_v13 = vsub.f32 %v1075_v40, %v1532_v33  ;;  %v1599_v14 = vmul.f32 %v1537_v36, %v169_v7  ;;  %v170_v15 = vsub.f32 %v1122_v44, %v1532_v33  ;;  %v1293_v40 = vld [vmem:[%s1978_s0 + $0x90] sm:$0xff]  }
  0x12   :  { %v171_v16 = vsub.f32 %v1123_v49, %v1532_v33  ;;  %v148_v22 = vsub.f32 %v1078_v3, %v1532_v33  ;;  %v1126_v23 = vunpack.c.l.bf16 %v1291_v8  ;;  %v149_v27 = vsub.f32 %v1079_v17, %v1532_v33  ;;  %v1653_v49 = vld [vmem:[%s1978_s0 + $0x38] sm:$0xff]  }
  0x13   :  { %1363 = vmatpush3.bf16.msra.mxu0 %v1438_v12  ;;  %1430 = vmatpush3.bf16.msra.mxu1 %v1438_v12  ;;  %v146_v12 = vsub.f32 %v1074_v39, %v1532_v33  ;;  %v1613_v21 = vmul.f32 %v1537_v36, %v147_v13  ;;  %v1620_v25 = vmul.f32 %v1537_v36, %v170_v15  ;;  %v1127_v28 = vunpack.c.h.bf16 %v1291_v8  ;;  %v1688_v13 = vld [vmem:[%s1980_s3] ss:$0 sm:$0xff] }
  0x14   :  { %1364 = vmatprep.subr.bf16.mxu0 %v1439_v45  ;;  %1423 = vmatprep.subr.bf16.mxu1 %v1439_v45  ;;  %v1623_v26 = vmul.f32 %v1537_v36, %v171_v16  ;;  %v1630_v30 = vmul.f32 %v1537_v36, %v148_v22  ;;  %v172_v31 = vsub.f32 %v1126_v23, %v1532_v33  ;;  %v1082_v32 = vunpack.c.l.bf16 %v1280_v18 }
  0x15   :  { %v1610_v20 = vmul.f32 %v1537_v36, %v146_v12  ;;  %v1083_v34 = vunpack.c.h.bf16 %v1280_v18  ;;  %v1634_v35 = vmul.f32 %v1537_v36, %v149_v27  ;;  %v173_v37 = vsub.f32 %v1127_v28, %v1532_v33 }
  0x16   :  { %v1130_v38 = vunpack.c.l.bf16 %v1292_v24  ;;  %v1131_v39 = vunpack.c.h.bf16 %v1292_v24  ;;  %v1641_v41 = vmul.f32 %v1537_v36, %v172_v31  ;;  %v150_v42 = vsub.f32 %v1082_v32, %v1532_v33 }
  0x17   :  { %1365 = vmatpush3.bf16.msra.mxu0 %v1439_v45  ;;  %1431 = vmatpush3.bf16.msra.mxu1 %v1439_v45  ;;  %v151_v43 = vsub.f32 %v1083_v34, %v1532_v33  ;;  %v1086_v44 = vunpack.c.l.bf16 %v1281_v29  ;;  %v1646_v45 = vmul.f32 %v1537_v36, %v173_v37  ;;  %v1087_v48 = vunpack.c.h.bf16 %v1281_v29 }
  0x18   :  { %1366 = vmatprep.subr.bf16.mxu0 %v1440_v63  ;;  %1424 = vmatprep.subr.bf16.mxu1 %v1440_v63  ;;  %v174_v46 = vsub.f32 %v1130_v38, %v1532_v33  ;;  %v175_v47 = vsub.f32 %v1131_v39, %v1532_v33  ;;  %v1656_v50 = vmul.f32 %v1537_v36, %v150_v42  ;;  %v1134_v58 = vunpack.c.l.bf16 %v1293_v40 }
  0x19   :  { %v1659_v53 = vmul.f32 %v1537_v36, %v151_v43  ;;  %v152_v54 = vsub.f32 %v1086_v44, %v1532_v33  ;;  %v1443_v61 = vpop.eup %1442  ;;  %v153_v1 = vsub.f32 %v1087_v48, %v1532_v33  ;;  %v1135_v2 = vunpack.c.h.bf16 %v1293_v40 }
  0x1a   :  { %v1668_v62 = vmul.f32 %v1537_v36, %v174_v46  ;;  %v1676_v3 = vrot.slane %v1443_v61, %v137_v11  ;;  %v1682_v8 = vsub.f32 %v1134_v58, %v1532_v33  ;;  %v1090_v12 = vunpack.c.l.bf16 %v1653_v49 }
  0x1b   :  { %1367 = vmatpush3.bf16.msra.mxu0 %v1440_v63  ;;  %1432 = vmatpush3.bf16.msra.mxu1 %v1440_v63  ;;  %v1671_v63 = vmul.f32 %v1537_v36, %v175_v47  ;;  %v1679_v7 = vmul.f32 %v1537_v36, %v152_v54  ;;  %v1691_v15 = vmul.f32 %v1537_v36, %v153_v1  ;;  %v1091_v11 = vunpack.c.h.bf16 %v1653_v49  ;;  %v1729_v47 = vld [vmem:[%s1978_s0 + $0x40] sm:$0xff]  }
  0x1c   :  { %1368 = vmatprep.subr.bf16.mxu0 %v1441_v19  ;;  %1425 = vmatprep.subr.bf16.mxu1 %v1441_v19  ;;  %v1694_v4 = vsub.f32 %v1135_v2, %v1532_v33  ;;  %v1138_v16 = vunpack.c.l.bf16 %v1665_v59  ;;  %v246_v17 = vmul.f32 %v1676_v3, %v1548_v51  ;;  %v247_v18 = vmul.f32 %v1676_v3, %v1551_v52 }
  0x1d   :  { %v271_v22 = vmul.f32 %v1676_v3, %v1561_v56  ;;  %v248_v23 = vmul.f32 %v1676_v3, %v1564_v57  ;;  %v249_v24 = vmul.f32 %v1676_v3, %v1568_v60  ;;  %v272_v27 = vmul.f32 %v1676_v3, %v1576_v0 }
  0x1e   :  { %v273_v51 = vmul.f32 %v1676_v3, %v1581_v5  ;;  %v301_v52 = vadd.f32 %v1688_v13, %v246_v17  ;;  %v302_v28 = vadd.f32 %v1688_v13, %v247_v18  ;;  %v250_v44 = vmul.f32 %v1676_v3, %v1584_v6 }
  0x1f   :  { %1369 = vmatpush3.bf16.msra.mxu0 %v1441_v19  ;;  %1433 = vmatpush3.bf16.msra.mxu1 %v1441_v19  ;;  %v270_v19 = vmul.f32 %v1676_v3, %v1558_v55  ;;  %v326_v56 = vadd.f32 %v1688_v13, %v271_v22  ;;  %v303_v29 = vadd.f32 %v1688_v13, %v248_v23  ;;  %v1139_v2 = vunpack.c.h.bf16 %v1665_v59 }
  0x20   :  { %v304_v57 = vadd.f32 %v1688_v13, %v249_v24  ;;  %v327_v60 = vadd.f32 %v1688_v13, %v272_v27  ;;  %v328_v31 = vadd.f32 %v1688_v13, %v273_v51  ;;  %v349_v0 = vmax.f32 %v301_v52, 0.0 }
  0x21   :  { %v325_v55 = vadd.f32 %v1688_v13, %v270_v19  ;;  %v350_v32 = vmax.f32 %v302_v28, 0.0  ;;  %v374_v5 = vmax.f32 %v326_v56, 0.0  ;;  %v351_v37 = vmax.f32 %v303_v29, 0.0 }
  0x22   :  { %v352_v38 = vmax.f32 %v304_v57, 0.0  ;;  %v375_v39 = vmax.f32 %v327_v60, 0.0  ;;  %v376_v40 = vmax.f32 %v328_v31, 0.0  ;;  %v251_v46 = vmul.f32 %v1676_v3, %v1591_v9 }
  0x23   :  { %v373_v34 = vmax.f32 %v325_v55, 0.0  ;;  %v397_v42 = vpack.c.bf16 %v350_v32, %v349_v0  ;;  %v274_v58 = vmul.f32 %v1676_v3, %v1594_v10  ;;  %v275_v61 = vmul.f32 %v1676_v3, %v1599_v14 }
  0x24   :  { %v398_v48 = vpack.c.bf16 %v352_v38, %v351_v37  ;;  %v410_v54 = vpack.c.bf16 %v376_v40, %v375_v39  ;;  %v305_v6 = vadd.f32 %v1688_v13, %v250_v44  ;;  %v306_v1 = vadd.f32 %v1688_v13, %v251_v46 }
  0x25   :  { %v409_v43 = vpack.c.bf16 %v374_v5, %v373_v34  ;;  %1370 = vmatprep.mubr.bf16.mxu0 %v397_v42  ;;  %v252_v9 = vmul.f32 %v1676_v3, %v1610_v20  ;;  %v329_v17 = vadd.f32 %v1688_v13, %v274_v58  ;;  %v330_v10 = vadd.f32 %v1688_v13, %v275_v61 }
  0x26   :  { %1371 = vmatmul.mubr.bf16.vlgmr.msra.gmra.mrb[0].mxu0 %v398_v48  ;;  %v253_v14 = vmul.f32 %v1676_v3, %v1613_v21  ;;  %v1094_v18 = vunpack.c.l.bf16 %v1729_v47  ;;  %v353_v19 = vmax.f32 %v305_v6, 0.0  ;;  %v354_v22 = vmax.f32 %v306_v1, 0.0 }
  0x27   :  { %1394 = vmatprep.mubr.bf16.mxu1 %v409_v43  ;;  %v307_v23 = vadd.f32 %v1688_v13, %v252_v9  ;;  %v276_v20 = vmul.f32 %v1676_v3, %v1620_v25  ;;  %v377_v24 = vmax.f32 %v329_v17, 0.0  ;;  %v378_v27 = vmax.f32 %v330_v10, 0.0 }
  0x28   :  { %1395 = vmatmul.mubr.bf16.vlgmr.msra.gmra.mrb[0].mxu1 %v410_v54  ;;  %v308_v51 = vadd.f32 %v1688_v13, %v253_v14  ;;  %v277_v52 = vmul.f32 %v1676_v3, %v1623_v26  ;;  %v399_v28 = vpack.c.bf16 %v354_v22, %v353_v19  ;;  %v254_v56 = vmul.f32 %v1676_v3, %v1630_v30 }
  0x29   :  { %v355_v55 = vmax.f32 %v307_v23, 0.0  ;;  %v331_v21 = vadd.f32 %v1688_v13, %v276_v20  ;;  %v411_v29 = vpack.c.bf16 %v378_v27, %v377_v24  ;;  %v255_v25 = vmul.f32 %v1676_v3, %v1634_v35 }
  0x2a   :  { %v356_v57 = vmax.f32 %v308_v51, 0.0  ;;  %v332_v60 = vadd.f32 %v1688_v13, %v277_v52  ;;  %1374 = vmatprep.mubr.bf16.mxu0 %v399_v28  ;;  %v309_v0 = vadd.f32 %v1688_v13, %v254_v56  ;;  %v278_v26 = vmul.f32 %v1676_v3, %v1641_v41 }
  0x2b   :  { %v379_v31 = vmax.f32 %v331_v21, 0.0  ;;  %v279_v32 = vmul.f32 %v1676_v3, %v1646_v45  ;;  %1398 = vmatprep.mubr.bf16.mxu1 %v411_v29  ;;  %v310_v5 = vadd.f32 %v1688_v13, %v255_v25  ;;  %v256_v37 = vmul.f32 %v1676_v3, %v1656_v50 }
  0x2c   :  { %v400_v34 = vpack.c.bf16 %v356_v57, %v355_v55  ;;  %v380_v30 = vmax.f32 %v332_v60, 0.0  ;;  %v357_v38 = vmax.f32 %v309_v0, 0.0  ;;  %v333_v35 = vadd.f32 %v1688_v13, %v278_v26 }
  0x2d   :  { %v334_v39 = vadd.f32 %v1688_v13, %v279_v32  ;;  %v257_v40 = vmul.f32 %v1676_v3, %v1659_v53  ;;  %v358_v42 = vmax.f32 %v310_v5, 0.0  ;;  %v311_v45 = vadd.f32 %v1688_v13, %v256_v37  ;;  %v1284_v37 = vld [vmem:[%s1978_s0 + $0x48] sm:$0xff]  }
  0x2e   :  { %1375 = vmatmul.mubr.bf16.gmra.mrb[4].mxu0 %v400_v34  ;;  %v412_v41 = vpack.c.bf16 %v380_v30, %v379_v31  ;;  %v280_v43 = vmul.f32 %v1676_v3, %v1668_v62  ;;  %v381_v44 = vmax.f32 %v333_v35, 0.0  ;;  %v281_v48 = vmul.f32 %v1676_v3, %v1671_v63 }
  0x2f   :  { %v382_v46 = vmax.f32 %v334_v39, 0.0  ;;  %v312_v50 = vadd.f32 %v1688_v13, %v257_v40  ;;  %v401_v54 = vpack.c.bf16 %v358_v42, %v357_v38  ;;  %v359_v58 = vmax.f32 %v311_v45, 0.0 }
  0x30   :  { %1399 = vmatmul.mubr.bf16.gmra.mrb[4].mxu1 %v412_v41  ;;  %v335_v53 = vadd.f32 %v1688_v13, %v280_v43  ;;  %v258_v61 = vmul.f32 %v1676_v3, %v1679_v7  ;;  %v336_v9 = vadd.f32 %v1688_v13, %v281_v48  ;;  %v259_v62 = vmul.f32 %v1676_v3, %v1691_v15 }
  0x31   :  { %v413_v6 = vpack.c.bf16 %v382_v46, %v381_v44  ;;  %v360_v1 = vmax.f32 %v312_v50, 0.0  ;;  %1378 = vmatprep.mubr.bf16.mxu0 %v401_v54  ;;  %v230_v63 = vmul.f32 %v1537_v36, %v1682_v8  ;;  %v231_v14 = vmul.f32 %v1537_v36, %v1694_v4  ;;  %v1296_v50 = vld [vmem:[%s1978_s0 + $0xa8] sm:$0xff]  }
  0x32   :  { %v383_v17 = vmax.f32 %v335_v53, 0.0  ;;  %v313_v10 = vadd.f32 %v1688_v13, %v258_v61  ;;  %v384_v7 = vmax.f32 %v336_v9, 0.0  ;;  %v314_v22 = vadd.f32 %v1688_v13, %v259_v62 }
  0x33   :  { %1402 = vmatprep.mubr.bf16.mxu1 %v413_v6  ;;  %v402_v19 = vpack.c.bf16 %v360_v1, %v359_v58  ;;  %v154_v23 = vsub.f32 %v1090_v12, %v1532_v33  ;;  %v282_v20 = vmul.f32 %v1676_v3, %v230_v63  ;;  %v283_v24 = vmul.f32 %v1676_v3, %v231_v14  ;;  %v1285_v14 = vld [vmem:[%s1978_s0 + $0x50] sm:$0xff]  }
  0x34   :  { %v361_v15 = vmax.f32 %v313_v10, 0.0  ;;  %v155_v8 = vsub.f32 %v1091_v11, %v1532_v33  ;;  %v414_v27 = vpack.c.bf16 %v384_v7, %v383_v17  ;;  %v362_v4 = vmax.f32 %v314_v22, 0.0 }
  0x35   :  { %v208_v51 = vmul.f32 %v1537_v36, %v154_v23  ;;  %v178_v52 = vsub.f32 %v1138_v16, %v1532_v33  ;;  %v337_v12 = vadd.f32 %v1688_v13, %v282_v20  ;;  %v338_v28 = vadd.f32 %v1688_v13, %v283_v24  ;;  %v1295_v16 = vld [vmem:[%s1978_s0 + $0xa0] sm:$0xff]  }
  0x36   :  { %1379 = vmatmul.mubr.bf16.gmra.mrb[8].mxu0 %v402_v19  ;;  %v209_v55 = vmul.f32 %v1537_v36, %v155_v8  ;;  %v179_v49 = vsub.f32 %v1139_v2, %v1532_v33  ;;  %v403_v11 = vpack.c.bf16 %v362_v4, %v361_v15  ;;  %v1095_v29 = vunpack.c.h.bf16 %v1729_v47 }
  0x37   :  { %v260_v21 = vmul.f32 %v1676_v3, %v208_v51  ;;  %v232_v56 = vmul.f32 %v1537_v36, %v178_v52  ;;  %v385_v57 = vmax.f32 %v337_v12, 0.0  ;;  %v386_v60 = vmax.f32 %v338_v28, 0.0  ;;  %v1297_v12 = vld [vmem:[%s1978_s0 + $0xb0] sm:$0xff]  }
  0x38   :  { %1403 = vmatmul.mubr.bf16.gmra.mrb[8].mxu1 %v414_v27  ;;  %v261_v25 = vmul.f32 %v1676_v3, %v209_v55  ;;  %v233_v31 = vmul.f32 %v1537_v36, %v179_v49  ;;  %1382 = vmatprep.mubr.bf16.mxu0 %v403_v11  ;;  %v156_v0 = vsub.f32 %v1094_v18, %v1532_v33  ;;  %v1142_v5 = vunpack.c.l.bf16 %v1295_v16 }
  0x39   :  { %v315_v59 = vadd.f32 %v1688_v13, %v260_v21  ;;  %v284_v2 = vmul.f32 %v1676_v3, %v232_v56  ;;  %v157_v26 = vsub.f32 %v1095_v29, %v1532_v33  ;;  %v415_v32 = vpack.c.bf16 %v386_v60, %v385_v57 }
  0x3a   :  { %v316_v34 = vadd.f32 %v1688_v13, %v261_v25  ;;  %v285_v30 = vmul.f32 %v1676_v3, %v233_v31  ;;  %v210_v39 = vmul.f32 %v1537_v36, %v156_v0  ;;  %v1143_v41 = vunpack.c.h.bf16 %v1295_v16 }
  0x3b   :  { %v363_v38 = vmax.f32 %v315_v59, 0.0  ;;  %v339_v35 = vadd.f32 %v1688_v13, %v284_v2  ;;  %v211_v47 = vmul.f32 %v1537_v36, %v157_v26  ;;  %1406 = vmatprep.mubr.bf16.mxu1 %v415_v32  ;;  %v180_v42 = vsub.f32 %v1142_v5, %v1532_v33  ;;  %v1286_v32 = vld [vmem:[%s1978_s0 + $0x58] sm:$0xff]  }
  0x3c   :  { %v364_v18 = vmax.f32 %v316_v34, 0.0  ;;  %v340_v40 = vadd.f32 %v1688_v13, %v285_v30  ;;  %v262_v43 = vmul.f32 %v1676_v3, %v210_v39  ;;  %v1098_v46 = vunpack.c.l.bf16 %v1284_v37 }
  0x3d   :  { %v387_v45 = vmax.f32 %v339_v35, 0.0  ;;  %v263_v44 = vmul.f32 %v1676_v3, %v211_v47  ;;  %v181_v58 = vsub.f32 %v1143_v41, %v1532_v33  ;;  %v234_v53 = vmul.f32 %v1537_v36, %v180_v42 }
  0x3e   :  { %v404_v48 = vpack.c.bf16 %v364_v18, %v363_v38  ;;  %v388_v54 = vmax.f32 %v340_v40, 0.0  ;;  %v317_v61 = vadd.f32 %v1688_v13, %v262_v43  ;;  %v1099_v1 = vunpack.c.h.bf16 %v1284_v37 }
  0x3f   :  { %v318_v6 = vadd.f32 %v1688_v13, %v263_v44  ;;  %v158_v9 = vsub.f32 %v1098_v46, %v1532_v33  ;;  %v235_v17 = vmul.f32 %v1537_v36, %v181_v58  ;;  %v286_v10 = vmul.f32 %v1676_v3, %v234_v53 }
  0x40   :  { %1383 = vmatmul.mubr.bf16.gmra.mrb[12].mxu0 %v404_v48  ;;  %v416_v62 = vpack.c.bf16 %v388_v54, %v387_v45  ;;  %v1146_v63 = vunpack.c.l.bf16 %v1296_v50  ;;  %v365_v19 = vmax.f32 %v317_v61, 0.0  ;;  %v159_v22 = vsub.f32 %v1099_v1, %v1532_v33  ;;  %v1298_v45 = vld [vmem:[%s1978_s0 + $0xb8] sm:$0xff]  }
  0x41   :  { %v366_v7 = vmax.f32 %v318_v6, 0.0  ;;  %v212_v23 = vmul.f32 %v1537_v36, %v158_v9  ;;  %v287_v15 = vmul.f32 %v1676_v3, %v235_v17  ;;  %v341_v20 = vadd.f32 %v1688_v13, %v286_v10 }
  0x42   :  { %1407 = vmatmul.mubr.bf16.gmra.mrb[12].mxu1 %v416_v62  ;;  %v1147_v24 = vunpack.c.h.bf16 %v1296_v50  ;;  %v182_v8 = vsub.f32 %v1146_v63, %v1532_v33  ;;  %v213_v4 = vmul.f32 %v1537_v36, %v159_v22  ;;  %v1102_v52 = vunpack.c.l.bf16 %v1285_v14 }
  0x43   :  { %v405_v27 = vpack.c.bf16 %v366_v7, %v365_v19  ;;  %v264_v51 = vmul.f32 %v1676_v3, %v212_v23  ;;  %v342_v28 = vadd.f32 %v1688_v13, %v287_v15  ;;  %v389_v55 = vmax.f32 %v341_v20, 0.0 }
  0x44   :  { %v183_v49 = vsub.f32 %v1147_v24, %v1532_v33  ;;  %v236_v11 = vmul.f32 %v1537_v36, %v182_v8  ;;  %v265_v21 = vmul.f32 %v1676_v3, %v213_v4  ;;  %v1103_v29 = vunpack.c.h.bf16 %v1285_v14 }
  0x45   :  { %1386 = vmatprep.mubr.bf16.mxu0 %v405_v27  ;;  %v319_v56 = vadd.f32 %v1688_v13, %v264_v51  ;;  %v160_v16 = vsub.f32 %v1102_v52, %v1532_v33  ;;  %v390_v57 = vmax.f32 %v342_v28, 0.0  ;;  %v1150_v31 = vunpack.c.l.bf16 %v1297_v12 }
  0x46   :  { %v237_v60 = vmul.f32 %v1537_v36, %v183_v49  ;;  %v288_v25 = vmul.f32 %v1676_v3, %v236_v11  ;;  %v320_v59 = vadd.f32 %v1688_v13, %v265_v21  ;;  %v161_v0 = vsub.f32 %v1103_v29, %v1532_v33 }
  0x47   :  { %v367_v2 = vmax.f32 %v319_v56, 0.0  ;;  %v214_v26 = vmul.f32 %v1537_v36, %v160_v16  ;;  %v417_v34 = vpack.c.bf16 %v390_v57, %v389_v55  ;;  %v1151_v37 = vunpack.c.h.bf16 %v1297_v12 }
  0x48   :  { %v289_v30 = vmul.f32 %v1676_v3, %v237_v60  ;;  %v343_v5 = vadd.f32 %v1688_v13, %v288_v25  ;;  %v368_v38 = vmax.f32 %v320_v59, 0.0  ;;  %v215_v35 = vmul.f32 %v1537_v36, %v161_v0 }
  0x49   :  { %v266_v39 = vmul.f32 %v1676_v3, %v214_v26  ;;  %v184_v47 = vsub.f32 %v1150_v31, %v1532_v33  ;;  %1410 = vmatprep.mubr.bf16.mxu1 %v417_v34  ;;  %v185_v41 = vsub.f32 %v1151_v37, %v1532_v33  ;;  %v1106_v42 = vunpack.c.l.bf16 %v1286_v32 }
  0x4a   :  { %v344_v18 = vadd.f32 %v1688_v13, %v289_v30  ;;  %v391_v40 = vmax.f32 %v343_v5, 0.0  ;;  %v406_v43 = vpack.c.bf16 %v368_v38, %v367_v2  ;;  %v267_v44 = vmul.f32 %v1676_v3, %v215_v35 }
  0x4b   :  { %v321_v46 = vadd.f32 %v1688_v13, %v266_v39  ;;  %v238_v50 = vmul.f32 %v1537_v36, %v184_v47  ;;  %v239_v54 = vmul.f32 %v1537_v36, %v185_v41  ;;  %v1107_v58 = vunpack.c.h.bf16 %v1286_v32 }
  0x4c   :  { %v392_v48 = vmax.f32 %v344_v18, 0.0  ;;  %v162_v53 = vsub.f32 %v1106_v42, %v1532_v33  ;;  %1387 = vmatmul.mubr.bf16.gmra.mrb[16].mxu0 %v406_v43  ;;  %v322_v61 = vadd.f32 %v1688_v13, %v267_v44  ;;  %v1154_v9 = vunpack.c.l.bf16 %v1298_v45 }
  0x4d   :  { %v369_v6 = vmax.f32 %v321_v46, 0.0  ;;  %v290_v1 = vmul.f32 %v1676_v3, %v238_v50  ;;  %v291_v17 = vmul.f32 %v1676_v3, %v239_v54  ;;  %v163_v10 = vsub.f32 %v1107_v58, %v1532_v33 }
  0x4e   :  { %v418_v62 = vpack.c.bf16 %v392_v48, %v391_v40  ;;  %v216_v63 = vmul.f32 %v1537_v36, %v162_v53  ;;  %v370_v14 = vmax.f32 %v322_v61, 0.0  ;;  %v1155_v7 = vunpack.c.h.bf16 %v1298_v45 }
  0x4f   :  { %v345_v19 = vadd.f32 %v1688_v13, %v290_v1  ;;  %v186_v22 = vsub.f32 %v1154_v9, %v1532_v33  ;;  %v346_v23 = vadd.f32 %v1688_v13, %v291_v17  ;;  %v217_v15 = vmul.f32 %v1537_v36, %v163_v10 }
  0x50   :  { %1411 = vmatmul.mubr.bf16.gmra.mrb[16].mxu1 %v418_v62  ;;  %v268_v20 = vmul.f32 %v1676_v3, %v216_v63  ;;  %v407_v24 = vpack.c.bf16 %v370_v14, %v369_v6  ;;  %v187_v27 = vsub.f32 %v1155_v7, %v1532_v33 }
  0x51   :  { %v393_v8 = vmax.f32 %v345_v19, 0.0  ;;  %v240_v4 = vmul.f32 %v1537_v36, %v186_v22  ;;  %v394_v51 = vmax.f32 %v346_v23, 0.0  ;;  %v269_v52 = vmul.f32 %v1676_v3, %v217_v15 }
  0x52   :  { %v323_v12 = vadd.f32 %v1688_v13, %v268_v20  ;;  %1390 = vmatprep.mubr.bf16.mxu0 %v407_v24  ;;  %v241_v28 = vmul.f32 %v1537_v36, %v187_v27 }
  0x53   :  { %v292_v55 = vmul.f32 %v1676_v3, %v240_v4  ;;  %v419_v49 = vpack.c.bf16 %v394_v51, %v393_v8  ;;  %v324_v11 = vadd.f32 %v1688_v13, %v269_v52 }
  0x54   :  { %v371_v21 = vmax.f32 %v323_v12, 0.0  ;;  %v293_v56 = vmul.f32 %v1676_v3, %v241_v28 }
  0x55   :  { %v347_v33 = vadd.f32 %v1688_v13, %v292_v55  ;;  %1414 = vmatprep.mubr.bf16.mxu1 %v419_v49  ;;  %v372_v29 = vmax.f32 %v324_v11, 0.0 }
  0x56   :  { %v348_v16 = vadd.f32 %v1688_v13, %v293_v56 }
  0x57   :  { %v395_v57 = vmax.f32 %v347_v33, 0.0  ;;  %v408_v60 = vpack.c.bf16 %v372_v29, %v371_v21 }
  0x58   :  { %v396_v25 = vmax.f32 %v348_v16, 0.0 }
  0x59   :  { %1391 = vmatmul.mubr.bf16.gmra.mrb[20].mxu0 %v408_v60 }
  0x5a   :  { %v420_v31 = vpack.c.bf16 %v396_v25, %v395_v57 }
  0x5c   :  { %1415 = vmatmul.mubr.bf16.gmra.mrb[20].mxu1 %v420_v31 }
  0xf9   :  { %v1372_v36 = vpop.f32.mrb[0].mxu0 }
  0xfa   :  { %v519_v2 = vpop.f32.mrb[1].mxu0 }
  0xfb   :  { %v1396_v59 = vpop.f32.mrb[0].mxu1  ;;  %v1373_v26 = vpop.f32.mrb[2].mxu0 }
  0xfc   :  { %v615_v0 = vpop.f32.mrb[1].mxu1  ;;  %v1164_v34 = vpack.c.bf16 %v1373_v26, %v1372_v36  ;;  %v522_v30 = vpop.f32.mrb[3].mxu0 }
  0xfd   :  { %v1397_v32 = vpop.f32.mrb[2].mxu1  ;;  %v1159_v37 = vpack.c.bf16 %v522_v30, %v519_v2 }
  0xfe   :  { %v1224_v3 = vpack.c.bf16 %v1397_v32, %v1396_v59  ;;  %v618_v5 = vpop.f32.mrb[3].mxu1  ;;  %1299 = vst [vmem:[%s1981_s6 + $0x8] sm:$0xff] %v1164_v34  }
  0xff   :  { %v1219_v38 = vpack.c.bf16 %v618_v5, %v615_v0  ;;  %1160 = vst [vmem:[%s1981_s6] sm:$0xff] %v1159_v37  }
 0x100   :  { %1311 = vst [vmem:[%s1981_s6 + $0x68] sm:$0xff] %v1224_v3  }
 0x101   :  { %1310 = vst [vmem:[%s1981_s6 + $0x60] sm:$0xff] %v1219_v38   ;;  %v1376_v13 = vpop.f32.mrb[4].mxu0 }
 0x102   :  { %v535_v35 = vpop.f32.mrb[5].mxu0 }
 0x103   :  { %v1400_v39 = vpop.f32.mrb[4].mxu1  ;;  %v1377_v47 = vpop.f32.mrb[6].mxu0 }
 0x104   :  { %v631_v18 = vpop.f32.mrb[5].mxu1  ;;  %v1174_v40 = vpack.c.bf16 %v1377_v47, %v1376_v13  ;;  %v538_v41 = vpop.f32.mrb[7].mxu0 }
 0x105   :  { %v1401_v42 = vpop.f32.mrb[6].mxu1  ;;  %v1169_v45 = vpack.c.bf16 %v538_v41, %v535_v35 }
 0x106   :  { %1301 = vst [vmem:[%s1981_s6 + $0x18] sm:$0xff] %v1174_v40   ;;  %v1234_v43 = vpack.c.bf16 %v1401_v42, %v1400_v39  ;;  %v634_v44 = vpop.f32.mrb[7].mxu1 }
 0x107   :  { %1300 = vst [vmem:[%s1981_s6 + $0x10] sm:$0xff] %v1169_v45   ;;  %v1229_v46 = vpack.c.bf16 %v634_v44, %v631_v18 }
 0x108   :  { %1313 = vst [vmem:[%s1981_s6 + $0x78] sm:$0xff] %v1234_v43  }
 0x109   :  { %1312 = vst [vmem:[%s1981_s6 + $0x70] sm:$0xff] %v1229_v46   ;;  %v1380_v50 = vpop.f32.mrb[8].mxu0 }
 0x10a   :  { %v551_v48 = vpop.f32.mrb[9].mxu0 }
 0x10b   :  { %v1404_v54 = vpop.f32.mrb[8].mxu1  ;;  %v1381_v58 = vpop.f32.mrb[10].mxu0 }
 0x10c   :  { %v647_v53 = vpop.f32.mrb[9].mxu1  ;;  %v1184_v61 = vpack.c.bf16 %v1381_v58, %v1380_v50  ;;  %v554_v6 = vpop.f32.mrb[11].mxu0 }
 0x10d   :  { %v1405_v1 = vpop.f32.mrb[10].mxu1  ;;  %v1179_v9 = vpack.c.bf16 %v554_v6, %v551_v48 }
 0x10e   :  { %1303 = vst [vmem:[%s1981_s6 + $0x28] sm:$0xff] %v1184_v61   ;;  %v1244_v62 = vpack.c.bf16 %v1405_v1, %v1404_v54  ;;  %v650_v17 = vpop.f32.mrb[11].mxu1 }
 0x10f   :  { %1302 = vst [vmem:[%s1981_s6 + $0x20] sm:$0xff] %v1179_v9   ;;  %v1239_v10 = vpack.c.bf16 %v650_v17, %v647_v53 }
 0x110   :  { %1315 = vst [vmem:[%s1981_s6 + $0x88] sm:$0xff] %v1244_v62  }
 0x111   :  { %1314 = vst [vmem:[%s1981_s6 + $0x80] sm:$0xff] %v1239_v10  }
 0x113   :  { %v1384_v63 = vpop.f32.mrb[12].mxu0 }
 0x114   :  { %v567_v14 = vpop.f32.mrb[13].mxu0 }
 0x115   :  { %v1408_v19 = vpop.f32.mrb[12].mxu1  ;;  %v1385_v7 = vpop.f32.mrb[14].mxu0 }
 0x116   :  { %v663_v22 = vpop.f32.mrb[13].mxu1  ;;  %v1194_v23 = vpack.c.bf16 %v1385_v7, %v1384_v63  ;;  %v570_v15 = vpop.f32.mrb[15].mxu0 }
 0x117   :  { %v1409_v20 = vpop.f32.mrb[14].mxu1  ;;  %v1189_v24 = vpack.c.bf16 %v570_v15, %v567_v14 }
 0x118   :  { %1305 = vst [vmem:[%s1981_s6 + $0x38] sm:$0xff] %v1194_v23   ;;  %v1254_v8 = vpack.c.bf16 %v1409_v20, %v1408_v19  ;;  %v666_v27 = vpop.f32.mrb[15].mxu1 }
 0x119   :  { %1304 = vst [vmem:[%s1981_s6 + $0x30] sm:$0xff] %v1189_v24   ;;  %v1249_v4 = vpack.c.bf16 %v666_v27, %v663_v22 }
 0x11a   :  { %1317 = vst [vmem:[%s1981_s6 + $0x98] sm:$0xff] %v1254_v8  }
 0x11b   :  { %1316 = vst [vmem:[%s1981_s6 + $0x90] sm:$0xff] %v1249_v4  }
 0x11f   :  { %v1388_v51 = vpop.f32.mrb[16].mxu0 }
 0x120   :  { %v583_v52 = vpop.f32.mrb[17].mxu0 }
 0x121   :  { %v1389_v12 = vpop.f32.mrb[18].mxu0 }
 0x122   :  { %v1204_v55 = vpack.c.bf16 %v1389_v12, %v1388_v51  ;;  %v586_v49 = vpop.f32.mrb[19].mxu0 }
 0x123   :  { %v1412_v28 = vpop.f32.mrb[16].mxu1  ;;  %v1199_v21 = vpack.c.bf16 %v586_v49, %v583_v52 }
 0x124   :  { %v679_v11 = vpop.f32.mrb[17].mxu1  ;;  %1307 = vst [vmem:[%s1981_s6 + $0x48] sm:$0xff] %v1204_v55  }
 0x125   :  { %v1413_v56 = vpop.f32.mrb[18].mxu1  ;;  %1306 = vst [vmem:[%s1981_s6 + $0x40] sm:$0xff] %v1199_v21  }
 0x126   :  { %v1264_v33 = vpack.c.bf16 %v1413_v56, %v1412_v28  ;;  %v682_v29 = vpop.f32.mrb[19].mxu1 }
 0x127   :  { %v1259_v16 = vpack.c.bf16 %v682_v29, %v679_v11 }
 0x128   :  { %1319 = vst [vmem:[%s1981_s6 + $0xa8] sm:$0xff] %v1264_v33  }
 0x129   :  { %1318 = vst [vmem:[%s1981_s6 + $0xa0] sm:$0xff] %v1259_v16  }
 0x12c   :  { %v1392_v57 = vpop.f32.mrb[20].mxu0 }
 0x12d   :  { %v599_v60 = vpop.f32.mrb[21].mxu0 }
 0x12e   :  { %v1393_v25 = vpop.f32.mrb[22].mxu0 }
 0x12f   :  { %v1416_v31 = vpop.f32.mrb[20].mxu1  ;;  %v1214_v36 = vpack.c.bf16 %v1393_v25, %v1392_v57  ;;  %v602_v59 = vpop.f32.mrb[23].mxu0 }
 0x130   :  { %v695_v2 = vpop.f32.mrb[21].mxu1  ;;  %v1209_v0 = vpack.c.bf16 %v602_v59, %v599_v60 }
 0x131   :  { %1309 = vst [vmem:[%s1981_s6 + $0x58] sm:$0xff] %v1214_v36   ;;  %v1417_v26 = vpop.f32.mrb[22].mxu1 }
 0x132   :  { %v1274_v32 = vpack.c.bf16 %v1417_v26, %v1416_v31  ;;  %1308 = vst [vmem:[%s1981_s6 + $0x50] sm:$0xff] %v1209_v0   ;;  %v698_v34 = vpop.f32.mrb[23].mxu1 }
 0x133   :  { %v1269_v3 = vpack.c.bf16 %v698_v34, %v695_v2 }
 0x134   :  { %1321 = vst [vmem:[%s1981_s6 + $0xb8] sm:$0xff] %v1274_v32  }
 0x135   :  { %1320 = vst [vmem:[%s1981_s6 + $0xb0] sm:$0xff] %v1269_v3  }

// kernel: drgt_forward.7
= control target key start
LH: loop header
LB: loop body
LE: loop exit
PB: predicated region body
PF: predicated region fallthrough
CT: control target
= control target key end

     0   :  { %v3264_v0 = vmov 0   ;;  %vm1443_vm0 = vcmask 64512   ;;  %s4062_s1 = inlined_call_operand.vmem [shape: bf16[384,128], index: 1, kind: input, shape index: {}]   ;;  %s4063_s0 = inlined_call_operand.vmem [shape: bf16[384,384], index: 0, kind: input, shape index: {}]   ;;  %s4064_s3 = inlined_call_operand.vmem [shape: f32[8,128], index: 3, kind: input, shape index: {}]   ;;  %s4065_s2 = inlined_call_operand.vmem [shape: f32[384,8], index: 2, kind: input, shape index: {}]   ;;  %s4066_s5 = inlined_call_operand.vmem [shape: f32[8,128], index: 5, kind: output, shape index: {1}]   ;;  %s4067_s4 = inlined_call_operand.vmem [shape: bf16[384,128], index: 4, kind: output, shape index: {0}]  }
   0x1   :  { %797 = vmatprep.subr.bf16.mxu0 %v3264_v0  ;;  %v3144_v1 = vld [vmem:[%s4062_s1] sm:$0xff]   ;;  %v3146_v3 = vld [vmem:[%s4062_s1 + $0x8] sm:$0xff]   ;;  %v3149_v5 = vld [vmem:[%s4062_s1 + $0x90] sm:$0xff]  }
   0x2   :  { %v3145_v2 = vld [vmem:[%s4062_s1 + $0x80] sm:$0xff]   ;;  %798 = vmatpush1.bf16.msra.mxu0 %v3144_v1  ;;  %v3147_v4 = vld [vmem:[%s4062_s1 + $0x88] sm:$0xff]   ;;  %v3148_v6 = vld [vmem:[%s4062_s1 + $0x10] sm:$0xff]  }
   0x3   :  { %3004 = vmatprep.subr.bf16.mxu1 %v3145_v2  ;;  %799 = vmatprep.subr.bf16.mxu0 %v3264_v0  ;;  %v3151_v7 = vld [vmem:[%s4062_s1 + $0x98] sm:$0xff]   ;;  %v3153_v9 = vld [vmem:[%s4062_s1 + $0xa0] sm:$0xff]   ;;  %v3160_v11 = vld [vmem:[%s4063_s0 + $0x8] ss:$12 sps:$4 sm:$0xff]  }
   0x4   :  { %3005 = vmatpush3.bf16.msra.mxu1 %v3145_v2  ;;  %v3150_v8 = vld [vmem:[%s4062_s1 + $0x18] sm:$0xff]   ;;  %v3152_v10 = vld [vmem:[%s4062_s1 + $0x20] sm:$0xff]   ;;  %v3155_v12 = vld [vmem:[%s4062_s1 + $0xa8] sm:$0xff]   ;;  %3020 = vmatprep.mubr.bf16.mxu1 %v3160_v11 }
   0x5   :  { %3006 = vmatprep.subr.bf16.mxu1 %v3147_v4  ;;  %v3154_v13 = vld [vmem:[%s4062_s1 + $0x28] sm:$0xff]   ;;  %v3157_v14 = vld [vmem:[%s4062_s1 + $0xb0] sm:$0xff]   ;;  %v3159_v16 = vld [vmem:[%s4062_s1 + $0xb8] sm:$0xff]  }
   0x6   :  { %800 = vmatpush1.bf16.msra.mxu0 %v3146_v3  ;;  %v3156_v15 = vld [vmem:[%s4062_s1 + $0x30] sm:$0xff]   ;;  %v3158_v17 = vld [vmem:[%s4062_s1 + $0x38] sm:$0xff]   ;;  %v3161_v18 = vld [vmem:[%s4062_s1 + $0x40] sm:$0xff]  }
   0x7   :  { %801 = vmatprep.subr.bf16.mxu0 %v3264_v0  ;;  %v3162_v19 = vld [vmem:[%s4063_s0 + $0x20] ss:$12 sps:$4 sm:$0xff]   ;;  %v3164_v21 = vld [vmem:[%s4063_s0 + $0x38] ss:$12 sps:$4 sm:$0xff]   ;;  %v3165_v24 = vld [vmem:[%s4062_s1 + $0x50] sm:$0xff]  }
   0x8   :  { %3007 = vmatpush3.bf16.msra.mxu1 %v3147_v4  ;;  %v1442_v20 = vld [vmem:[%s4064_s3] sm:$0xff]  ;;  %v3163_v23 = vld [vmem:[%s4062_s1 + $0x48] sm:$0xff]   ;;  %v3166_v25 = vld [vmem:[%s4063_s0 + $0x50] ss:$12 sps:$4 sm:$0xff]  }
   0x9   :  { %3008 = vmatprep.subr.bf16.mxu1 %v3149_v5  ;;  %v3178_v22 = vld [vmem:[%s4063_s0 + $0x4] ss:$12 sps:$4 sm:$0xff]   ;;  %v3168_v26 = vld [vmem:[%s4063_s0 + $0x68] ss:$12 sps:$4 sm:$0xff]   ;;  %v3167_v27 = vld [vmem:[%s4062_s1 + $0x58] sm:$0xff]  }
   0xa   :  { %802 = vmatpush1.bf16.msra.mxu0 %v3148_v6  ;;  %829 = vmatprep.mubr.bf16.mxu0 %v3178_v22  ;;  %v3169_v28 = vld [vmem:[%s4062_s1 + $0x60] sm:$0xff]   ;;  %v3171_v31 = vld [vmem:[%s4062_s1 + $0x68] sm:$0xff]   ;;  %v3173_v32 = vld [vmem:[%s4062_s1 + $0x70] sm:$0xff]  }
   0xb   :  { %803 = vmatprep.subr.bf16.mxu0 %v3264_v0  ;;  %v3170_v29 = vld [vmem:[%s4063_s0 + $0x80] ss:$12 sps:$4 sm:$0xff]   ;;  %v3172_v30 = vld [vmem:[%s4063_s0 + $0x98] ss:$12 sps:$4 sm:$0xff]   ;;  %v3174_v33 = vld [vmem:[%s4063_s0 + $0xb0] ss:$12 sps:$4 sm:$0xff]  }
   0xc   :  { %3009 = vmatpush3.bf16.msra.mxu1 %v3149_v5  ;;  %v3179_v34 = vld [vmem:[%s4063_s0 + $0xc8] ss:$12 sps:$4 sm:$0xff]   ;;  %v3175_v35 = vld [vmem:[%s4062_s1 + $0x78] sm:$0xff]   ;;  %v3176_v36 = vld [vmem:[%s4063_s0] ss:$12 sps:$4 sm:$0xff]  }
   0xd   :  { %3010 = vmatprep.subr.bf16.mxu1 %v3151_v7  ;;  %v3181_v37 = vld [vmem:[%s4063_s0 + $0x1c] ss:$12 sps:$4 sm:$0xff]   ;;  %v3180_v38 = vld [vmem:[%s4063_s0 + $0xe0] ss:$12 sps:$4 sm:$0xff]   ;;  %v3184_v39 = vld [vmem:[%s4063_s0 + $0xf8] ss:$12 sps:$4 sm:$0xff]  }
   0xe   :  { %804 = vmatpush1.bf16.msra.mxu0 %v3150_v8  ;;  %v3183_v40 = vld [vmem:[%s4063_s0 + $0x18] ss:$12 sps:$4 sm:$0xff]   ;;  %v3186_v41 = vld [vmem:[%s4063_s0 + $0x34] ss:$12 sps:$4 sm:$0xff]   ;;  %v3185_v42 = vld [vmem:[%s4063_s0 + $0x110] ss:$12 sps:$4 sm:$0xff]  }
   0xf   :  { %805 = vmatprep.subr.bf16.mxu0 %v3264_v0  ;;  %v3189_v43 = vld [vmem:[%s4063_s0 + $0x128] ss:$12 sps:$4 sm:$0xff]   ;;  %v3188_v44 = vld [vmem:[%s4063_s0 + $0x30] ss:$12 sps:$4 sm:$0xff]   ;;  %v3191_v45 = vld [vmem:[%s4063_s0 + $0x4c] ss:$12 sps:$4 sm:$0xff]  }
  0x10   :  { %3011 = vmatpush3.bf16.msra.mxu1 %v3151_v7  ;;  %v3190_v46 = vld [vmem:[%s4063_s0 + $0x140] ss:$12 sps:$4 sm:$0xff]   ;;  %v3194_v47 = vld [vmem:[%s4063_s0 + $0x158] ss:$12 sps:$4 sm:$0xff]   ;;  %v3193_v48 = vld [vmem:[%s4063_s0 + $0x48] ss:$12 sps:$4 sm:$0xff]  }
  0x11   :  { %3012 = vmatprep.subr.bf16.mxu1 %v3153_v9  ;;  %v3196_v49 = vld [vmem:[%s4063_s0 + $0x64] ss:$12 sps:$4 sm:$0xff]   ;;  %v3199_v51 = vld [vmem:[%s4063_s0 + $0x188] ss:$12 sps:$4 sm:$0xff]   ;;  %v3198_v52 = vld [vmem:[%s4063_s0 + $0x60] ss:$12 sps:$4 sm:$0xff]  }
  0x12   :  { %806 = vmatpush1.bf16.msra.mxu0 %v3152_v10  ;;  %v3195_v50 = vld [vmem:[%s4063_s0 + $0x170] ss:$12 sps:$4 sm:$0xff]   ;;  %v3200_v54 = vld [vmem:[%s4063_s0 + $0x1a0] ss:$12 sps:$4 sm:$0xff]   ;;  %v3204_v55 = vld [vmem:[%s4063_s0 + $0x1b8] ss:$12 sps:$4 sm:$0xff]  }
  0x13   :  { %807 = vmatprep.subr.bf16.mxu0 %v3264_v0  ;;  %v3201_v53 = vld [vmem:[%s4063_s0 + $0x7c] ss:$12 sps:$4 sm:$0xff]   ;;  %v3203_v56 = vld [vmem:[%s4063_s0 + $0x78] ss:$12 sps:$4 sm:$0xff]   ;;  %v3206_v57 = vld [vmem:[%s4063_s0 + $0x94] ss:$12 sps:$4 sm:$0xff]  }
  0x14   :  { %3013 = vmatpush3.bf16.msra.mxu1 %v3153_v9  ;;  %v3205_v58 = vld [vmem:[%s4063_s0 + $0x1d0] ss:$12 sps:$4 sm:$0xff]   ;;  %v3209_v59 = vld [vmem:[%s4063_s0 + $0x1e8] ss:$12 sps:$4 sm:$0xff]   ;;  %v3211_v61 = vld [vmem:[%s4063_s0 + $0xac] ss:$12 sps:$4 sm:$0xff]  }
  0x15   :  { %3014 = vmatprep.subr.bf16.mxu1 %v3155_v12  ;;  %v3208_v60 = vld [vmem:[%s4063_s0 + $0x90] ss:$12 sps:$4 sm:$0xff]   ;;  %v3210_v62 = vld [vmem:[%s4063_s0 + $0x200] ss:$12 sps:$4 sm:$0xff]   ;;  %v3214_v63 = vld [vmem:[%s4063_s0 + $0x218] ss:$12 sps:$4 sm:$0xff]  }
  0x16   :  { %808 = vmatpush1.bf16.msra.mxu0 %v3154_v13  ;;  %v3216_v1 = vld [vmem:[%s4063_s0 + $0xc4] ss:$12 sps:$4 sm:$0xff]   ;;  %v3218_v4 = vld [vmem:[%s4063_s0 + $0xc0] ss:$12 sps:$4 sm:$0xff]   ;;  %v3219_v5 = vld [vmem:[%s4063_s0 + $0xdc] ss:$12 sps:$4 sm:$0xff]  }
  0x17   :  { %809 = vmatprep.subr.bf16.mxu0 %v3264_v0  ;;  %v3215_v2 = vld [vmem:[%s4063_s0 + $0x230] ss:$12 sps:$4 sm:$0xff]   ;;  %v1394_v3 = vld [vmem:[%s4065_s2] sm:$0xff]  ;;  %v1395_v6 = vld [vmem:[%s4065_s2 + $0x8] sm:$0xff] }
  0x18   :  { %3015 = vmatpush3.bf16.msra.mxu1 %v3155_v12  ;;  %v1396_v7 = vld [vmem:[%s4065_s2 + $0x10] sm:$0xff]  ;;  %v1397_v8 = vld [vmem:[%s4065_s2 + $0x18] sm:$0xff]  ;;  %v1398_v10 = vld [vmem:[%s4065_s2 + $0x20] sm:$0xff] }
  0x19   :  { %3016 = vmatprep.subr.bf16.mxu1 %v3157_v14  ;;  %v3221_v9 = vld [vmem:[%s4063_s0 + $0xd8] ss:$12 sps:$4 sm:$0xff]   ;;  %v3222_v11 = vld [vmem:[%s4063_s0 + $0xf4] ss:$12 sps:$4 sm:$0xff]   ;;  %v1399_v12 = vld [vmem:[%s4065_s2 + $0x28] sm:$0xff] }
  0x1a   :  { %810 = vmatpush1.bf16.msra.mxu0 %v3156_v15  ;;  %v1400_v13 = vld [vmem:[%s4065_s2 + $0x30] sm:$0xff]  ;;  %v1406_v22 = vld [vmem:[%s4065_s2 + $0x60] sm:$0xff] }
  0x1b   :  { %811 = vmatprep.subr.bf16.mxu0 %v3264_v0  ;;  %v3224_v15 = vld [vmem:[%s4063_s0 + $0xf0] ss:$12 sps:$4 sm:$0xff]  }
  0x1c   :  { %3017 = vmatpush3.bf16.msra.mxu1 %v3157_v14  ;;  %v1401_v14 = vld [vmem:[%s4065_s2 + $0x38] sm:$0xff] }
  0x1d   :  { %3018 = vmatprep.subr.bf16.mxu1 %v3159_v16 }
  0x1e   :  { %812 = vmatpush1.bf16.msra.mxu0 %v3158_v17  ;;  %v3225_v17 = vld [vmem:[%s4063_s0 + $0x10c] ss:$12 sps:$4 sm:$0xff]  }
  0x1f   :  { %813 = vmatprep.subr.bf16.mxu0 %v3264_v0 }
  0x20   :  { %3019 = vmatpush3.bf16.msra.mxu1 %v3159_v16  ;;  %v1402_v16 = vld [vmem:[%s4065_s2 + $0x40] sm:$0xff] }
  0x21   :  { %3068 = vmatprep.subr.mxu1 %v1442_v20 }
  0x22   :  { %814 = vmatpush1.bf16.msra.mxu0 %v3161_v18  ;;  %v1403_v18 = vld [vmem:[%s4065_s2 + $0x48] sm:$0xff] }
  0x23   :  { %3021 = vmatmul.mubr.bf16.vlgmr.msra.gmra.mrb[0].mxu1 %v3162_v19  ;;  %815 = vmatprep.subr.bf16.mxu0 %v3264_v0  ;;  %v1404_v19 = vld [vmem:[%s4065_s2 + $0x50] sm:$0xff] }
  0x24   :  { %3024 = vmatprep.mubr.bf16.mxu1 %v3164_v21  ;;  %3069 = vmatpush3.msra.mxu1 %v1442_v20  ;;  %v1405_v20 = vld [vmem:[%s4065_s2 + $0x58] sm:$0xff]  ;;  %v3227_v21 = vld [vmem:[%s4063_s0 + $0x108] ss:$12 sps:$4 sm:$0xff]  }
  0x26   :  { %816 = vmatpush1.bf16.msra.mxu0 %v3163_v23  ;;  %v3228_v23 = vld [vmem:[%s4063_s0 + $0x124] ss:$12 sps:$4 sm:$0xff]  }
  0x27   :  { %817 = vmatprep.subr.bf16.mxu0 %v3264_v0 }
  0x2a   :  { %818 = vmatpush1.bf16.msra.mxu0 %v3165_v24  ;;  %v1407_v24 = vld [vmem:[%s4065_s2 + $0x68] sm:$0xff] }
  0x2b   :  { %3025 = vmatmul.mubr.bf16.gmra.mrb[4].mxu1 %v3166_v25  ;;  %819 = vmatprep.subr.bf16.mxu0 %v3264_v0  ;;  %v1408_v25 = vld [vmem:[%s4065_s2 + $0x70] sm:$0xff] }
  0x2c   :  { %3028 = vmatprep.mubr.bf16.mxu1 %v3168_v26  ;;  %v1409_v26 = vld [vmem:[%s4065_s2 + $0x78] sm:$0xff] }
  0x2e   :  { %820 = vmatpush1.bf16.msra.mxu0 %v3167_v27  ;;  %v3230_v27 = vld [vmem:[%s4063_s0 + $0x120] ss:$12 sps:$4 sm:$0xff]  }
  0x2f   :  { %821 = vmatprep.subr.bf16.mxu0 %v3264_v0 }
  0x32   :  { %822 = vmatpush1.bf16.msra.mxu0 %v3169_v28  ;;  %v1410_v28 = vld [vmem:[%s4065_s2 + $0x80] sm:$0xff] }
  0x33   :  { %3029 = vmatmul.mubr.bf16.gmra.mrb[8].mxu1 %v3170_v29  ;;  %823 = vmatprep.subr.bf16.mxu0 %v3264_v0  ;;  %v3231_v29 = vld [vmem:[%s4063_s0 + $0x13c] ss:$12 sps:$4 sm:$0xff]  }
  0x34   :  { %3032 = vmatprep.mubr.bf16.mxu1 %v3172_v30  ;;  %v1411_v30 = vld [vmem:[%s4065_s2 + $0x88] sm:$0xff] }
  0x36   :  { %824 = vmatpush1.bf16.msra.mxu0 %v3171_v31  ;;  %v1412_v31 = vld [vmem:[%s4065_s2 + $0x90] sm:$0xff] }
  0x37   :  { %825 = vmatprep.subr.bf16.mxu0 %v3264_v0 }
  0x3a   :  { %826 = vmatpush1.bf16.msra.mxu0 %v3173_v32  ;;  %v1413_v32 = vld [vmem:[%s4065_s2 + $0x98] sm:$0xff] }
  0x3b   :  { %3033 = vmatmul.mubr.bf16.gmra.mrb[12].mxu1 %v3174_v33  ;;  %827 = vmatprep.subr.bf16.mxu0 %v3264_v0  ;;  %v3213_v0 = vld [vmem:[%s4063_s0 + $0xa8] ss:$12 sps:$4 sm:$0xff]   ;;  %v3233_v33 = vld [vmem:[%s4063_s0 + $0x138] ss:$12 sps:$4 sm:$0xff]  }
  0x3c   :  { %3036 = vmatprep.mubr.bf16.mxu1 %v3179_v34  ;;  %v1414_v34 = vld [vmem:[%s4065_s2 + $0xa0] sm:$0xff] }
  0x3e   :  { %828 = vmatpush1.bf16.msra.mxu0 %v3175_v35  ;;  %v3234_v35 = vld [vmem:[%s4063_s0 + $0x154] ss:$12 sps:$4 sm:$0xff]  }
  0x41   :  { %830 = vmatmul.mubr.bf16.vlgmr.msra.gmra.mrb[0].mxu0 %v3176_v36  ;;  %v1415_v36 = vld [vmem:[%s4065_s2 + $0xa8] sm:$0xff] }
  0x42   :  { %837 = vmatprep.mubr.bf16.mxu0 %v3181_v37  ;;  %v1416_v37 = vld [vmem:[%s4065_s2 + $0xb0] sm:$0xff] }
  0x43   :  { %3037 = vmatmul.mubr.bf16.gmra.mrb[16].mxu1 %v3180_v38  ;;  %v1417_v38 = vld [vmem:[%s4065_s2 + $0xb8] sm:$0xff] }
  0x44   :  { %3040 = vmatprep.mubr.bf16.mxu1 %v3184_v39  ;;  %v3236_v39 = vld [vmem:[%s4063_s0 + $0x150] ss:$12 sps:$4 sm:$0xff]  }
  0x49   :  { %838 = vmatmul.mubr.bf16.gmra.mrb[4].mxu0 %v3183_v40  ;;  %v1418_v40 = vld [vmem:[%s4065_s2 + $0xc0] sm:$0xff] }
  0x4a   :  { %845 = vmatprep.mubr.bf16.mxu0 %v3186_v41  ;;  %v3237_v41 = vld [vmem:[%s4063_s0 + $0x16c] ss:$12 sps:$4 sm:$0xff]  }
  0x4b   :  { %3041 = vmatmul.mubr.bf16.gmra.mrb[20].mxu1 %v3185_v42  ;;  %v1419_v42 = vld [vmem:[%s4065_s2 + $0xc8] sm:$0xff] }
  0x4c   :  { %3044 = vmatprep.mubr.bf16.mxu1 %v3189_v43  ;;  %v1420_v43 = vld [vmem:[%s4065_s2 + $0xd0] sm:$0xff] }
  0x51   :  { %846 = vmatmul.mubr.bf16.gmra.mrb[8].mxu0 %v3188_v44  ;;  %v1421_v44 = vld [vmem:[%s4065_s2 + $0xd8] sm:$0xff] }
  0x52   :  { %853 = vmatprep.mubr.bf16.mxu0 %v3191_v45  ;;  %v3239_v45 = vld [vmem:[%s4063_s0 + $0x168] ss:$12 sps:$4 sm:$0xff]  }
  0x53   :  { %3045 = vmatmul.mubr.bf16.gmra.mrb[24].mxu1 %v3190_v46  ;;  %v1422_v46 = vld [vmem:[%s4065_s2 + $0xe0] sm:$0xff] }
  0x54   :  { %3048 = vmatprep.mubr.bf16.mxu1 %v3194_v47  ;;  %v3240_v47 = vld [vmem:[%s4063_s0 + $0x184] ss:$12 sps:$4 sm:$0xff]  }
  0x59   :  { %854 = vmatmul.mubr.bf16.gmra.mrb[12].mxu0 %v3193_v48  ;;  %v1423_v48 = vld [vmem:[%s4065_s2 + $0xe8] sm:$0xff] }
  0x5a   :  { %861 = vmatprep.mubr.bf16.mxu0 %v3196_v49  ;;  %v1424_v49 = vld [vmem:[%s4065_s2 + $0xf0] sm:$0xff] }
  0x5b   :  { %3049 = vmatmul.mubr.bf16.gmra.mrb[28].mxu1 %v3195_v50  ;;  %v1425_v50 = vld [vmem:[%s4065_s2 + $0xf8] sm:$0xff] }
  0x5c   :  { %3052 = vmatprep.mubr.bf16.mxu1 %v3199_v51  ;;  %v3242_v51 = vld [vmem:[%s4063_s0 + $0x180] ss:$12 sps:$4 sm:$0xff]  }
  0x61   :  { %862 = vmatmul.mubr.bf16.gmra.mrb[16].mxu0 %v3198_v52  ;;  %v1426_v52 = vld [vmem:[%s4065_s2 + $0x100] sm:$0xff] }
  0x62   :  { %869 = vmatprep.mubr.bf16.mxu0 %v3201_v53  ;;  %v3243_v53 = vld [vmem:[%s4063_s0 + $0x19c] ss:$12 sps:$4 sm:$0xff]  }
  0x63   :  { %3053 = vmatmul.mubr.bf16.gmra.mrb[32].mxu1 %v3200_v54  ;;  %v1427_v54 = vld [vmem:[%s4065_s2 + $0x108] sm:$0xff] }
  0x64   :  { %3056 = vmatprep.mubr.bf16.mxu1 %v3204_v55  ;;  %v1428_v55 = vld [vmem:[%s4065_s2 + $0x110] sm:$0xff] }
  0x69   :  { %870 = vmatmul.mubr.bf16.gmra.mrb[20].mxu0 %v3203_v56  ;;  %v1429_v56 = vld [vmem:[%s4065_s2 + $0x118] sm:$0xff] }
  0x6a   :  { %877 = vmatprep.mubr.bf16.mxu0 %v3206_v57  ;;  %v3245_v57 = vld [vmem:[%s4063_s0 + $0x198] ss:$12 sps:$4 sm:$0xff]  }
  0x6b   :  { %3057 = vmatmul.mubr.bf16.gmra.mrb[36].mxu1 %v3205_v58  ;;  %v1430_v58 = vld [vmem:[%s4065_s2 + $0x120] sm:$0xff] }
  0x6c   :  { %3060 = vmatprep.mubr.bf16.mxu1 %v3209_v59  ;;  %v3246_v59 = vld [vmem:[%s4063_s0 + $0x1b4] ss:$12 sps:$4 sm:$0xff]  }
  0x71   :  { %878 = vmatmul.mubr.bf16.gmra.mrb[24].mxu0 %v3208_v60  ;;  %v1431_v60 = vld [vmem:[%s4065_s2 + $0x128] sm:$0xff] }
  0x72   :  { %885 = vmatprep.mubr.bf16.mxu0 %v3211_v61  ;;  %v1432_v61 = vld [vmem:[%s4065_s2 + $0x130] sm:$0xff] }
  0x73   :  { %3061 = vmatmul.mubr.bf16.gmra.mrb[40].mxu1 %v3210_v62  ;;  %v1433_v62 = vld [vmem:[%s4065_s2 + $0x138] sm:$0xff] }
  0x74   :  { %3064 = vmatprep.mubr.bf16.mxu1 %v3214_v63  ;;  %v3248_v63 = vld [vmem:[%s4063_s0 + $0x1b0] ss:$12 sps:$4 sm:$0xff]  }
  0x79   :  { %886 = vmatmul.mubr.bf16.gmra.mrb[28].mxu0 %v3213_v0  ;;  %v1434_v0 = vld [vmem:[%s4065_s2 + $0x140] sm:$0xff] }
  0x7a   :  { %893 = vmatprep.mubr.bf16.mxu0 %v3216_v1  ;;  %v3249_v1 = vld [vmem:[%s4063_s0 + $0x1cc] ss:$12 sps:$4 sm:$0xff]  }
  0x7b   :  { %3065 = vmatmul.mubr.bf16.gmra.mrb[44].mxu1 %v3215_v2  ;;  %v1435_v2 = vld [vmem:[%s4065_s2 + $0x148] sm:$0xff] }
  0x7c   :  { %3070 = vmatprep.mubr.msk.f32.mxu1 %vm1443_vm0, %v1394_v3  ;;  %v1436_v3 = vld [vmem:[%s4065_s2 + $0x150] sm:$0xff] }
  0x81   :  { %894 = vmatmul.mubr.bf16.gmra.mrb[32].mxu0 %v3218_v4  ;;  %v1437_v4 = vld [vmem:[%s4065_s2 + $0x158] sm:$0xff] }
  0x82   :  { %901 = vmatprep.mubr.bf16.mxu0 %v3219_v5  ;;  %v3251_v5 = vld [vmem:[%s4063_s0 + $0x1c8] ss:$12 sps:$4 sm:$0xff]  }
  0x83   :  { %3071 = vmatmul.mubr.msk.f32.vlgmr.msra.gmra.mrb[48].mxu1 %vm1443_vm0, %v1395_v6  ;;  %v1438_v6 = vld [vmem:[%s4065_s2 + $0x160] sm:$0xff] }
  0x84   :  { %3073 = vmatprep.mubr.msk.f32.mxu1 %vm1443_vm0, %v1396_v7  ;;  %v3252_v7 = vld [vmem:[%s4063_s0 + $0x1e4] ss:$12 sps:$4 sm:$0xff]  }
  0x87   :  { %3074 = vmatmul.mubr.msk.f32.gmra.mrb[50].mxu1 %vm1443_vm0, %v1397_v8  ;;  %v1439_v8 = vld [vmem:[%s4065_s2 + $0x168] sm:$0xff] }
  0x88   :  { %3076 = vmatprep.mubr.msk.f32.mxu1 %vm1443_vm0, %v1398_v10  ;;  %v1441_v10 = vld [vmem:[%s4065_s2 + $0x178] sm:$0xff] }
  0x89   :  { %902 = vmatmul.mubr.bf16.gmra.mrb[36].mxu0 %v3221_v9  ;;  %v1440_v9 = vld [vmem:[%s4065_s2 + $0x170] sm:$0xff] }
  0x8a   :  { %909 = vmatprep.mubr.bf16.mxu0 %v3222_v11  ;;  %v3254_v11 = vld [vmem:[%s4063_s0 + $0x1e0] ss:$12 sps:$4 sm:$0xff]  }
  0x8b   :  { %3077 = vmatmul.mubr.msk.f32.gmra.mrb[52].mxu1 %vm1443_vm0, %v1399_v12  ;;  %v3255_v12 = vld [vmem:[%s4063_s0 + $0x1fc] ss:$12 sps:$4 sm:$0xff]  }
  0x8c   :  { %3079 = vmatprep.mubr.msk.f32.mxu1 %vm1443_vm0, %v1400_v13  ;;  %v3257_v13 = vld [vmem:[%s4063_s0 + $0x1f8] ss:$12 sps:$4 sm:$0xff]  }
  0x8f   :  { %3080 = vmatmul.mubr.msk.f32.gmra.mrb[54].mxu1 %vm1443_vm0, %v1401_v14  ;;  %v3258_v14 = vld [vmem:[%s4063_s0 + $0x214] ss:$12 sps:$4 sm:$0xff]  }
  0x90   :  { %3082 = vmatprep.mubr.msk.f32.mxu1 %vm1443_vm0, %v1402_v16  ;;  %v3261_v16 = vld [vmem:[%s4063_s0 + $0x22c] ss:$12 sps:$4 sm:$0xff]  }
  0x91   :  { %910 = vmatmul.mubr.bf16.gmra.mrb[40].mxu0 %v3224_v15  ;;  %v3260_v15 = vld [vmem:[%s4063_s0 + $0x210] ss:$12 sps:$4 sm:$0xff]  }
  0x92   :  { %917 = vmatprep.mubr.bf16.mxu0 %v3225_v17  ;;  %v3263_v17 = vld [vmem:[%s4063_s0 + $0x228] ss:$12 sps:$4 sm:$0xff]  }
  0x93   :  { %3083 = vmatmul.mubr.msk.f32.gmra.mrb[56].mxu1 %vm1443_vm0, %v1403_v18 }
  0x94   :  { %3085 = vmatprep.mubr.msk.f32.mxu1 %vm1443_vm0, %v1404_v19 }
  0x97   :  { %3086 = vmatmul.mubr.msk.f32.gmra.mrb[58].mxu1 %vm1443_vm0, %v1405_v20 }
  0x98   :  { %3088 = vmatprep.mubr.msk.f32.mxu1 %vm1443_vm0, %v1406_v22 }
  0x99   :  { %918 = vmatmul.mubr.bf16.gmra.mrb[44].mxu0 %v3227_v21 }
  0x9a   :  { %925 = vmatprep.mubr.bf16.mxu0 %v3228_v23 }
  0x9b   :  { %3089 = vmatmul.mubr.msk.f32.gmra.mrb[60].mxu1 %vm1443_vm0, %v1407_v24 }
  0x9c   :  { %3091 = vmatprep.mubr.msk.f32.mxu1 %vm1443_vm0, %v1408_v25 }
  0x9f   :  { %3092 = vmatmul.mubr.msk.f32.gmra.mrb[62].mxu1 %vm1443_vm0, %v1409_v26 }
  0xa0   :  { %3094 = vmatprep.mubr.msk.f32.mxu1 %vm1443_vm0, %v1410_v28 }
  0xa1   :  { %926 = vmatmul.mubr.bf16.gmra.mrb[48].mxu0 %v3230_v27 }
  0xa2   :  { %933 = vmatprep.mubr.bf16.mxu0 %v3231_v29 }
  0xa3   :  { %3095 = vmatmul.mubr.msk.f32.gmra.mrb[64].mxu1 %vm1443_vm0, %v1411_v30 }
  0xa4   :  { %3097 = vmatprep.mubr.msk.f32.mxu1 %vm1443_vm0, %v1412_v31 }
  0xa7   :  { %3098 = vmatmul.mubr.msk.f32.gmra.mrb[66].mxu1 %vm1443_vm0, %v1413_v32 }
  0xa8   :  { %3100 = vmatprep.mubr.msk.f32.mxu1 %vm1443_vm0, %v1414_v34 }
  0xa9   :  { %934 = vmatmul.mubr.bf16.gmra.mrb[52].mxu0 %v3233_v33 }
  0xaa   :  { %941 = vmatprep.mubr.bf16.mxu0 %v3234_v35 }
  0xab   :  { %3101 = vmatmul.mubr.msk.f32.gmra.mrb[68].mxu1 %vm1443_vm0, %v1415_v36 }
  0xac   :  { %3103 = vmatprep.mubr.msk.f32.mxu1 %vm1443_vm0, %v1416_v37 }
  0xaf   :  { %3104 = vmatmul.mubr.msk.f32.gmra.mrb[70].mxu1 %vm1443_vm0, %v1417_v38 }
  0xb0   :  { %3106 = vmatprep.mubr.msk.f32.mxu1 %vm1443_vm0, %v1418_v40 }
  0xb1   :  { %942 = vmatmul.mubr.bf16.gmra.mrb[56].mxu0 %v3236_v39 }
  0xb2   :  { %949 = vmatprep.mubr.bf16.mxu0 %v3237_v41 }
  0xb3   :  { %3107 = vmatmul.mubr.msk.f32.gmra.mrb[72].mxu1 %vm1443_vm0, %v1419_v42 }
  0xb4   :  { %3109 = vmatprep.mubr.msk.f32.mxu1 %vm1443_vm0, %v1420_v43 }
  0xb7   :  { %3110 = vmatmul.mubr.msk.f32.gmra.mrb[74].mxu1 %vm1443_vm0, %v1421_v44 }
  0xb8   :  { %3112 = vmatprep.mubr.msk.f32.mxu1 %vm1443_vm0, %v1422_v46 }
  0xb9   :  { %950 = vmatmul.mubr.bf16.gmra.mrb[60].mxu0 %v3239_v45 }
  0xba   :  { %957 = vmatprep.mubr.bf16.mxu0 %v3240_v47 }
  0xbb   :  { %3113 = vmatmul.mubr.msk.f32.gmra.mrb[76].mxu1 %vm1443_vm0, %v1423_v48 }
  0xbc   :  { %3115 = vmatprep.mubr.msk.f32.mxu1 %vm1443_vm0, %v1424_v49 }
  0xbf   :  { %3116 = vmatmul.mubr.msk.f32.gmra.mrb[78].mxu1 %vm1443_vm0, %v1425_v50 }
  0xc0   :  { %3118 = vmatprep.mubr.msk.f32.mxu1 %vm1443_vm0, %v1426_v52 }
  0xc1   :  { %958 = vmatmul.mubr.bf16.gmra.mrb[64].mxu0 %v3242_v51 }
  0xc2   :  { %965 = vmatprep.mubr.bf16.mxu0 %v3243_v53 }
  0xc3   :  { %3119 = vmatmul.mubr.msk.f32.gmra.mrb[80].mxu1 %vm1443_vm0, %v1427_v54 }
  0xc4   :  { %3121 = vmatprep.mubr.msk.f32.mxu1 %vm1443_vm0, %v1428_v55 }
  0xc7   :  { %3122 = vmatmul.mubr.msk.f32.gmra.mrb[82].mxu1 %vm1443_vm0, %v1429_v56 }
  0xc8   :  { %3124 = vmatprep.mubr.msk.f32.mxu1 %vm1443_vm0, %v1430_v58 }
  0xc9   :  { %966 = vmatmul.mubr.bf16.gmra.mrb[68].mxu0 %v3245_v57 }
  0xca   :  { %973 = vmatprep.mubr.bf16.mxu0 %v3246_v59 }
  0xcb   :  { %3125 = vmatmul.mubr.msk.f32.gmra.mrb[84].mxu1 %vm1443_vm0, %v1431_v60 }
  0xcc   :  { %3127 = vmatprep.mubr.msk.f32.mxu1 %vm1443_vm0, %v1432_v61 }
  0xcf   :  { %3128 = vmatmul.mubr.msk.f32.gmra.mrb[86].mxu1 %vm1443_vm0, %v1433_v62 }
  0xd0   :  { %3130 = vmatprep.mubr.msk.f32.mxu1 %vm1443_vm0, %v1434_v0 }
  0xd1   :  { %974 = vmatmul.mubr.bf16.gmra.mrb[72].mxu0 %v3248_v63 }
  0xd2   :  { %981 = vmatprep.mubr.bf16.mxu0 %v3249_v1 }
  0xd3   :  { %3131 = vmatmul.mubr.msk.f32.gmra.mrb[88].mxu1 %vm1443_vm0, %v1435_v2 }
  0xd4   :  { %3133 = vmatprep.mubr.msk.f32.mxu1 %vm1443_vm0, %v1436_v3 }
  0xd7   :  { %3134 = vmatmul.mubr.msk.f32.gmra.mrb[90].mxu1 %vm1443_vm0, %v1437_v4 }
  0xd8   :  { %3136 = vmatprep.mubr.msk.f32.mxu1 %vm1443_vm0, %v1438_v6 }
  0xd9   :  { %982 = vmatmul.mubr.bf16.gmra.mrb[76].mxu0 %v3251_v5 }
  0xda   :  { %989 = vmatprep.mubr.bf16.mxu0 %v3252_v7 }
  0xdb   :  { %3137 = vmatmul.mubr.msk.f32.gmra.mrb[92].mxu1 %vm1443_vm0, %v1439_v8 }
  0xdc   :  { %3139 = vmatprep.mubr.msk.f32.mxu1 %vm1443_vm0, %v1440_v9 }
  0xdf   :  { %3140 = vmatmul.mubr.msk.f32.gmra.mrb[94].mxu1 %vm1443_vm0, %v1441_v10 }
  0xe1   :  { %990 = vmatmul.mubr.bf16.gmra.mrb[80].mxu0 %v3254_v11 }
  0xe2   :  { %997 = vmatprep.mubr.bf16.mxu0 %v3255_v12 }
  0xe9   :  { %998 = vmatmul.mubr.bf16.gmra.mrb[84].mxu0 %v3257_v13 }
  0xea   :  { %1005 = vmatprep.mubr.bf16.mxu0 %v3258_v14 }
  0xf1   :  { %1006 = vmatmul.mubr.bf16.gmra.mrb[88].mxu0 %v3260_v15 }
  0xf2   :  { %1013 = vmatprep.mubr.bf16.mxu0 %v3261_v16 }
  0xf6   :  { %v3022_v18 = vpop.f32.mrb[0].mxu1 }
  0xf7   :  { %v1056_v19 = vpop.f32.mrb[1].mxu1 }
  0xf8   :  { %v3023_v20 = vpop.f32.mrb[2].mxu1 }
  0xf9   :  { %1014 = vmatmul.mubr.bf16.gmra.mrb[92].mxu0 %v3263_v17  ;;  %v1059_v21 = vpop.f32.mrb[3].mxu1 }
  0xfe   :  { %v3026_v22 = vpop.f32.mrb[4].mxu1 }
  0xff   :  { %v1072_v23 = vpop.f32.mrb[5].mxu1 }
 0x100   :  { %v3027_v24 = vpop.f32.mrb[6].mxu1 }
 0x101   :  { %v1075_v25 = vpop.f32.mrb[7].mxu1 }
 0x106   :  { %v3030_v26 = vpop.f32.mrb[8].mxu1 }
 0x107   :  { %v1088_v27 = vpop.f32.mrb[9].mxu1 }
 0x108   :  { %v3031_v28 = vpop.f32.mrb[10].mxu1 }
 0x109   :  { %v1091_v29 = vpop.f32.mrb[11].mxu1 }
 0x10e   :  { %v3795_v30 = vpop.f32.mrb[12].mxu1 }
 0x10f   :  { %v3797_v31 = vpop.f32.mrb[13].mxu1 }
 0x110   :  { %v3799_v32 = vpop.f32.mrb[14].mxu1 }
 0x111   :  { %v3801_v33 = vpop.f32.mrb[15].mxu1 }
 0x114   :  { %v831_v34 = vpop.f32.mrb[0].mxu0 }
 0x115   :  { %v3803_v35 = vadd.f32 %v1056_v19, %v831_v34  ;;  %v833_v36 = vpop.f32.mrb[1].mxu0 }
 0x116   :  { %v834_v37 = vpop.f32.mrb[2].mxu0  ;;  %v3805_v38 = vpop.f32.mrb[16].mxu1 }
 0x117   :  { %v3807_v39 = vadd.f32 %v1059_v21, %v834_v37  ;;  %v836_v40 = vpop.f32.mrb[3].mxu0  ;;  %v3809_v41 = vpop.f32.mrb[17].mxu1 }
 0x118   :  { %v3811_v42 = vpop.f32.mrb[18].mxu1 }
 0x119   :  { %v3813_v43 = vpop.f32.mrb[19].mxu1 }
 0x11c   :  { %v839_v44 = vpop.f32.mrb[4].mxu0 }
 0x11d   :  { %v3815_v45 = vadd.f32 %v3022_v18, %v839_v44  ;;  %v841_v46 = vpop.f32.mrb[5].mxu0 }
 0x11e   :  { %v842_v47 = vpop.f32.mrb[6].mxu0  ;;  %v3817_v48 = vpop.f32.mrb[20].mxu1 }
 0x11f   :  { %v3819_v49 = vadd.f32 %v3023_v20, %v842_v47  ;;  %v844_v50 = vpop.f32.mrb[7].mxu0  ;;  %v3821_v51 = vpop.f32.mrb[21].mxu1 }
 0x120   :  { %v3823_v52 = vpop.f32.mrb[22].mxu1 }
 0x121   :  { %v3825_v53 = vpop.f32.mrb[23].mxu1 }
 0x124   :  { %v847_v54 = vpop.f32.mrb[8].mxu0 }
 0x125   :  { %v3827_v55 = vadd.f32 %v1072_v23, %v847_v54  ;;  %v849_v56 = vpop.f32.mrb[9].mxu0 }
 0x126   :  { %v850_v57 = vpop.f32.mrb[10].mxu0  ;;  %v3829_v58 = vpop.f32.mrb[24].mxu1 }
 0x127   :  { %v3831_v59 = vadd.f32 %v1075_v25, %v850_v57  ;;  %v852_v60 = vpop.f32.mrb[11].mxu0  ;;  %v3833_v61 = vpop.f32.mrb[25].mxu1 }
 0x128   :  { %v3835_v62 = vpop.f32.mrb[26].mxu1 }
 0x129   :  { %v3837_v63 = vpop.f32.mrb[27].mxu1 }
 0x12c   :  { %v855_v0 = vpop.f32.mrb[12].mxu0 }
 0x12d   :  { %v3839_v1 = vadd.f32 %v3026_v22, %v855_v0  ;;  %v857_v2 = vpop.f32.mrb[13].mxu0 }
 0x12e   :  { %v858_v3 = vpop.f32.mrb[14].mxu0  ;;  %v3841_v4 = vpop.f32.mrb[28].mxu1 }
 0x12f   :  { %v3843_v5 = vadd.f32 %v3027_v24, %v858_v3  ;;  %v860_v6 = vpop.f32.mrb[15].mxu0  ;;  %v3845_v7 = vpop.f32.mrb[29].mxu1 }
 0x130   :  { %v3847_v8 = vpop.f32.mrb[30].mxu1 }
 0x131   :  { %v3849_v9 = vpop.f32.mrb[31].mxu1 }
 0x134   :  { %v863_v10 = vpop.f32.mrb[16].mxu0 }
 0x135   :  { %v3851_v11 = vadd.f32 %v1088_v27, %v863_v10  ;;  %v865_v12 = vpop.f32.mrb[17].mxu0 }
 0x136   :  { %v866_v13 = vpop.f32.mrb[18].mxu0  ;;  %v3853_v14 = vpop.f32.mrb[32].mxu1 }
 0x137   :  { %v3855_v15 = vadd.f32 %v1091_v29, %v866_v13  ;;  %v868_v16 = vpop.f32.mrb[19].mxu0  ;;  %v3857_v17 = vpop.f32.mrb[33].mxu1 }
 0x138   :  { %v3859_v18 = vpop.f32.mrb[34].mxu1 }
 0x139   :  { %v3861_v19 = vpop.f32.mrb[35].mxu1 }
 0x13c   :  { %v871_v20 = vpop.f32.mrb[20].mxu0 }
 0x13d   :  { %v3863_v21 = vadd.f32 %v3030_v26, %v871_v20  ;;  %v873_v22 = vpop.f32.mrb[21].mxu0 }
 0x13e   :  { %v874_v23 = vpop.f32.mrb[22].mxu0  ;;  %v3865_v24 = vpop.f32.mrb[36].mxu1 }
 0x13f   :  { %v3867_v25 = vadd.f32 %v3031_v28, %v874_v23  ;;  %v876_v27 = vpop.f32.mrb[23].mxu0  ;;  %v3869_v34 = vpop.f32.mrb[37].mxu1  ;;  %v3265_v23 = vmov 0.0  }
 0x140   :  { %v3871_v29 = vpop.f32.mrb[38].mxu1  ;;  %2277 = vst [vmem:[%s4066_s5] sm:$0xff] %v3265_v23 }
 0x141   :  { %v3873_v36 = vpop.f32.mrb[39].mxu1 }
 0x144   :  { %v879_v37 = vpop.f32.mrb[24].mxu0 }
 0x145   :  { %v3876_v40 = vadd.f32 %v3797_v31, %v879_v37  ;;  %v881_v44 = vpop.f32.mrb[25].mxu0 }
 0x146   :  { %v882_v26 = vpop.f32.mrb[26].mxu0  ;;  %v3878_v46 = vpop.f32.mrb[40].mxu1 }
 0x147   :  { %v3881_v47 = vadd.f32 %v3801_v33, %v882_v26  ;;  %v884_v28 = vpop.f32.mrb[27].mxu0  ;;  %v3883_v50 = vpop.f32.mrb[41].mxu1 }
 0x148   :  { %v3885_v54 = vpop.f32.mrb[42].mxu1 }
 0x149   :  { %v3887_v56 = vpop.f32.mrb[43].mxu1 }
 0x14c   :  { %v887_v57 = vpop.f32.mrb[28].mxu0 }
 0x14d   :  { %v3890_v60 = vadd.f32 %v3795_v30, %v887_v57  ;;  %v889_v31 = vpop.f32.mrb[29].mxu0 }
 0x14e   :  { %v890_v0 = vpop.f32.mrb[30].mxu0  ;;  %v3892_v2 = vpop.f32.mrb[44].mxu1 }
 0x14f   :  { %v3895_v3 = vadd.f32 %v3799_v32, %v890_v0  ;;  %v892_v33 = vpop.f32.mrb[31].mxu0  ;;  %v3897_v6 = vpop.f32.mrb[45].mxu1 }
 0x150   :  { %v3899_v10 = vpop.f32.mrb[46].mxu1 }
 0x151   :  { %v3901_v12 = vpop.f32.mrb[47].mxu1 }
 0x154   :  { %v895_v13 = vpop.f32.mrb[32].mxu0 }
 0x155   :  { %v3904_v16 = vadd.f32 %v3809_v41, %v895_v13  ;;  %v897_v30 = vpop.f32.mrb[33].mxu0 }
 0x156   :  { %v3072_v20 = vpop.f32.mrb[48].mxu1  ;;  %v898_v22 = vpop.f32.mrb[34].mxu0 }
 0x157   :  { %v1894_v32 = vadd.f32 %v3072_v20, %v3807_v39  ;;  %v3911_v27 = vadd.f32 %v3813_v43, %v898_v22  ;;  %v1654_v37 = vpop.f32.mrb[49].mxu1  ;;  %v900_v44 = vpop.f32.mrb[35].mxu0 }
 0x158   :  { %v1893_v26 = vadd.f32 %v1654_v37, %v3803_v35 }
 0x159   :  { %v2429_v28 = vmul.f32 %v1894_v32, %v1894_v32 }
 0x15a   :  { %v2783_v41 = vpack.c.bf16 %v1894_v32, %v1893_v26  ;;  %v2326_v57 = vadd.f32 %v1894_v32, %v1893_v26  ;;  %v2428_v31 = vmul.f32 %v1893_v26, %v1893_v26  ;;  %v3075_v0 = vpop.f32.mrb[50].mxu1 }
 0x15b   :  { %v1896_v33 = vadd.f32 %v3075_v0, %v3819_v49  ;;  %v1664_v13 = vpop.f32.mrb[51].mxu1 }
 0x15c   :  { %2784 = vst [vmem:[%s4067_s4] sm:$0xff] %v2783_v41   ;;  %v2476_v39 = vadd.f32 %v2429_v28, %v2428_v31  ;;  %v1895_v43 = vadd.f32 %v1664_v13, %v3815_v45  ;;  %v903_v30 = vpop.f32.mrb[36].mxu0 }
 0x15d   :  { %v3920_v20 = vadd.f32 %v3805_v38, %v903_v30  ;;  %v905_v35 = vpop.f32.mrb[37].mxu0  ;;  %v2431_v28 = vmul.f32 %v1896_v33, %v1896_v33 }
 0x15e   :  { %v2788_v22 = vpack.c.bf16 %v1896_v33, %v1895_v43  ;;  %v2327_v23 = vadd.f32 %v2326_v57, %v1895_v43  ;;  %v2430_v32 = vmul.f32 %v1895_v43, %v1895_v43  ;;  %v3078_v37 = vpop.f32.mrb[52].mxu1  ;;  %v906_v44 = vpop.f32.mrb[38].mxu0 }
 0x15f   :  { %v1898_v49 = vadd.f32 %v3078_v37, %v3831_v59  ;;  %v3924_v26 = vadd.f32 %v3811_v42, %v906_v44  ;;  %v1674_v0 = vpop.f32.mrb[53].mxu1  ;;  %v908_v41 = vpop.f32.mrb[39].mxu0 }
 0x160   :  { %2900 = vst [vmem:[%s4067_s4 + $0x8] sm:$0xff] %v2788_v22   ;;  %v2477_v38 = vadd.f32 %v2476_v39, %v2430_v32  ;;  %v1897_v45 = vadd.f32 %v1674_v0, %v3827_v55  ;;  %v2328_v31 = vadd.f32 %v2327_v23, %v1896_v33 }
 0x161   :  { %v2433_v37 = vmul.f32 %v1898_v49, %v1898_v49 }
 0x162   :  { %v2793_v57 = vpack.c.bf16 %v1898_v49, %v1897_v45  ;;  %v2329_v13 = vadd.f32 %v2328_v31, %v1897_v45  ;;  %v2432_v43 = vmul.f32 %v1897_v45, %v1897_v45  ;;  %v2478_v30 = vadd.f32 %v2477_v38, %v2431_v28  ;;  %v3081_v35 = vpop.f32.mrb[54].mxu1 }
 0x163   :  { %v1900_v59 = vadd.f32 %v3081_v35, %v3843_v5  ;;  %v1684_v42 = vpop.f32.mrb[55].mxu1 }
 0x164   :  { %2901 = vst [vmem:[%s4067_s4 + $0x10] sm:$0xff] %v2793_v57   ;;  %v2479_v44 = vadd.f32 %v2478_v30, %v2432_v43  ;;  %v1899_v22 = vadd.f32 %v1684_v42, %v3839_v1  ;;  %v2330_v39 = vadd.f32 %v2329_v13, %v1898_v49  ;;  %v911_v32 = vpop.f32.mrb[40].mxu0 }
 0x165   :  { %v3936_v55 = vadd.f32 %v3821_v51, %v911_v32  ;;  %v913_v33 = vpop.f32.mrb[41].mxu0  ;;  %v2435_v1 = vmul.f32 %v1900_v59, %v1900_v59 }
 0x166   :  { %v2798_v23 = vpack.c.bf16 %v1900_v59, %v1899_v22  ;;  %v2331_v0 = vadd.f32 %v2330_v39, %v1899_v22  ;;  %v2434_v41 = vmul.f32 %v1899_v22, %v1899_v22  ;;  %v2480_v28 = vadd.f32 %v2479_v44, %v2433_v37  ;;  %v3084_v5 = vpop.f32.mrb[56].mxu1  ;;  %v914_v38 = vpop.f32.mrb[42].mxu0 }
 0x167   :  { %v1902_v45 = vadd.f32 %v3084_v5, %v3855_v15  ;;  %v3940_v31 = vadd.f32 %v3825_v53, %v914_v38  ;;  %v1694_v57 = vpop.f32.mrb[57].mxu1  ;;  %v916_v43 = vpop.f32.mrb[43].mxu0 }
 0x168   :  { %2902 = vst [vmem:[%s4067_s4 + $0x18] sm:$0xff] %v2798_v23   ;;  %v2481_v51 = vadd.f32 %v2480_v28, %v2434_v41  ;;  %v1901_v49 = vadd.f32 %v1694_v57, %v3851_v11  ;;  %v2332_v13 = vadd.f32 %v2331_v0, %v1900_v59 }
 0x169   :  { %v2437_v22 = vmul.f32 %v1902_v45, %v1902_v45 }
 0x16a   :  { %v2803_v30 = vpack.c.bf16 %v1902_v45, %v1901_v49  ;;  %v2333_v35 = vadd.f32 %v2332_v13, %v1901_v49  ;;  %v2436_v42 = vmul.f32 %v1901_v49, %v1901_v49  ;;  %v2482_v37 = vadd.f32 %v2481_v51, %v2435_v1  ;;  %v3087_v44 = vpop.f32.mrb[58].mxu1 }
 0x16b   :  { %v1904_v15 = vadd.f32 %v3087_v44, %v3867_v25  ;;  %v1704_v53 = vpop.f32.mrb[59].mxu1 }
 0x16c   :  { %2903 = vst [vmem:[%s4067_s4 + $0x20] sm:$0xff] %v2803_v30   ;;  %v2483_v39 = vadd.f32 %v2482_v37, %v2436_v42  ;;  %v1903_v32 = vadd.f32 %v1704_v53, %v3863_v21  ;;  %v2334_v33 = vadd.f32 %v2333_v35, %v1902_v45  ;;  %v919_v23 = vpop.f32.mrb[44].mxu0 }
 0x16d   :  { %v3952_v11 = vadd.f32 %v3817_v48, %v919_v23  ;;  %v921_v59 = vpop.f32.mrb[45].mxu0  ;;  %v2439_v21 = vmul.f32 %v1904_v15, %v1904_v15 }
 0x16e   :  { %v2808_v0 = vpack.c.bf16 %v1904_v15, %v1903_v32  ;;  %v2335_v41 = vadd.f32 %v2334_v33, %v1903_v32  ;;  %v2438_v28 = vmul.f32 %v1903_v32, %v1903_v32  ;;  %v2484_v5 = vadd.f32 %v2483_v39, %v2437_v22  ;;  %v3090_v25 = vpop.f32.mrb[60].mxu1  ;;  %v922_v38 = vpop.f32.mrb[46].mxu0 }
 0x16f   :  { %v1906_v57 = vadd.f32 %v3090_v25, %v3881_v47  ;;  %v3956_v43 = vadd.f32 %v3823_v52, %v922_v38  ;;  %v1714_v1 = vpop.f32.mrb[61].mxu1  ;;  %v924_v51 = vpop.f32.mrb[47].mxu0 }
 0x170   :  { %2904 = vst [vmem:[%s4067_s4 + $0x28] sm:$0xff] %v2808_v0   ;;  %v2485_v48 = vadd.f32 %v2484_v5, %v2438_v28  ;;  %v1905_v45 = vadd.f32 %v1714_v1, %v3876_v40  ;;  %v2336_v49 = vadd.f32 %v2335_v41, %v1904_v15 }
 0x171   :  { %v2441_v44 = vmul.f32 %v1906_v57, %v1906_v57 }
 0x172   :  { %v2813_v13 = vpack.c.bf16 %v1906_v57, %v1905_v45  ;;  %v2337_v30 = vadd.f32 %v2336_v49, %v1905_v45  ;;  %v2440_v35 = vmul.f32 %v1905_v45, %v1905_v45  ;;  %v2486_v42 = vadd.f32 %v2485_v48, %v2439_v21  ;;  %v3093_v37 = vpop.f32.mrb[62].mxu1 }
 0x173   :  { %v1908_v47 = vadd.f32 %v3093_v37, %v3895_v3  ;;  %v1724_v52 = vpop.f32.mrb[63].mxu1 }
 0x174   :  { %2905 = vst [vmem:[%s4067_s4 + $0x30] sm:$0xff] %v2813_v13   ;;  %v2487_v53 = vadd.f32 %v2486_v42, %v2440_v35  ;;  %v1907_v22 = vadd.f32 %v1724_v52, %v3890_v60  ;;  %v2338_v39 = vadd.f32 %v2337_v30, %v1906_v57  ;;  %v927_v32 = vpop.f32.mrb[48].mxu0 }
 0x175   :  { %v3968_v40 = vadd.f32 %v3833_v61, %v927_v32  ;;  %v929_v15 = vpop.f32.mrb[49].mxu0  ;;  %v2443_v1 = vmul.f32 %v1908_v47, %v1908_v47 }
 0x176   :  { %v2818_v33 = vpack.c.bf16 %v1908_v47, %v1907_v22  ;;  %v2339_v23 = vadd.f32 %v2338_v39, %v1907_v22  ;;  %v2442_v59 = vmul.f32 %v1907_v22, %v1907_v22  ;;  %v2488_v0 = vadd.f32 %v2487_v53, %v2441_v44  ;;  %v3096_v3 = vpop.f32.mrb[64].mxu1  ;;  %v930_v41 = vpop.f32.mrb[50].mxu0 }
 0x177   :  { %v1910_v28 = vadd.f32 %v3096_v3, %v3911_v27  ;;  %v1156_v5 = vadd.f32 %v3837_v63, %v930_v41  ;;  %v1734_v25 = vpop.f32.mrb[65].mxu1  ;;  %v932_v38 = vpop.f32.mrb[51].mxu0 }
 0x178   :  { %2906 = vst [vmem:[%s4067_s4 + $0x38] sm:$0xff] %v2818_v33   ;;  %v2489_v61 = vadd.f32 %v2488_v0, %v2442_v59  ;;  %v1909_v60 = vadd.f32 %v1734_v25, %v3904_v16  ;;  %v2340_v57 = vadd.f32 %v2339_v23, %v1908_v47 }
 0x179   :  { %v2445_v63 = vmul.f32 %v1910_v28, %v1910_v28 }
 0x17a   :  { %v2823_v51 = vpack.c.bf16 %v1910_v28, %v1909_v60  ;;  %v2341_v21 = vadd.f32 %v2340_v57, %v1909_v60  ;;  %v2444_v48 = vmul.f32 %v1909_v60, %v1909_v60  ;;  %v2490_v45 = vadd.f32 %v2489_v61, %v2443_v1  ;;  %v3099_v49 = vpop.f32.mrb[66].mxu1 }
 0x17b   :  { %v1912_v27 = vadd.f32 %v3099_v49, %v3924_v26  ;;  %v1744_v13 = vpop.f32.mrb[67].mxu1 }
 0x17c   :  { %2907 = vst [vmem:[%s4067_s4 + $0x40] sm:$0xff] %v2823_v51   ;;  %v2491_v30 = vadd.f32 %v2490_v45, %v2444_v48  ;;  %v1911_v35 = vadd.f32 %v1744_v13, %v3920_v20  ;;  %v2342_v42 = vadd.f32 %v2341_v21, %v1910_v28  ;;  %v935_v37 = vpop.f32.mrb[52].mxu0 }
 0x17d   :  { %v1161_v16 = vadd.f32 %v3829_v58, %v935_v37  ;;  %v937_v47 = vpop.f32.mrb[53].mxu0  ;;  %v2447_v59 = vmul.f32 %v1912_v27, %v1912_v27 }
 0x17e   :  { %v2828_v52 = vpack.c.bf16 %v1912_v27, %v1911_v35  ;;  %v2343_v44 = vadd.f32 %v2342_v42, %v1911_v35  ;;  %v2446_v53 = vmul.f32 %v1911_v35, %v1911_v35  ;;  %v2492_v22 = vadd.f32 %v2491_v30, %v2445_v63  ;;  %v3102_v39 = vpop.f32.mrb[68].mxu1  ;;  %v938_v26 = vpop.f32.mrb[54].mxu0 }
 0x17f   :  { %v1914_v32 = vadd.f32 %v3102_v39, %v3940_v31  ;;  %v1164_v15 = vadd.f32 %v3835_v62, %v938_v26  ;;  %v1754_v33 = vpop.f32.mrb[69].mxu1  ;;  %v940_v23 = vpop.f32.mrb[55].mxu0 }
 0x180   :  { %2908 = vst [vmem:[%s4067_s4 + $0x48] sm:$0xff] %v2828_v52   ;;  %v2493_v20 = vadd.f32 %v2492_v22, %v2446_v53  ;;  %v1913_v58 = vadd.f32 %v1754_v33, %v3936_v55  ;;  %v2344_v0 = vadd.f32 %v2343_v44, %v1912_v27 }
 0x181   :  { %v2449_v62 = vmul.f32 %v1914_v32, %v1914_v32 }
 0x182   :  { %v2833_v3 = vpack.c.bf16 %v1914_v32, %v1913_v58  ;;  %v2345_v41 = vadd.f32 %v2344_v0, %v1913_v58  ;;  %v2448_v28 = vmul.f32 %v1913_v58, %v1913_v58  ;;  %v2494_v25 = vadd.f32 %v2493_v20, %v2447_v59  ;;  %v3105_v38 = vpop.f32.mrb[70].mxu1 }
 0x183   :  { %v1916_v31 = vadd.f32 %v3105_v38, %v3956_v43  ;;  %v1764_v1 = vpop.f32.mrb[71].mxu1 }
 0x184   :  { %2909 = vst [vmem:[%s4067_s4 + $0x50] sm:$0xff] %v2833_v3   ;;  %v2495_v61 = vadd.f32 %v2494_v25, %v2448_v28  ;;  %v1915_v60 = vadd.f32 %v1764_v1, %v3952_v11  ;;  %v2346_v57 = vadd.f32 %v2345_v41, %v1914_v32  ;;  %v943_v51 = vpop.f32.mrb[56].mxu0 }
 0x185   :  { %v1169_v55 = vadd.f32 %v3845_v7, %v943_v51  ;;  %v945_v21 = vpop.f32.mrb[57].mxu0  ;;  %v2451_v37 = vmul.f32 %v1916_v31, %v1916_v31 }
 0x186   :  { %v2838_v48 = vpack.c.bf16 %v1916_v31, %v1915_v60  ;;  %v2347_v45 = vadd.f32 %v2346_v57, %v1915_v60  ;;  %v2450_v49 = vmul.f32 %v1915_v60, %v1915_v60  ;;  %v2496_v27 = vadd.f32 %v2495_v61, %v2449_v62  ;;  %v3108_v13 = vpop.f32.mrb[72].mxu1  ;;  %v946_v43 = vpop.f32.mrb[58].mxu0 }
 0x187   :  { %v1918_v63 = vadd.f32 %v3108_v13, %v1156_v5  ;;  %v1172_v30 = vadd.f32 %v3849_v9, %v946_v43  ;;  %v1774_v35 = vpop.f32.mrb[73].mxu1  ;;  %v948_v42 = vpop.f32.mrb[59].mxu0 }
 0x188   :  { %2910 = vst [vmem:[%s4067_s4 + $0x58] sm:$0xff] %v2838_v48   ;;  %v2497_v11 = vadd.f32 %v2496_v27, %v2450_v49  ;;  %v1917_v7 = vadd.f32 %v1774_v35, %v3968_v40  ;;  %v2348_v47 = vadd.f32 %v2347_v45, %v1916_v31 }
 0x189   :  { %v2453_v32 = vmul.f32 %v1918_v63, %v1918_v63 }
 0x18a   :  { %v2843_v52 = vpack.c.bf16 %v1918_v63, %v1917_v7  ;;  %v2349_v44 = vadd.f32 %v2348_v47, %v1917_v7  ;;  %v2452_v53 = vmul.f32 %v1917_v7, %v1917_v7  ;;  %v2498_v22 = vadd.f32 %v2497_v11, %v2451_v37  ;;  %v3111_v39 = vpop.f32.mrb[74].mxu1 }
 0x18b   :  { %v1920_v26 = vadd.f32 %v3111_v39, %v1164_v15  ;;  %v1784_v5 = vpop.f32.mrb[75].mxu1 }
 0x18c   :  { %2911 = vst [vmem:[%s4067_s4 + $0x60] sm:$0xff] %v2843_v52   ;;  %v2499_v9 = vadd.f32 %v2498_v22, %v2452_v53  ;;  %v1919_v33 = vadd.f32 %v1784_v5, %v1161_v16  ;;  %v2350_v23 = vadd.f32 %v2349_v44, %v1918_v63  ;;  %v951_v59 = vpop.f32.mrb[60].mxu0 }
 0x18d   :  { %v1177_v20 = vadd.f32 %v3841_v4, %v951_v59  ;;  %v953_v40 = vpop.f32.mrb[61].mxu0  ;;  %v2455_v62 = vmul.f32 %v1920_v26, %v1920_v26 }
 0x18e   :  { %v2848_v58 = vpack.c.bf16 %v1920_v26, %v1919_v33  ;;  %v2351_v0 = vadd.f32 %v2350_v23, %v1919_v33  ;;  %v2454_v3 = vmul.f32 %v1919_v33, %v1919_v33  ;;  %v2500_v41 = vadd.f32 %v2499_v9, %v2453_v32  ;;  %v3114_v28 = vpop.f32.mrb[76].mxu1  ;;  %v954_v25 = vpop.f32.mrb[62].mxu0 }
 0x18f   :  { %v1922_v15 = vadd.f32 %v3114_v28, %v1172_v30  ;;  %v1180_v38 = vadd.f32 %v3847_v8, %v954_v25  ;;  %v1794_v31 = vpop.f32.mrb[77].mxu1  ;;  %v956_v1 = vpop.f32.mrb[63].mxu0 }
 0x190   :  { %2912 = vst [vmem:[%s4067_s4 + $0x68] sm:$0xff] %v2848_v58   ;;  %v2501_v16 = vadd.f32 %v2500_v41, %v2454_v3  ;;  %v1921_v61 = vadd.f32 %v1794_v31, %v1169_v55  ;;  %v2352_v4 = vadd.f32 %v2351_v0, %v1920_v26 }
 0x191   :  { %v2457_v27 = vmul.f32 %v1922_v15, %v1922_v15 }
 0x192   :  { %v2853_v60 = vpack.c.bf16 %v1922_v15, %v1921_v61  ;;  %v2353_v57 = vadd.f32 %v2352_v4, %v1921_v61  ;;  %v2456_v51 = vmul.f32 %v1921_v61, %v1921_v61  ;;  %v2502_v21 = vadd.f32 %v2501_v16, %v2455_v62  ;;  %v3117_v48 = vpop.f32.mrb[78].mxu1 }
 0x193   :  { %v1924_v45 = vadd.f32 %v3117_v48, %v1180_v38  ;;  %v1804_v49 = vpop.f32.mrb[79].mxu1 }
 0x194   :  { %2913 = vst [vmem:[%s4067_s4 + $0x70] sm:$0xff] %v2853_v60   ;;  %v2503_v8 = vadd.f32 %v2502_v21, %v2456_v51  ;;  %v1923_v13 = vadd.f32 %v1804_v49, %v1177_v20  ;;  %v2354_v43 = vadd.f32 %v2353_v57, %v1922_v15  ;;  %v959_v63 = vpop.f32.mrb[64].mxu0 }
 0x195   :  { %v1185_v30 = vadd.f32 %v3857_v17, %v959_v63  ;;  %v961_v55 = vpop.f32.mrb[65].mxu0  ;;  %v2459_v22 = vmul.f32 %v1924_v45, %v1924_v45 }
 0x196   :  { %v2858_v35 = vpack.c.bf16 %v1924_v45, %v1923_v13  ;;  %v2355_v42 = vadd.f32 %v2354_v43, %v1923_v13  ;;  %v2458_v37 = vmul.f32 %v1923_v13, %v1923_v13  ;;  %v2504_v11 = vadd.f32 %v2503_v8, %v2457_v27  ;;  %v3120_v7 = vpop.f32.mrb[80].mxu1  ;;  %v962_v47 = vpop.f32.mrb[66].mxu0 }
 0x197   :  { %v1188_v52 = vadd.f32 %v3861_v19, %v962_v47  ;;  %v1814_v44 = vpop.f32.mrb[81].mxu1  ;;  %v964_v53 = vpop.f32.mrb[67].mxu0 }
 0x198   :  { %2914 = vst [vmem:[%s4067_s4 + $0x78] sm:$0xff] %v2858_v35   ;;  %v2505_v39 = vadd.f32 %v2504_v11, %v2458_v37  ;;  %v1925_v26 = vadd.f32 %v1814_v44, %v1185_v30  ;;  %v2356_v5 = vadd.f32 %v2355_v42, %v1924_v45 }
 0x199   :  { %v1926_v17 = vadd.f32 %v3120_v7, %v1188_v52 }
 0x19a   :  { %v2357_v32 = vadd.f32 %v2356_v5, %v1925_v26  ;;  %v2460_v9 = vmul.f32 %v1925_v26, %v1925_v26  ;;  %v2506_v33 = vadd.f32 %v2505_v39, %v2459_v22  ;;  %v3123_v23 = vpop.f32.mrb[82].mxu1 }
 0x19b   :  { %v2461_v59 = vmul.f32 %v1926_v17, %v1926_v17  ;;  %v2863_v20 = vpack.c.bf16 %v1926_v17, %v1925_v26  ;;  %v1824_v40 = vpop.f32.mrb[83].mxu1 }
 0x19c   :  { %v2507_v58 = vadd.f32 %v2506_v33, %v2460_v9  ;;  %v967_v19 = vpop.f32.mrb[68].mxu0  ;;  %v2358_v0 = vadd.f32 %v2357_v32, %v1926_v17 }
 0x19d   :  { %2915 = vst [vmem:[%s4067_s4 + $0x80] sm:$0xff] %v2863_v20   ;;  %v1193_v3 = vadd.f32 %v3853_v14, %v967_v19  ;;  %v969_v41 = vpop.f32.mrb[69].mxu0 }
 0x19e   :  { %v970_v28 = vpop.f32.mrb[70].mxu0  ;;  %v2508_v25 = vadd.f32 %v2507_v58, %v2461_v59  ;;  %v3126_v15 = vpop.f32.mrb[84].mxu1 }
 0x19f   :  { %v1196_v38 = vadd.f32 %v3859_v18, %v970_v28  ;;  %v1927_v31 = vadd.f32 %v1824_v40, %v1193_v3  ;;  %v972_v1 = vpop.f32.mrb[71].mxu0  ;;  %v1834_v62 = vpop.f32.mrb[85].mxu1 }
 0x1a1   :  { %v1928_v16 = vadd.f32 %v3123_v23, %v1196_v38  ;;  %v2359_v61 = vadd.f32 %v2358_v0, %v1927_v31  ;;  %v2462_v4 = vmul.f32 %v1927_v31, %v1927_v31 }
 0x1a2   :  { %v3129_v60 = vpop.f32.mrb[86].mxu1 }
 0x1a3   :  { %v2463_v57 = vmul.f32 %v1928_v16, %v1928_v16  ;;  %v2868_v51 = vpack.c.bf16 %v1928_v16, %v1927_v31  ;;  %v2509_v21 = vadd.f32 %v2508_v25, %v2462_v4  ;;  %v2360_v48 = vadd.f32 %v2359_v61, %v1928_v16  ;;  %v1844_v45 = vpop.f32.mrb[87].mxu1 }
 0x1a4   :  { %v975_v49 = vpop.f32.mrb[72].mxu0 }
 0x1a5   :  { %2916 = vst [vmem:[%s4067_s4 + $0x88] sm:$0xff] %v2868_v51   ;;  %v1201_v14 = vadd.f32 %v3869_v34, %v975_v49  ;;  %v977_v18 = vpop.f32.mrb[73].mxu0  ;;  %v2510_v27 = vadd.f32 %v2509_v21, %v2463_v57 }
 0x1a6   :  { %v978_v8 = vpop.f32.mrb[74].mxu0  ;;  %v3132_v13 = vpop.f32.mrb[88].mxu1 }
 0x1a7   :  { %v1204_v43 = vadd.f32 %v3873_v36, %v978_v8  ;;  %v1929_v63 = vadd.f32 %v1834_v62, %v1201_v14  ;;  %v980_v30 = vpop.f32.mrb[75].mxu0  ;;  %v1854_v55 = vpop.f32.mrb[89].mxu1 }
 0x1a9   :  { %v1930_v35 = vadd.f32 %v3126_v15, %v1204_v43  ;;  %v2361_v42 = vadd.f32 %v2360_v48, %v1929_v63  ;;  %v2464_v37 = vmul.f32 %v1929_v63, %v1929_v63 }
 0x1aa   :  { %v3135_v11 = vpop.f32.mrb[90].mxu1 }
 0x1ab   :  { %v2465_v7 = vmul.f32 %v1930_v35, %v1930_v35  ;;  %v2873_v47 = vpack.c.bf16 %v1930_v35, %v1929_v63  ;;  %v2511_v52 = vadd.f32 %v2510_v27, %v2464_v37  ;;  %v2362_v44 = vadd.f32 %v2361_v42, %v1930_v35  ;;  %v1864_v53 = vpop.f32.mrb[91].mxu1 }
 0x1ac   :  { %v983_v22 = vpop.f32.mrb[76].mxu0 }
 0x1ad   :  { %2917 = vst [vmem:[%s4067_s4 + $0x90] sm:$0xff] %v2873_v47   ;;  %v1209_v34 = vadd.f32 %v3865_v24, %v983_v22  ;;  %v985_v36 = vpop.f32.mrb[77].mxu0  ;;  %v2512_v39 = vadd.f32 %v2511_v52, %v2465_v7 }
 0x1ae   :  { %v986_v26 = vpop.f32.mrb[78].mxu0  ;;  %v3138_v5 = vpop.f32.mrb[92].mxu1 }
 0x1af   :  { %v1212_v17 = vadd.f32 %v3871_v29, %v986_v26  ;;  %v1931_v32 = vadd.f32 %v1844_v45, %v1209_v34  ;;  %v988_v9 = vpop.f32.mrb[79].mxu0  ;;  %v1874_v33 = vpop.f32.mrb[93].mxu1 }
 0x1b1   :  { %v1932_v23 = vadd.f32 %v3129_v60, %v1212_v17  ;;  %v2363_v59 = vadd.f32 %v2362_v44, %v1931_v32  ;;  %v2466_v20 = vmul.f32 %v1931_v32, %v1931_v32 }
 0x1b2   :  { %v4030_v40 = vpop.f32.mrb[94].mxu1 }
 0x1b3   :  { %v2467_v58 = vmul.f32 %v1932_v23, %v1932_v23  ;;  %v2878_v19 = vpack.c.bf16 %v1932_v23, %v1931_v32  ;;  %v2513_v0 = vadd.f32 %v2512_v39, %v2466_v20  ;;  %v2364_v3 = vadd.f32 %v2363_v59, %v1932_v23  ;;  %v1884_v41 = vpop.f32.mrb[95].mxu1 }
 0x1b4   :  { %v991_v24 = vpop.f32.mrb[80].mxu0 }
 0x1b5   :  { %2918 = vst [vmem:[%s4067_s4 + $0x98] sm:$0xff] %v2878_v19   ;;  %v1217_v29 = vadd.f32 %v3883_v50, %v991_v24  ;;  %v993_v28 = vpop.f32.mrb[81].mxu0  ;;  %v2514_v25 = vadd.f32 %v2513_v0, %v2467_v58 }
 0x1b6   :  { %v994_v15 = vpop.f32.mrb[82].mxu0 }
 0x1b7   :  { %v1220_v38 = vadd.f32 %v3887_v56, %v994_v15  ;;  %v1933_v31 = vadd.f32 %v1854_v55, %v1217_v29  ;;  %v996_v1 = vpop.f32.mrb[83].mxu0 }
 0x1b9   :  { %v1934_v62 = vadd.f32 %v3132_v13, %v1220_v38  ;;  %v2365_v16 = vadd.f32 %v2364_v3, %v1933_v31  ;;  %v2468_v61 = vmul.f32 %v1933_v31, %v1933_v31 }
 0x1bb   :  { %v2469_v4 = vmul.f32 %v1934_v62, %v1934_v62  ;;  %v2883_v60 = vpack.c.bf16 %v1934_v62, %v1933_v31  ;;  %v2515_v57 = vadd.f32 %v2514_v25, %v2468_v61  ;;  %v2366_v51 = vadd.f32 %v2365_v16, %v1934_v62 }
 0x1bc   :  { %v999_v21 = vpop.f32.mrb[84].mxu0 }
 0x1bd   :  { %2919 = vst [vmem:[%s4067_s4 + $0xa0] sm:$0xff] %v2883_v60   ;;  %v1225_v50 = vadd.f32 %v3878_v46, %v999_v21  ;;  %v1001_v48 = vpop.f32.mrb[85].mxu0  ;;  %v2516_v45 = vadd.f32 %v2515_v57, %v2469_v4 }
 0x1be   :  { %v1002_v49 = vpop.f32.mrb[86].mxu0 }
 0x1bf   :  { %v1228_v56 = vadd.f32 %v3885_v54, %v1002_v49  ;;  %v1935_v14 = vadd.f32 %v1864_v53, %v1225_v50  ;;  %v1004_v18 = vpop.f32.mrb[87].mxu0 }
 0x1c1   :  { %v1936_v27 = vadd.f32 %v3135_v11, %v1228_v56  ;;  %v2367_v8 = vadd.f32 %v2366_v51, %v1935_v14  ;;  %v2470_v13 = vmul.f32 %v1935_v14, %v1935_v14 }
 0x1c3   :  { %v2471_v43 = vmul.f32 %v1936_v27, %v1936_v27  ;;  %v2888_v63 = vpack.c.bf16 %v1936_v27, %v1935_v14  ;;  %v2517_v30 = vadd.f32 %v2516_v45, %v2470_v13  ;;  %v2368_v55 = vadd.f32 %v2367_v8, %v1936_v27 }
 0x1c4   :  { %v1007_v35 = vpop.f32.mrb[88].mxu0 }
 0x1c5   :  { %2920 = vst [vmem:[%s4067_s4 + $0xa8] sm:$0xff] %v2888_v63   ;;  %v1233_v46 = vadd.f32 %v3897_v6, %v1007_v35  ;;  %v1009_v42 = vpop.f32.mrb[89].mxu0  ;;  %v2518_v37 = vadd.f32 %v2517_v30, %v2471_v43 }
 0x1c6   :  { %v1010_v7 = vpop.f32.mrb[90].mxu0 }
 0x1c7   :  { %v1236_v54 = vadd.f32 %v3901_v12, %v1010_v7  ;;  %v1937_v47 = vadd.f32 %v1874_v33, %v1233_v46  ;;  %v1012_v11 = vpop.f32.mrb[91].mxu0 }
 0x1c9   :  { %v1938_v52 = vadd.f32 %v3138_v5, %v1236_v54  ;;  %v2369_v44 = vadd.f32 %v2368_v55, %v1937_v47  ;;  %v2472_v53 = vmul.f32 %v1937_v47, %v1937_v47 }
 0x1cb   :  { %v2473_v22 = vmul.f32 %v1938_v52, %v1938_v52  ;;  %v2893_v34 = vpack.c.bf16 %v1938_v52, %v1937_v47  ;;  %v2519_v36 = vadd.f32 %v2518_v37, %v2472_v53  ;;  %v2370_v39 = vadd.f32 %v2369_v44, %v1938_v52 }
 0x1cc   :  { %v1015_v26 = vpop.f32.mrb[92].mxu0 }
 0x1cd   :  { %2921 = vst [vmem:[%s4067_s4 + $0xb0] sm:$0xff] %v2893_v34   ;;  %v1241_v6 = vadd.f32 %v3892_v2, %v1015_v26  ;;  %v1017_v17 = vpop.f32.mrb[93].mxu0  ;;  %v2520_v32 = vadd.f32 %v2519_v36, %v2473_v22 }
 0x1ce   :  { %v1018_v9 = vpop.f32.mrb[94].mxu0 }
 0x1cf   :  { %v1939_v12 = vadd.f32 %v1884_v41, %v1241_v6  ;;  %v1244_v33 = vadd.f32 %v3899_v10, %v1018_v9  ;;  %v1020_v5 = vpop.f32.mrb[95].mxu0 }
 0x1d1   :  { %v2371_v23 = vadd.f32 %v2370_v39, %v1939_v12  ;;  %v2474_v59 = vmul.f32 %v1939_v12, %v1939_v12  ;;  %v1940_v20 = vadd.f32 %v4030_v40, %v1244_v33 }
 0x1d3   :  { %v2521_v58 = vadd.f32 %v2520_v32, %v2474_v59  ;;  %v2898_v19 = vpack.c.bf16 %v1940_v20, %v1939_v12  ;;  %v2372_v0 = vadd.f32 %v2371_v23, %v1940_v20  ;;  %v2475_v3 = vmul.f32 %v1940_v20, %v1940_v20 }
 0x1d5   :  { %2922 = vst [vmem:[%s4067_s4 + $0xb8] sm:$0xff] %v2898_v19   ;;  %v2373_v2 = vrot.slane %v2372_v0, 4  ;;  %v2522_v24 = vadd.f32 %v2521_v58, %v2475_v3 }
 0x1d7   :  { %v2374_v29 = vadd.f32 %v2373_v2, %v2372_v0  ;;  %v2523_v28 = vrot.slane %v2522_v24, 4 }
 0x1d9   :  { %v2375_v41 = vrot.slane %v2374_v29, 2  ;;  %v2524_v25 = vadd.f32 %v2523_v28, %v2522_v24 }
 0x1db   :  { %v2376_v10 = vadd.f32 %v2375_v41, %v2374_v29  ;;  %v2525_v15 = vrot.slane %v2524_v25, 2 }
 0x1dd   :  { %v2377_v38 = vrot.slane %v2376_v10, 1  ;;  %v2526_v31 = vadd.f32 %v2525_v15, %v2524_v25 }
 0x1df   :  { %v2378_v1 = vadd.f32 %v2377_v38, %v2376_v10  ;;  %v2527_v40 = vrot.slane %v2526_v31, 1 }
 0x1e1   :  { %2379 = vst [vmem:[%s4066_s5] sm:$0x1] %v2378_v1  ;;  %v2528_v62 = vadd.f32 %v2527_v40, %v2526_v31 }
 0x1e3   :  { %2529 = vst [vmem:[%s4066_s5 + $0x1] sm:$0x1] %v2528_v62 }

</bundles_post_ra>
